<compile_context>
chip_gen: v7x
topology: tpu7x:2x2x1
jax: 0.10.0
libtpu: 0.0.40
codegen_flags: <defaults>
</compile_context>

<pallas_src>
import jax
import jax.numpy as jnp
from jax.experimental import pallas as pl
from jax.experimental.pallas import tpu as pltpu

F1_DIM = 1024
F2_DIM = 1024
OUT_PAD = 128          # lane-dense padded output width
BN_EPS = 1e-5


def _bn_train(h, gamma, beta):
    """BatchNorm1d, training mode (biased batch variance), f32 stats.

    Two-pass centered variance (numerically safe); gamma/beta folded into a
    single per-feature scale/shift:  h*scale + shift.
    """
    inv_b = 1.0 / float(h.shape[0])
    mu = jnp.sum(h, axis=0, keepdims=True) * inv_b
    d = h - mu
    var = jnp.sum(d * d, axis=0, keepdims=True) * inv_b
    scale = gamma * jax.lax.rsqrt(var + BN_EPS)
    shift = beta - mu * scale
    return h * scale + shift


def dqn_latent_kernel(x_ref, w1_ref, vec_ref, b3_ref, w2_hbm, w3_hbm, out_ref,
                      w2_vmem, w3_vmem, sem):
    # Kick off the large weight DMAs immediately so layer-1/BN1 compute hides
    # the w2 stream and layer-2/BN2 hides the w3 stream.
    w2_cp = pltpu.make_async_copy(w2_hbm, w2_vmem, sem.at[0])
    w3_cp = pltpu.make_async_copy(w3_hbm, w3_vmem, sem.at[1])
    w2_cp.start()
    w3_cp.start()

    # bf16 activations into the MXU, f32 accumulation, f32 BN math.
    x = x_ref[...].astype(jnp.bfloat16)

    vec = vec_ref[...]                       # [6, 1024] f32
    b1, g1, be1 = vec[0:1], vec[1:2], vec[2:3]
    b2, g2, be2 = vec[3:4], vec[4:5], vec[5:6]

    # Linear 1 + ReLU + BN1  (overlaps with the 2 MiB w2 DMA)
    h1 = jnp.dot(x, w1_ref[...], preferred_element_type=jnp.float32) + b1
    h1 = jnp.maximum(h1, 0.0)
    h1 = _bn_train(h1, g1, be1)

    # Linear 2 + ReLU + BN2
    w2_cp.wait()
    h2 = jnp.dot(h1.astype(jnp.bfloat16), w2_vmem[...],
                 preferred_element_type=jnp.float32) + b2
    h2 = jnp.maximum(h2, 0.0)
    h2 = _bn_train(h2, g2, be2)

    # Output head (padded to 128 lanes for an unmasked, lane-dense store)
    w3_cp.wait()
    out_ref[...] = jnp.dot(h2.astype(jnp.bfloat16), w3_vmem[...],
                           preferred_element_type=jnp.float32) + b3_ref[...]


def init_params(key, latent_dim, outputs):
    """normal_init: Linear weights ~ N(0, 0.004), biases = 0; BN gamma=1, beta=0.

    Weights stored in bf16 (MXU-native); per-feature vectors packed f32.
    w3/b3 are zero-padded from `outputs` to OUT_PAD columns.
    """
    assert outputs <= OUT_PAD
    k1, k2, k3 = jax.random.split(key, 3)

    w1 = (jax.random.normal(k1, (latent_dim, F1_DIM), jnp.float32) * 0.004).astype(jnp.bfloat16)
    w2 = (jax.random.normal(k2, (F1_DIM, F2_DIM), jnp.float32) * 0.004).astype(jnp.bfloat16)
    w3_core = jax.random.normal(k3, (F2_DIM, outputs), jnp.float32) * 0.004
    w3 = jnp.zeros((F2_DIM, OUT_PAD), jnp.float32).at[:, :outputs].set(w3_core).astype(jnp.bfloat16)

    # Packed per-feature vectors: rows = [b1, g1, be1, b2, g2, be2]
    vecs = jnp.stack([
        jnp.zeros((F1_DIM,), jnp.float32),   # b1
        jnp.ones((F1_DIM,), jnp.float32),    # g1
        jnp.zeros((F1_DIM,), jnp.float32),   # be1
        jnp.zeros((F2_DIM,), jnp.float32),   # b2
        jnp.ones((F2_DIM,), jnp.float32),    # g2
        jnp.zeros((F2_DIM,), jnp.float32),   # be2
    ], axis=0)

    b3 = jnp.zeros((1, OUT_PAD), jnp.float32)

    return dict(w1=w1, w2=w2, w3=w3, vecs=vecs, b3=b3, outputs=outputs,
                latent_dim=latent_dim)


def dqn_latent_forward(x, params):
    """Pallas implementation of DQNLatent.forward. Returns (q_values, None)."""
    B = x.shape[0]
    latent_dim = params["latent_dim"]
    outputs = params["outputs"]

    vmem_spec = pl.BlockSpec(memory_space=pltpu.MemorySpace.VMEM)
    hbm_spec = pl.BlockSpec(memory_space=pl.ANY)   # manual DMA inside the kernel

    flops = 2 * B * (latent_dim * F1_DIM + F1_DIM * F2_DIM + F2_DIM * OUT_PAD)
    bytes_accessed = (
        x.size * x.dtype.itemsize
        + params["w1"].size * 2 + params["w2"].size * 2 + params["w3"].size * 2
        + params["vecs"].size * 4 + params["b3"].size * 4
        + B * OUT_PAD * 4
    )
    cost = pl.CostEstimate(flops=flops,
                           transcendentals=F1_DIM + F2_DIM,   # one rsqrt per BN feature
                           bytes_accessed=bytes_accessed)

    q_pad = pl.pallas_call(
        dqn_latent_kernel,
        out_shape=jax.ShapeDtypeStruct((B, OUT_PAD), jnp.float32),
        in_specs=[vmem_spec,   # x
                  vmem_spec,   # w1 (small: latent_dim x 1024 bf16)
                  vmem_spec,   # packed per-feature vectors
                  vmem_spec,   # b3
                  hbm_spec,    # w2 -> manual overlapped DMA
                  hbm_spec],   # w3 -> manual overlapped DMA
        out_specs=vmem_spec,
        scratch_shapes=[
            pltpu.VMEM((F1_DIM, F2_DIM), jnp.bfloat16),   # w2 landing buffer
            pltpu.VMEM((F2_DIM, OUT_PAD), jnp.bfloat16),  # w3 landing buffer
            pltpu.SemaphoreType.DMA((2,)),
        ],
        cost_estimate=cost,
    )(x, params["w1"], params["vecs"], params["b3"], params["w2"], params["w3"])

    # Slice padded columns back to the module's output width.
    return q_pad[:, :outputs], None


def dqn_latent_ref(x, params):
    """Pure-JAX reference (two-pass BN, same bf16 weight quantization)."""
    vecs = params["vecs"]
    b1, g1, be1 = vecs[0:1], vecs[1:2], vecs[2:3]
    b2, g2, be2 = vecs[3:4], vecs[4:5], vecs[5:6]

    def bn(h, gamma, beta):
        mu = jnp.mean(h, axis=0, keepdims=True)
        var = jnp.mean((h - mu) ** 2, axis=0, keepdims=True)
        return (h - mu) * jax.lax.rsqrt(var + BN_EPS) * gamma + beta

    h1 = jnp.dot(x.astype(jnp.bfloat16), params["w1"],
                 preferred_element_type=jnp.float32) + b1
    h1 = bn(jnp.maximum(h1, 0.0), g1, be1)
    h2 = jnp.dot(h1.astype(jnp.bfloat16), params["w2"],
                 preferred_element_type=jnp.float32) + b2
    h2 = bn(jnp.maximum(h2, 0.0), g2, be2)
    q = jnp.dot(h2.astype(jnp.bfloat16), params["w3"],
                preferred_element_type=jnp.float32) + params["b3"]
    return q[:, :params["outputs"]]


if __name__ == "__main__":
    B = 8            # batch size (BN training mode needs B >= 2)
    LATENT_DIM = 32  # module input_dim
    OUTPUTS = 8      # module output_dim (number of actions)

    key = jax.random.PRNGKey(0)
    kx, kp = jax.random.split(key)

    x = jax.random.normal(kx, (B, LATENT_DIM), jnp.float32)
    params = init_params(kp, LATENT_DIM, OUTPUTS)

    q, hidden = dqn_latent_forward(x, params)
    q = jax.block_until_ready(q)

    q_ref = dqn_latent_ref(x, params)

    assert hidden is None
    assert q.shape == (B, OUTPUTS)
    assert jnp.allclose(q, q_ref, atol=1e-3, rtol=1e-2), "mismatch vs JAX reference"

    print("KERNEL_OK")
</pallas_src>

<mosaic_0001>
module attributes {stable_mosaic.version = 11 : i64} {
  func.func @dqn_latent_kernel(%arg0: memref<8x32xf32, #tpu.memory_space<vmem>>, %arg1: memref<32x1024xbf16, #tpu.memory_space<vmem>>, %arg2: memref<6x1024xf32, #tpu.memory_space<vmem>>, %arg3: memref<1x128xf32, #tpu.memory_space<vmem>>, %arg4: memref<1024x1024xbf16, #tpu.memory_space<any>>, %arg5: memref<1024x128xbf16, #tpu.memory_space<any>>, %arg6: memref<8x128xf32, #tpu.memory_space<vmem>>, %arg7: memref<1024x1024xbf16, #tpu.memory_space<vmem>>, %arg8: memref<1024x128xbf16, #tpu.memory_space<vmem>>, %arg9: memref<2x!tpu.dma_semaphore, #tpu.memory_space<semaphore_mem>>) attributes {dimension_semantics = [], scalar_prefetch = 0 : i64, scratch_operands = 3 : i64, tpu.core_type = #tpu.core_type<tc>} {
    %c0_i32 = arith.constant 0 : i32
    %0 = tpu.memref_slice %arg9[%c0_i32] : memref<2x!tpu.dma_semaphore, #tpu.memory_space<semaphore_mem>> -> memref<1x!tpu.dma_semaphore, #tpu.memory_space<semaphore_mem>>
    %1 = tpu.memref_squeeze %0 : memref<1x!tpu.dma_semaphore, #tpu.memory_space<semaphore_mem>> -> memref<!tpu.dma_semaphore, #tpu.memory_space<semaphore_mem>>
    tpu.enqueue_dma source(%arg4 : memref<1024x1024xbf16, #tpu.memory_space<any>>) target(%arg7 : memref<1024x1024xbf16, #tpu.memory_space<vmem>>) target_semaphore(%1 : memref<!tpu.dma_semaphore, #tpu.memory_space<semaphore_mem>>)
    %c1_i32 = arith.constant 1 : i32
    %2 = tpu.memref_slice %arg9[%c1_i32] : memref<2x!tpu.dma_semaphore, #tpu.memory_space<semaphore_mem>> -> memref<1x!tpu.dma_semaphore, #tpu.memory_space<semaphore_mem>>
    %3 = tpu.memref_squeeze %2 : memref<1x!tpu.dma_semaphore, #tpu.memory_space<semaphore_mem>> -> memref<!tpu.dma_semaphore, #tpu.memory_space<semaphore_mem>>
    tpu.enqueue_dma source(%arg5 : memref<1024x128xbf16, #tpu.memory_space<any>>) target(%arg8 : memref<1024x128xbf16, #tpu.memory_space<vmem>>) target_semaphore(%3 : memref<!tpu.dma_semaphore, #tpu.memory_space<semaphore_mem>>)
    %c0 = arith.constant 0 : index
    %c0_0 = arith.constant 0 : index
    %4 = vector.load %arg0[%c0, %c0_0] : memref<8x32xf32, #tpu.memory_space<vmem>>, vector<8x32xf32>
    %5 = arith.truncf %4 : vector<8x32xf32> to vector<8x32xbf16>
    %c0_1 = arith.constant 0 : index
    %c0_2 = arith.constant 0 : index
    %6 = vector.load %arg2[%c0_1, %c0_2] : memref<6x1024xf32, #tpu.memory_space<vmem>>, vector<6x1024xf32>
    %7 = vector.extract_strided_slice %6 {offsets = [0, 0], sizes = [1, 1024], strides = [1, 1]} : vector<6x1024xf32> to vector<1x1024xf32>
    %8 = vector.extract_strided_slice %6 {offsets = [1, 0], sizes = [1, 1024], strides = [1, 1]} : vector<6x1024xf32> to vector<1x1024xf32>
    %9 = vector.extract_strided_slice %6 {offsets = [2, 0], sizes = [1, 1024], strides = [1, 1]} : vector<6x1024xf32> to vector<1x1024xf32>
    %10 = vector.extract_strided_slice %6 {offsets = [3, 0], sizes = [1, 1024], strides = [1, 1]} : vector<6x1024xf32> to vector<1x1024xf32>
    %11 = vector.extract_strided_slice %6 {offsets = [4, 0], sizes = [1, 1024], strides = [1, 1]} : vector<6x1024xf32> to vector<1x1024xf32>
    %12 = vector.extract_strided_slice %6 {offsets = [5, 0], sizes = [1, 1024], strides = [1, 1]} : vector<6x1024xf32> to vector<1x1024xf32>
    %c0_3 = arith.constant 0 : index
    %c0_4 = arith.constant 0 : index
    %13 = vector.load %arg1[%c0_3, %c0_4] : memref<32x1024xbf16, #tpu.memory_space<vmem>>, vector<32x1024xbf16>
    %cst = arith.constant dense<0.000000e+00> : vector<8x1024xf32>
    %14 = tpu.matmul %5, %13, %cst {dimension_numbers = #tpu.dot_dimension_numbers<[1], [0], [0], [1], [0, 0, 1, 1], [], []>} : vector<8x32xbf16>, vector<32x1024xbf16>, vector<8x1024xf32> -> vector<8x1024xf32>
    %15 = vector.broadcast %7 : vector<1x1024xf32> to vector<8x1024xf32>
    %16 = arith.addf %14, %15 : vector<8x1024xf32>
    %cst_5 = arith.constant 0.000000e+00 : f32
    %17 = vector.broadcast %cst_5 : f32 to vector<8x1024xf32>
    %18 = arith.maximumf %16, %17 : vector<8x1024xf32>
    %cst_6 = arith.constant dense<0.000000e+00> : vector<1024xf32>
    %19 = vector.multi_reduction <add>, %18, %cst_6 [0] : vector<8x1024xf32> to vector<1024xf32>
    %20 = vector.shape_cast %19 : vector<1024xf32> to vector<1x1024xf32>
    %cst_7 = arith.constant 1.250000e-01 : f32
    %21 = vector.broadcast %cst_7 : f32 to vector<1x1024xf32>
    %22 = arith.mulf %20, %21 : vector<1x1024xf32>
    %23 = vector.broadcast %22 : vector<1x1024xf32> to vector<8x1024xf32>
    %24 = arith.subf %18, %23 : vector<8x1024xf32>
    %25 = arith.mulf %24, %24 : vector<8x1024xf32>
    %cst_8 = arith.constant dense<0.000000e+00> : vector<1024xf32>
    %26 = vector.multi_reduction <add>, %25, %cst_8 [0] : vector<8x1024xf32> to vector<1024xf32>
    %27 = vector.shape_cast %26 : vector<1024xf32> to vector<1x1024xf32>
    %cst_9 = arith.constant 1.250000e-01 : f32
    %28 = vector.broadcast %cst_9 : f32 to vector<1x1024xf32>
    %29 = arith.mulf %27, %28 : vector<1x1024xf32>
    %cst_10 = arith.constant 9.99999974E-6 : f32
    %30 = vector.broadcast %cst_10 : f32 to vector<1x1024xf32>
    %31 = arith.addf %29, %30 : vector<1x1024xf32>
    %32 = math.rsqrt %31 : vector<1x1024xf32>
    %33 = arith.mulf %8, %32 : vector<1x1024xf32>
    %34 = arith.mulf %22, %33 : vector<1x1024xf32>
    %35 = arith.subf %9, %34 : vector<1x1024xf32>
    %36 = vector.broadcast %33 : vector<1x1024xf32> to vector<8x1024xf32>
    %37 = arith.mulf %18, %36 : vector<8x1024xf32>
    %38 = vector.broadcast %35 : vector<1x1024xf32> to vector<8x1024xf32>
    %39 = arith.addf %37, %38 : vector<8x1024xf32>
    %c0_i32_11 = arith.constant 0 : i32
    %40 = tpu.memref_slice %arg9[%c0_i32_11] : memref<2x!tpu.dma_semaphore, #tpu.memory_space<semaphore_mem>> -> memref<1x!tpu.dma_semaphore, #tpu.memory_space<semaphore_mem>>
    %41 = tpu.memref_squeeze %40 : memref<1x!tpu.dma_semaphore, #tpu.memory_space<semaphore_mem>> -> memref<!tpu.dma_semaphore, #tpu.memory_space<semaphore_mem>>
    tpu.wait_dma2 semaphore(%41 : memref<!tpu.dma_semaphore, #tpu.memory_space<semaphore_mem>>) src(%arg4 : memref<1024x1024xbf16, #tpu.memory_space<any>>) dst(%arg7 : memref<1024x1024xbf16, #tpu.memory_space<vmem>>)
    %42 = arith.truncf %39 : vector<8x1024xf32> to vector<8x1024xbf16>
    %c0_12 = arith.constant 0 : index
    %c0_13 = arith.constant 0 : index
    %43 = vector.load %arg7[%c0_12, %c0_13] : memref<1024x1024xbf16, #tpu.memory_space<vmem>>, vector<1024x1024xbf16>
    %cst_14 = arith.constant dense<0.000000e+00> : vector<8x1024xf32>
    %44 = tpu.matmul %42, %43, %cst_14 {dimension_numbers = #tpu.dot_dimension_numbers<[1], [0], [0], [1], [0, 0, 1, 1], [], []>} : vector<8x1024xbf16>, vector<1024x1024xbf16>, vector<8x1024xf32> -> vector<8x1024xf32>
    %45 = vector.broadcast %10 : vector<1x1024xf32> to vector<8x1024xf32>
    %46 = arith.addf %44, %45 : vector<8x1024xf32>
    %cst_15 = arith.constant 0.000000e+00 : f32
    %47 = vector.broadcast %cst_15 : f32 to vector<8x1024xf32>
    %48 = arith.maximumf %46, %47 : vector<8x1024xf32>
    %cst_16 = arith.constant dense<0.000000e+00> : vector<1024xf32>
    %49 = vector.multi_reduction <add>, %48, %cst_16 [0] : vector<8x1024xf32> to vector<1024xf32>
    %50 = vector.shape_cast %49 : vector<1024xf32> to vector<1x1024xf32>
    %cst_17 = arith.constant 1.250000e-01 : f32
    %51 = vector.broadcast %cst_17 : f32 to vector<1x1024xf32>
    %52 = arith.mulf %50, %51 : vector<1x1024xf32>
    %53 = vector.broadcast %52 : vector<1x1024xf32> to vector<8x1024xf32>
    %54 = arith.subf %48, %53 : vector<8x1024xf32>
    %55 = arith.mulf %54, %54 : vector<8x1024xf32>
    %cst_18 = arith.constant dense<0.000000e+00> : vector<1024xf32>
    %56 = vector.multi_reduction <add>, %55, %cst_18 [0] : vector<8x1024xf32> to vector<1024xf32>
    %57 = vector.shape_cast %56 : vector<1024xf32> to vector<1x1024xf32>
    %cst_19 = arith.constant 1.250000e-01 : f32
    %58 = vector.broadcast %cst_19 : f32 to vector<1x1024xf32>
    %59 = arith.mulf %57, %58 : vector<1x1024xf32>
    %cst_20 = arith.constant 9.99999974E-6 : f32
    %60 = vector.broadcast %cst_20 : f32 to vector<1x1024xf32>
    %61 = arith.addf %59, %60 : vector<1x1024xf32>
    %62 = math.rsqrt %61 : vector<1x1024xf32>
    %63 = arith.mulf %11, %62 : vector<1x1024xf32>
    %64 = arith.mulf %52, %63 : vector<1x1024xf32>
    %65 = arith.subf %12, %64 : vector<1x1024xf32>
    %66 = vector.broadcast %63 : vector<1x1024xf32> to vector<8x1024xf32>
    %67 = arith.mulf %48, %66 : vector<8x1024xf32>
    %68 = vector.broadcast %65 : vector<1x1024xf32> to vector<8x1024xf32>
    %69 = arith.addf %67, %68 : vector<8x1024xf32>
    %c1_i32_21 = arith.constant 1 : i32
    %70 = tpu.memref_slice %arg9[%c1_i32_21] : memref<2x!tpu.dma_semaphore, #tpu.memory_space<semaphore_mem>> -> memref<1x!tpu.dma_semaphore, #tpu.memory_space<semaphore_mem>>
    %71 = tpu.memref_squeeze %70 : memref<1x!tpu.dma_semaphore, #tpu.memory_space<semaphore_mem>> -> memref<!tpu.dma_semaphore, #tpu.memory_space<semaphore_mem>>
    tpu.wait_dma2 semaphore(%71 : memref<!tpu.dma_semaphore, #tpu.memory_space<semaphore_mem>>) src(%arg5 : memref<1024x128xbf16, #tpu.memory_space<any>>) dst(%arg8 : memref<1024x128xbf16, #tpu.memory_space<vmem>>)
    %72 = arith.truncf %69 : vector<8x1024xf32> to vector<8x1024xbf16>
    %c0_22 = arith.constant 0 : index
    %c0_23 = arith.constant 0 : index
    %73 = vector.load %arg8[%c0_22, %c0_23] : memref<1024x128xbf16, #tpu.memory_space<vmem>>, vector<1024x128xbf16>
    %cst_24 = arith.constant dense<0.000000e+00> : vector<8x128xf32>
    %74 = tpu.matmul %72, %73, %cst_24 {dimension_numbers = #tpu.dot_dimension_numbers<[1], [0], [0], [1], [0, 0, 1, 1], [], []>} : vector<8x1024xbf16>, vector<1024x128xbf16>, vector<8x128xf32> -> vector<8x128xf32>
    %c0_25 = arith.constant 0 : index
    %c0_26 = arith.constant 0 : index
    %75 = vector.load %arg3[%c0_25, %c0_26] : memref<1x128xf32, #tpu.memory_space<vmem>>, vector<1x128xf32>
    %76 = vector.broadcast %75 : vector<1x128xf32> to vector<8x128xf32>
    %77 = arith.addf %74, %76 : vector<8x128xf32>
    %c0_27 = arith.constant 0 : index
    %c0_28 = arith.constant 0 : index
    %78 = vector.load %arg6[%c0_27, %c0_28] : memref<8x128xf32, #tpu.memory_space<vmem>>, vector<8x128xf32>
    tpu.vector_store %arg6[%c0_27, %c0_28], %77 {strides = array<i32>} : memref<8x128xf32, #tpu.memory_space<vmem>>, vector<8x128xf32>,
    return
  }
}

</mosaic_0001>

<bundles_post_ra>
// kernel: tpu_custom_call.1
= control target key start
LH: loop header
LB: loop body
LE: loop exit
PB: predicated region body
PF: predicated region fallthrough
CT: control target
= control target key end

     0   :  { %11 = vsyncpa [#allocation6], 0  ;;  %s3334_s0 = inlined_call_operand.hbm [shape: f32[8,32], index: 0, kind: input, shape index: {}]   ;;  %s3335_s1 = inlined_call_operand.hbm [shape: bf16[32,1024], index: 1, kind: input, shape index: {}]   ;;  %s3336_s2 = inlined_call_operand.hbm [shape: f32[6,1024], index: 2, kind: input, shape index: {}]   ;;  %s3337_s3 = inlined_call_operand.hbm [shape: f32[1,128], index: 3, kind: input, shape index: {}]   ;;  %s3338_s4 = inlined_call_operand.hbm [shape: bf16[1024,1024], index: 4, kind: input, shape index: {}]   ;;  %s3339_s5 = inlined_call_operand.hbm [shape: bf16[1024,128], index: 5, kind: input, shape index: {}]   ;;  %s3340_s6 = inlined_call_operand.hbm [shape: f32[8,128], index: 6, kind: output, shape index: {}]  }
   0x1   :  { %12 = vsyncpa [#allocation9], 0 }
   0x2   :  { %13 = vsyncpa [#allocation12], 0 }
   0x3   :  { %14 = vsyncpa [#allocation7], 0  ;;  %s2831_s21 = smov [#allocation8]   ;;  %s2687_s25 = scalar_lea.hbm %s3335_s1, 2048 }
   0x4   :  { %s30_s22 = sshll.u32 %s2831_s21, 4  ;;  %p2688_p0 = scmp.ne.s32.totalorder %s3335_s1, %s2687_s25  ;;  %s31_s22 = int_to_ptr.vmem [resolvable:$true] %s30_s22 }
   0x5   :  { %p2691_p1 = scmp.lt.u32.totalorder %s2687_s25, %s3335_s1 }
   0x7   :  { %p2693_p2 = pnand %p2691_p1, %p2688_p0 }
   0x9   :  { %2696 = shalt.err (!%p2693_p2)
}
   0xa   :  { %s2697_s30 = scalar_lea.vmem %s31_s22, 2048  ;;  %p2702_p4 = scmp.lt.s32.totalorder %s31_s22, %s31_s22 }
   0xb   :  { %p2698_p3 = scmp.ne.s32.totalorder %s31_s22, %s2697_s30  ;;  %p2703_p5 = scmp.lt.s32.totalorder %s2697_s30, %s2697_s30 }
   0xd   :  { %p2704_p6 = por %p2703_p5, %p2702_p4 }
   0xf   :  { %p2705_p7 = pnand %p2704_p6, %p2698_p3 }
  0x11   :  { %2708 = shalt.err (!%p2705_p7)
}
  0x12   :  { %s2832_s7 = smov 512   ;;  %s2833_s8 = smov 32  }
  0x13   :  { %36 = dma.hbm_to_vmem [thread:$0]  %s3335_s1, 2048, %s31_s22, [#allocation9], %s2832_s7, %s2832_s7, %s2833_s8  }
  0x14   :  { %s2834_s11 = smov [#allocation5]   ;;  %s2835_s13 = smov [#allocation10]  }
  0x15   :  { %s21_s12 = sshll.u32 %s2834_s11, 4  ;;  %s43_s14 = sshll.u32 %s2835_s13, 4  ;;  %s22_s12 = int_to_ptr.vmem [resolvable:$true] %s21_s12  ;;  %s44_s14 = int_to_ptr.vmem [resolvable:$true] %s43_s14 }
  0x16   :  { %s2709_s17 = scalar_lea.hbm %s3334_s0, 128 }
  0x17   :  { %p2710_p8 = scmp.ne.s32.totalorder %s3334_s0, %s2709_s17  ;;  %p2713_p9 = scmp.lt.u32.totalorder %s2709_s17, %s3334_s0 }
  0x19   :  { %p2715_p10 = pnand %p2713_p9, %p2710_p8 }
  0x1b   :  { %2718 = shalt.err (!%p2715_p10)
}
  0x1c   :  { %s2719_s1 = scalar_lea.vmem %s22_s12, 128  ;;  %p2724_p12 = scmp.lt.s32.totalorder %s22_s12, %s22_s12 }
  0x1d   :  { %p2720_p11 = scmp.ne.s32.totalorder %s22_s12, %s2719_s1  ;;  %p2725_p13 = scmp.lt.s32.totalorder %s2719_s1, %s2719_s1 }
  0x1f   :  { %p2726_p0 = por %p2725_p13, %p2724_p12 }
  0x21   :  { %p2727_p1 = pnand %p2726_p0, %p2720_p11 }
  0x23   :  { %2730 = shalt.err (!%p2727_p1)
}
  0x24   :  { %24 = dma.hbm_to_vmem [thread:$0]  %s3334_s0, 128, %s22_s12, [#allocation6]  }
  0x25   :  { %s2731_s26 = scalar_lea.hbm %s3336_s2, 1024 }
  0x26   :  { %p2732_p2 = scmp.ne.s32.totalorder %s3336_s2, %s2731_s26  ;;  %p2735_p3 = scmp.lt.u32.totalorder %s2731_s26, %s3336_s2 }
  0x28   :  { %p2737_p4 = pnand %p2735_p3, %p2732_p2 }
  0x2a   :  { %2740 = shalt.err (!%p2737_p4)
}
  0x2b   :  { %s2741_s8 = scalar_lea.vmem %s44_s14, 1024  ;;  %p2746_p6 = scmp.lt.s32.totalorder %s44_s14, %s44_s14 }
  0x2c   :  { %p2742_p5 = scmp.ne.s32.totalorder %s44_s14, %s2741_s8  ;;  %p2747_p7 = scmp.lt.s32.totalorder %s2741_s8, %s2741_s8 }
  0x2e   :  { %p2748_p8 = por %p2747_p7, %p2746_p6 }
  0x30   :  { %p2749_p9 = pnand %p2748_p8, %p2742_p5 }
  0x32   :  { %2752 = shalt.err (!%p2749_p9)
}
  0x33   :  { %46 = dma.hbm_to_vmem [thread:$0]  %s3336_s2, 1024, %s44_s14, [#allocation9]  }
  0x34   :  { %s2836_s10 = smov [#allocation11]   ;;  %s2753_s15 = scalar_lea.hbm %s3337_s3, 16 }
  0x35   :  { %s53_s11 = sshll.u32 %s2836_s10, 4  ;;  %p2754_p10 = scmp.ne.s32.totalorder %s3337_s3, %s2753_s15  ;;  %s54_s11 = int_to_ptr.vmem [resolvable:$true] %s53_s11 }
  0x36   :  { %p2757_p11 = scmp.lt.u32.totalorder %s2753_s15, %s3337_s3 }
  0x38   :  { %p2759_p12 = pnand %p2757_p11, %p2754_p10 }
  0x3a   :  { %2762 = shalt.err (!%p2759_p12)
}
  0x3b   :  { %s2763_s20 = scalar_lea.vmem %s54_s11, 16  ;;  %s2767_s2 = scalar_lea.vmem %s54_s11, 32 }
  0x3c   :  { %p2764_p13 = scmp.ne.s32.totalorder %s54_s11, %s2763_s20  ;;  %p2768_p0 = scmp.lt.s32.totalorder %s54_s11, %s54_s11 }
  0x3d   :  { %p2769_p1 = scmp.lt.s32.totalorder %s2767_s2, %s2763_s20 }
  0x3f   :  { %p2770_p2 = por %p2769_p1, %p2768_p0 }
  0x41   :  { %p2771_p3 = pnand %p2770_p2, %p2764_p13 }
  0x43   :  { %2774 = shalt.err (!%p2771_p3)
}
  0x44   :  { %56 = dma.hbm_to_vmem [thread:$0]  %s3337_s3, 16, %s54_s11, [#allocation12]  }
  0x45   :  { %2819 = dma.done.wait [#allocation6], 128  }
  0x46   :  { %2820 = vsyncadd [#allocation6], 4294967168 }
  0x47   :  { %2821 = dma.done.wait [#allocation9], 3072  }
  0x48   :  { %2822 = vsyncadd [#allocation9], 4294964224 }
  0x49   :  { %2823 = dma.done.wait [#allocation12], 16  }
  0x4a   :  { %2824 = vsyncadd [#allocation12], 4294967280  ;;  %s74_s1 = sld [smem:[#allocation0]]   ;;  %s2837_s22 = smov 1024   ;;  %v2838_v0 = vmov 0   ;;  %vm255_vm0 = vcmask 261120  }
  0x4b   :  { %86 = sst [smem:[#allocation15]] %s2837_s22  ;;  %291 = vmatprep.mubr.bf16.mxu0 %v2838_v0  ;;  %332 = vmatprep.mubr.bf16.mxu1 %v2838_v0  ;;  %s2839_s23 = smov 8  }
  0x4c   :  { %88 = sst [smem:[#allocation15 + $0x1]] %s2837_s22  ;;  %s2840_s24 = smov 64  }
  0x4d   :  { %90 = sst [smem:[#allocation15 + $0x2]] %s2839_s23  ;;  %s2841_s3 = smov 128  }
  0x4e   :  { %92 = sst [smem:[#allocation15 + $0x3]] %s2840_s24  ;;  %s2842_s25 = smov 2  }
  0x4f   :  { %94 = sst [smem:[#allocation15 + $0x4]] %s2841_s3  ;;  %s2843_s28 = smov 4  }
  0x50   :  { %96 = sst [smem:[#allocation15 + $0x5]] %s2842_s25  ;;  %s2468_s26 = sshll.u32 %s74_s1, 26 }
  0x51   :  { %98 = sst [smem:[#allocation15 + $0x6]] %s2832_s7  ;;  %s2469_s27 = sadd.s32 134217728, %s2468_s26 }
  0x52   :  { %100 = sst [smem:[#allocation15 + $0x7]] %s2840_s24  ;;  %s2844_s29 = smov [#allocation2]  }
  0x53   :  { %102 = sst [smem:[#allocation15 + $0x8]] %s2843_s28  ;;  %s82_s30 = sshll.u32 %s2844_s29, 4  ;;  %s83_s30 = int_to_ptr.vmem [resolvable:$true] %s82_s30 }
  0x54   :  { %s2845_s8 = smov [#allocation4]   ;;  %s2846_s0 = smov [#allocation14]  }
  0x55   :  { %104 = dma.general %s3338_s4, 65536, %s83_s30, %s2845_s8, %s2846_s0, [#allocation15], %s2469_s27, 0  }
  0x56   :  { %v127_v1 = vld [vmem:[#allocation8] sm:$0xff]  ;;  %v128_v3 = vld [vmem:[#allocation8 + $0x8] sm:$0xff]  ;;  %v129_v15 = vld [vmem:[#allocation8 + $0x10] sm:$0xff]  ;;  %s2847_s4 = smov [#allocation3]   ;;  %s2775_s13 = scalar_lea.hbm %s3339_s5, 8192 }
  0x57   :  { %v131_v2 = vld [vmem:[#allocation8 + $0x20] sm:$0xff]  ;;  %v132_v5 = vld [vmem:[#allocation8 + $0x28] sm:$0xff]  ;;  %v133_v16 = vld [vmem:[#allocation8 + $0x30] sm:$0xff]  ;;  %s113_s7 = sshll.u32 %s2847_s4, 4  ;;  %p2776_p4 = scmp.ne.s32.totalorder %s3339_s5, %s2775_s13  ;;  %s114_s7 = int_to_ptr.vmem [resolvable:$true] %s113_s7 }
  0x58   :  { %v2471_v4 = vcombine.high %v127_v1, %v131_v2  ;;  %v2470_v6 = vcombine.low %v127_v1, %v131_v2  ;;  %v135_v7 = vld [vmem:[#allocation8 + $0x40] sm:$0xff]  ;;  %v2473_v9 = vcombine.high %v128_v3, %v132_v5  ;;  %v2472_v10 = vcombine.low %v128_v3, %v132_v5  ;;  %v136_v12 = vld [vmem:[#allocation8 + $0x48] sm:$0xff]  ;;  %v130_v17 = vld [vmem:[#allocation8 + $0x18] sm:$0xff]  ;;  %p2779_p5 = scmp.lt.u32.totalorder %s2775_s13, %s3339_s5 }
  0x59   :  { %v139_v8 = vld [vmem:[#allocation8 + $0x60] sm:$0xff]  ;;  %v140_v13 = vld [vmem:[#allocation8 + $0x68] sm:$0xff]  ;;  %v117_v19 = vld [vmem:[#allocation5] sm:$0xff]  ;;  %v2475_v22 = vcombine.high %v129_v15, %v133_v16  ;;  %v2474_v29 = vcombine.low %v129_v15, %v133_v16 }
  0x5a   :  { %v2479_v11 = vcombine.high %v135_v7, %v139_v8  ;;  %259 = vmatprep.subr.bf16.mxu0 %v2471_v4  ;;  %v2481_v14 = vcombine.high %v136_v12, %v140_v13  ;;  %300 = vmatprep.subr.bf16.mxu1 %v2473_v9  ;;  %v2478_v18 = vcombine.low %v135_v7, %v139_v8  ;;  %v134_v20 = vld [vmem:[#allocation8 + $0x38] sm:$0xff]  ;;  %v137_v24 = vld [vmem:[#allocation8 + $0x50] sm:$0xff]  ;;  %p2781_p6 = pnand %p2779_p5, %p2776_p4 }
  0x5b   :  { %260 = vmatpush1.bf16.msra.mxu0 %v2470_v6  ;;  %301 = vmatpush1.bf16.msra.mxu1 %v2472_v10  ;;  %v2480_v21 = vcombine.low %v136_v12, %v140_v13  ;;  %v2477_v23 = vcombine.high %v130_v17, %v134_v20  ;;  %v141_v25 = vld [vmem:[#allocation8 + $0x70] sm:$0xff]  ;;  %v118_v26 = vpack.c.bf16 %v117_v19, %v117_v19  ;;  %v138_v27 = vld [vmem:[#allocation8 + $0x58] sm:$0xff] }
  0x5c   :  { %261 = vmatprep.subr.bf16.mxu0 %v2479_v11  ;;  %302 = vmatprep.subr.bf16.mxu1 %v2481_v14  ;;  %v142_v28 = vld [vmem:[#allocation8 + $0x78] sm:$0xff]  ;;  %v2476_v30 = vcombine.low %v130_v17, %v134_v20  ;;  %v2483_v31 = vcombine.high %v137_v24, %v141_v25  ;;  %v2482_v33 = vcombine.low %v137_v24, %v141_v25 }
  0x5d   :  { %v2485_v32 = vcombine.high %v138_v27, %v142_v28  ;;  %v2484_v34 = vcombine.low %v138_v27, %v142_v28 }
  0x5f   :  { %262 = vmatpush1.bf16.msra.mxu0 %v2478_v18  ;;  %303 = vmatpush1.bf16.msra.mxu1 %v2480_v21 }
  0x60   :  { %341 = vmatprep.subr.bf16.mxu0 %v2475_v22  ;;  %382 = vmatprep.subr.bf16.mxu1 %v2477_v23 }
  0x62   :  { %2486 = vmatmul.mubr.msk.bf16.vlgmr.msra.gmra.mrb[0].mxu0 %vm255_vm0, %v118_v26  ;;  %2487 = vmatmul.mubr.msk.bf16.vlgmr.msra.gmra.mrb[0].mxu1 %vm255_vm0, %v118_v26 }
  0x63   :  { %342 = vmatpush1.bf16.msra.mxu0 %v2474_v29  ;;  %383 = vmatpush1.bf16.msra.mxu1 %v2476_v30 }
  0x64   :  { %343 = vmatprep.subr.bf16.mxu0 %v2483_v31  ;;  %384 = vmatprep.subr.bf16.mxu1 %v2485_v32 }
  0x65   :  { %373 = vmatprep.mubr.bf16.mxu0 %v2838_v0  ;;  %414 = vmatprep.mubr.bf16.mxu1 %v2838_v0 }
  0x67   :  { %344 = vmatpush1.bf16.msra.mxu0 %v2482_v33  ;;  %385 = vmatpush1.bf16.msra.mxu1 %v2484_v34 }
  0x6a   :  { %2488 = vmatmul.mubr.msk.bf16.vlgmr.msra.gmra.mrb[4].mxu0 %vm255_vm0, %v118_v26  ;;  %2489 = vmatmul.mubr.msk.bf16.vlgmr.msra.gmra.mrb[4].mxu1 %vm255_vm0, %v118_v26 }
  0x6b   :  { %2784 = shalt.err (!%p2781_p6)  }
  0x6c   :  { %s2785_s19 = scalar_lea.vmem %s114_s7, 8192  ;;  %p2790_p8 = scmp.lt.s32.totalorder %s114_s7, %s114_s7 }
  0x6d   :  { %p2786_p7 = scmp.ne.s32.totalorder %s114_s7, %s2785_s19  ;;  %p2791_p9 = scmp.lt.s32.totalorder %s2785_s19, %s2785_s19 }
  0x6f   :  { %p2792_p10 = por %p2791_p9, %p2790_p8 }
  0x71   :  { %p2793_p11 = pnand %p2792_p10, %p2786_p7 }
  0x73   :  { %2796 = shalt.err (!%p2793_p11)  }
  0x74   :  { %116 = dma.hbm_to_vmem [thread:$0]  %s3339_s5, 8192, %s114_s7, [#allocation4 + $0x1]  ;;  %v143_v35 = vlaneseq  ;;  %v2961_v38 = vld [vmem:[#allocation10] sm:$0x3f]  ;;  %v2963_v39 = vld [vmem:[#allocation10 + $0x10] sm:$0x3f] }
  0x75   :  { %v2965_v40 = vld [vmem:[#allocation10 + $0x8] sm:$0x3f]  ;;  %v2967_v41 = vld [vmem:[#allocation10 + $0x18] sm:$0x3f]  ;;  %v2973_v54 = vld [vmem:[#allocation10 + $0x20] sm:$0x3f] }
  0x76   :  { %v2958_v36 = vshrl.u32 %v143_v35, 7  ;;  %v2975_v55 = vld [vmem:[#allocation10 + $0x30] sm:$0x3f]  ;;  %v2979_v60 = vld [vmem:[#allocation10 + $0x28] sm:$0x3f] }
  0x77   :  { %v2985_v0 = vld [vmem:[#allocation10 + $0x38] sm:$0x3f] }
  0x78   :  { %v145_v37 = vsub.s32 0, %v2958_v36 }
  0x7a   :  { %v146_v42 = vrot.slane %v2961_v38, %v145_v37  ;;  %v154_v43 = vrot.slane %v2963_v39, %v145_v37  ;;  %v150_v44 = vrot.slane %v2965_v40, %v145_v37  ;;  %v158_v45 = vrot.slane %v2967_v41, %v145_v37 }
  0x7b   :  { %v162_v3 = vrot.slane %v2973_v54, %v145_v37  ;;  %v170_v6 = vrot.slane %v2975_v55, %v145_v37  ;;  %v166_v7 = vrot.slane %v2979_v60, %v145_v37  ;;  %v174_v10 = vrot.slane %v2985_v0, %v145_v37 }
 0x135   :  { %v293_v46 = vpop.f32.mrb[0].mxu0  ;;  %v334_v48 = vpop.f32.mrb[0].mxu1 }
 0x136   :  { %v294_v47 = vadd.f32 %v293_v46, %v146_v42  ;;  %v295_v49 = vpop.f32.mrb[1].mxu0  ;;  %v335_v50 = vadd.f32 %v334_v48, %v154_v43  ;;  %v336_v52 = vpop.f32.mrb[1].mxu1 }
 0x137   :  { %v296_v51 = vadd.f32 %v295_v49, %v150_v44  ;;  %v297_v53 = vpop.f32.mrb[2].mxu0  ;;  %v337_v57 = vadd.f32 %v336_v52, %v158_v45  ;;  %v338_v58 = vpop.f32.mrb[2].mxu1 }
 0x138   :  { %v2977_v56 = vmax.f32 %v294_v47, 0.0  ;;  %v298_v59 = vpop.f32.mrb[3].mxu0  ;;  %v2981_v61 = vmax.f32 %v335_v50, 0.0  ;;  %v339_v63 = vpop.f32.mrb[3].mxu1 }
 0x139   :  { %v2983_v62 = vmax.f32 %v296_v51, 0.0  ;;  %v2988_v2 = vmax.f32 %v337_v57, 0.0 }
 0x13a   :  { %v431_v1 = vrot.slane %v2977_v56, 4  ;;  %v443_v4 = vrot.slane %v2981_v61, 4 }
 0x13b   :  { %v437_v5 = vrot.slane %v2983_v62, 4  ;;  %v449_v9 = vrot.slane %v2988_v2, 4 }
 0x13c   :  { %v432_v8 = vadd.f32 %v431_v1, %v2977_v56  ;;  %v444_v11 = vadd.f32 %v443_v4, %v2981_v61 }
 0x13d   :  { %v438_v12 = vadd.f32 %v437_v5, %v2983_v62  ;;  %v375_v13 = vpop.f32.mrb[4].mxu0  ;;  %v450_v15 = vadd.f32 %v449_v9, %v2988_v2  ;;  %v416_v17 = vpop.f32.mrb[4].mxu1 }
 0x13e   :  { %v433_v14 = vrot.slane %v432_v8, 2  ;;  %v376_v16 = vadd.f32 %v375_v13, %v162_v3  ;;  %v377_v18 = vpop.f32.mrb[5].mxu0  ;;  %v445_v19 = vrot.slane %v444_v11, 2  ;;  %v417_v21 = vadd.f32 %v416_v17, %v170_v6  ;;  %v418_v23 = vpop.f32.mrb[5].mxu1 }
 0x13f   :  { %v439_v20 = vrot.slane %v438_v12, 2  ;;  %v378_v22 = vadd.f32 %v377_v18, %v166_v7  ;;  %v379_v24 = vpop.f32.mrb[6].mxu0  ;;  %v451_v26 = vrot.slane %v450_v15, 2  ;;  %v419_v28 = vadd.f32 %v418_v23, %v174_v10  ;;  %v420_v29 = vpop.f32.mrb[6].mxu1 }
 0x140   :  { %v434_v25 = vadd.f32 %v433_v14, %v432_v8  ;;  %v3001_v27 = vmax.f32 %v376_v16, 0.0  ;;  %v380_v30 = vpop.f32.mrb[7].mxu0  ;;  %v446_v31 = vadd.f32 %v445_v19, %v444_v11  ;;  %v3003_v33 = vmax.f32 %v417_v21, 0.0  ;;  %v421_v35 = vpop.f32.mrb[7].mxu1 }
 0x141   :  { %v440_v32 = vadd.f32 %v439_v20, %v438_v12  ;;  %v3005_v34 = vmax.f32 %v378_v22, 0.0  ;;  %v452_v42 = vadd.f32 %v451_v26, %v450_v15  ;;  %v3008_v44 = vmax.f32 %v419_v28, 0.0 }
 0x142   :  { %v435_v37 = vrot.slane %v434_v25, 1  ;;  %v455_v43 = vrot.slane %v3001_v27, 4  ;;  %v447_v45 = vrot.slane %v446_v31, 1  ;;  %v467_v47 = vrot.slane %v3003_v33, 4 }
 0x143   :  { %v441_v46 = vrot.slane %v440_v32, 1  ;;  %v461_v48 = vrot.slane %v3005_v34, 4  ;;  %v453_v50 = vrot.slane %v452_v42, 1  ;;  %v473_v52 = vrot.slane %v3008_v44, 4 }
 0x144   :  { %v436_v49 = vadd.f32 %v435_v37, %v434_v25  ;;  %v456_v51 = vadd.f32 %v455_v43, %v3001_v27  ;;  %v448_v53 = vadd.f32 %v447_v45, %v446_v31  ;;  %v468_v58 = vadd.f32 %v467_v47, %v3003_v33 }
 0x145   :  { %v442_v57 = vadd.f32 %v441_v46, %v440_v32  ;;  %v462_v59 = vadd.f32 %v461_v48, %v3005_v34  ;;  %v454_v1 = vadd.f32 %v453_v50, %v452_v42  ;;  %v474_v4 = vadd.f32 %v473_v52, %v3008_v44 }
 0x146   :  { %v3016_v63 = vmul.f32 0.125, %v436_v49  ;;  %v457_v3 = vrot.slane %v456_v51, 2  ;;  %v3019_v5 = vmul.f32 0.125, %v448_v53  ;;  %v469_v7 = vrot.slane %v468_v58, 2 }
 0x147   :  { %v3021_v6 = vmul.f32 0.125, %v442_v57  ;;  %v463_v8 = vrot.slane %v462_v59, 2  ;;  %v3025_v10 = vmul.f32 0.125, %v454_v1  ;;  %v475_v12 = vrot.slane %v474_v4, 2 }
 0x148   :  { %v487_v9 = vsub.f32 %v2977_v56, %v3016_v63  ;;  %v458_v11 = vadd.f32 %v457_v3, %v456_v51  ;;  %v489_v13 = vsub.f32 %v2981_v61, %v3019_v5  ;;  %v470_v15 = vadd.f32 %v469_v7, %v468_v58 }
 0x149   :  { %v488_v14 = vsub.f32 %v2983_v62, %v3021_v6  ;;  %v464_v16 = vadd.f32 %v463_v8, %v462_v59  ;;  %v490_v18 = vsub.f32 %v2988_v2, %v3025_v10  ;;  %v476_v20 = vadd.f32 %v475_v12, %v474_v4 }
 0x14a   :  { %v495_v17 = vmul.f32 %v487_v9, %v487_v9  ;;  %v459_v19 = vrot.slane %v458_v11, 1  ;;  %v497_v21 = vmul.f32 %v489_v13, %v489_v13  ;;  %v471_v23 = vrot.slane %v470_v15, 1 }
 0x14b   :  { %v496_v22 = vmul.f32 %v488_v14, %v488_v14  ;;  %v465_v24 = vrot.slane %v464_v16, 1  ;;  %v498_v26 = vmul.f32 %v490_v18, %v490_v18  ;;  %v477_v29 = vrot.slane %v476_v20, 1 }
 0x14c   :  { %v503_v25 = vrot.slane %v495_v17, 4  ;;  %v460_v28 = vadd.f32 %v459_v19, %v458_v11  ;;  %v515_v30 = vrot.slane %v497_v21, 4  ;;  %v472_v32 = vadd.f32 %v471_v23, %v470_v15 }
 0x14d   :  { %v509_v31 = vrot.slane %v496_v22, 4  ;;  %v466_v35 = vadd.f32 %v465_v24, %v464_v16  ;;  %v521_v42 = vrot.slane %v498_v26, 4  ;;  %v478_v45 = vadd.f32 %v477_v29, %v476_v20 }
 0x14e   :  { %v504_v37 = vadd.f32 %v503_v25, %v495_v17  ;;  %v3033_v43 = vmul.f32 0.125, %v460_v28  ;;  %v516_v46 = vadd.f32 %v515_v30, %v497_v21  ;;  %v3035_v48 = vmul.f32 0.125, %v472_v32 }
 0x14f   :  { %v510_v47 = vadd.f32 %v509_v31, %v496_v22  ;;  %v3037_v49 = vmul.f32 0.125, %v466_v35  ;;  %v522_v51 = vadd.f32 %v521_v42, %v498_v26  ;;  %v3041_v53 = vmul.f32 0.125, %v478_v45 }
 0x150   :  { %v505_v50 = vrot.slane %v504_v37, 2  ;;  %v491_v52 = vsub.f32 %v3001_v27, %v3033_v43  ;;  %v517_v57 = vrot.slane %v516_v46, 2  ;;  %v493_v59 = vsub.f32 %v3003_v33, %v3035_v48 }
 0x151   :  { %v511_v58 = vrot.slane %v510_v47, 2  ;;  %v492_v1 = vsub.f32 %v3005_v34, %v3037_v49  ;;  %v523_v4 = vrot.slane %v522_v51, 2  ;;  %v494_v8 = vsub.f32 %v3008_v44, %v3041_v53 }
 0x152   :  { %v506_v3 = vadd.f32 %v505_v50, %v504_v37  ;;  %v499_v7 = vmul.f32 %v491_v52, %v491_v52  ;;  %v518_v9 = vadd.f32 %v517_v57, %v516_v46  ;;  %v501_v12 = vmul.f32 %v493_v59, %v493_v59 }
 0x153   :  { %v512_v11 = vadd.f32 %v511_v58, %v510_v47  ;;  %v500_v13 = vmul.f32 %v492_v1, %v492_v1  ;;  %v524_v15 = vadd.f32 %v523_v4, %v522_v51  ;;  %v502_v17 = vmul.f32 %v494_v8, %v494_v8 }
 0x154   :  { %v507_v14 = vrot.slane %v506_v3, 1  ;;  %v527_v16 = vrot.slane %v499_v7, 4  ;;  %v519_v18 = vrot.slane %v518_v9, 1  ;;  %v539_v20 = vrot.slane %v501_v12, 4 }
 0x155   :  { %v513_v19 = vrot.slane %v512_v11, 1  ;;  %v533_v21 = vrot.slane %v500_v13, 4  ;;  %v525_v23 = vrot.slane %v524_v15, 1  ;;  %v545_v25 = vrot.slane %v502_v17, 4 }
 0x156   :  { %v508_v22 = vadd.f32 %v507_v14, %v506_v3  ;;  %v528_v24 = vadd.f32 %v527_v16, %v499_v7  ;;  %v520_v26 = vadd.f32 %v519_v18, %v518_v9  ;;  %v540_v29 = vadd.f32 %v539_v20, %v501_v12 }
 0x157   :  { %v514_v28 = vadd.f32 %v513_v19, %v512_v11  ;;  %v534_v30 = vadd.f32 %v533_v21, %v500_v13  ;;  %v526_v32 = vadd.f32 %v525_v23, %v524_v15  ;;  %v546_v37 = vadd.f32 %v545_v25, %v502_v17 }
 0x158   :  { %v551_v31 = vmul.f32 0.125, %v508_v22  ;;  %v529_v35 = vrot.slane %v528_v24, 2  ;;  %v553_v42 = vmul.f32 0.125, %v520_v26  ;;  %v541_v46 = vrot.slane %v540_v29, 2 }
 0x159   :  { %v552_v45 = vmul.f32 0.125, %v514_v28  ;;  %v535_v47 = vrot.slane %v534_v30, 2  ;;  %v554_v51 = vmul.f32 0.125, %v526_v32  ;;  %v547_v57 = vrot.slane %v546_v37, 2 }
 0x15a   :  { %v559_v50 = vadd.f32 1e-05, %v551_v31  ;;  %v530_v52 = vadd.f32 %v529_v35, %v528_v24  ;;  %v561_v58 = vadd.f32 1e-05, %v553_v42  ;;  %v542_v1 = vadd.f32 %v541_v46, %v540_v29 }
 0x15b   :  { %v560_v59 = vadd.f32 1e-05, %v552_v45  ;;  %v536_v3 = vadd.f32 %v535_v47, %v534_v30  ;;  %v562_v4 = vadd.f32 1e-05, %v554_v51  ;;  %v548_v8 = vadd.f32 %v547_v57, %v546_v37 }
 0x15c   :  { %2655 = vrsqrt.f32 %v559_v50  ;;  %v531_v7 = vrot.slane %v530_v52, 1  ;;  %v543_v9 = vrot.slane %v542_v1, 1  ;;  %v3051_v29 = vsub.s32 1, %v2958_v36 }
 0x15d   :  { %2657 = vrsqrt.f32 %v561_v58  ;;  %v537_v11 = vrot.slane %v536_v3, 1  ;;  %v549_v13 = vrot.slane %v548_v8, 1  ;;  %v665_v50 = vsub.s32 2, %v2958_v36 }
 0x15e   :  { %2659 = vrsqrt.f32 %v560_v59  ;;  %v532_v12 = vadd.f32 %v531_v7, %v530_v52  ;;  %v544_v14 = vadd.f32 %v543_v9, %v542_v1 }
 0x15f   :  { %2661 = vrsqrt.f32 %v562_v4  ;;  %v538_v15 = vadd.f32 %v537_v11, %v536_v3  ;;  %v550_v17 = vadd.f32 %v549_v13, %v548_v8 }
 0x160   :  { %v555_v16 = vmul.f32 0.125, %v532_v12  ;;  %v557_v18 = vmul.f32 0.125, %v544_v14 }
 0x161   :  { %v556_v19 = vmul.f32 0.125, %v538_v15  ;;  %v558_v21 = vmul.f32 0.125, %v550_v17 }
 0x162   :  { %v563_v20 = vadd.f32 1e-05, %v555_v16  ;;  %v565_v22 = vadd.f32 1e-05, %v557_v18 }
 0x163   :  { %v564_v23 = vadd.f32 1e-05, %v556_v19  ;;  %v566_v24 = vadd.f32 1e-05, %v558_v21 }
 0x164   :  { %2663 = vrsqrt.f32 %v563_v20 }
 0x165   :  { %2665 = vrsqrt.f32 %v565_v22 }
 0x166   :  { %v2656_v25 = vpop.eup %2655  ;;  %2667 = vrsqrt.f32 %v564_v23 }
 0x167   :  { %v2658_v26 = vpop.eup %2657  ;;  %v575_v28 = vmul.f32 %v2656_v25, %v2961_v38  ;;  %2669 = vrsqrt.f32 %v566_v24 }
 0x168   :  { %v2660_v30 = vpop.eup %2659  ;;  %v577_v31 = vmul.f32 %v2658_v26, %v2963_v39 }
 0x169   :  { %v2662_v32 = vpop.eup %2661  ;;  %v583_v35 = vmul.f32 %v575_v28, %v3016_v63  ;;  %v576_v37 = vmul.f32 %v2660_v30, %v2965_v40  ;;  %v626_v47 = vrot.slane %v575_v28, %v3051_v29 }
 0x16a   :  { %v585_v42 = vmul.f32 %v577_v31, %v3019_v5  ;;  %v578_v45 = vmul.f32 %v2662_v32, %v2967_v41  ;;  %v634_v57 = vrot.slane %v577_v31, %v3051_v29 }
 0x16b   :  { %v599_v46 = vrot.slane %v583_v35, 7  ;;  %v584_v51 = vmul.f32 %v576_v37, %v3021_v6  ;;  %v630_v1 = vrot.slane %v576_v37, %v3051_v29  ;;  %v655_v9 = vmul.f32 %v626_v47, %v2977_v56 }
 0x16c   :  { %v601_v52 = vrot.slane %v585_v42, 7  ;;  %v586_v58 = vmul.f32 %v578_v45, %v3025_v10  ;;  %v638_v7 = vrot.slane %v578_v45, %v3051_v29  ;;  %v657_v13 = vmul.f32 %v634_v57, %v2981_v61 }
 0x16d   :  { %v615_v63 = vsub.f32 %v2961_v38, %v599_v46  ;;  %v600_v59 = vrot.slane %v584_v51, 7  ;;  %v656_v19 = vmul.f32 %v630_v1, %v2983_v62 }
 0x16e   :  { %v2664_v5 = vpop.eup %2663  ;;  %v617_v3 = vsub.f32 %v2963_v39, %v601_v52  ;;  %v602_v4 = vrot.slane %v586_v58, 7  ;;  %v658_v22 = vmul.f32 %v638_v7, %v2988_v2 }
 0x16f   :  { %v2666_v8 = vpop.eup %2665  ;;  %v666_v6 = vrot.slane %v615_v63, %v665_v50  ;;  %v616_v11 = vsub.f32 %v2965_v40, %v600_v59  ;;  %v579_v12 = vmul.f32 %v2664_v5, %v2973_v54 }
 0x170   :  { %v2668_v10 = vpop.eup %2667  ;;  %v674_v14 = vrot.slane %v617_v3, %v665_v50  ;;  %v618_v15 = vsub.f32 %v2967_v41, %v602_v4  ;;  %v581_v16 = vmul.f32 %v2666_v8, %v2975_v55 }
 0x171   :  { %v2670_v17 = vpop.eup %2669  ;;  %v3073_v18 = vadd.f32 %v666_v6, %v655_v9  ;;  %v670_v20 = vrot.slane %v616_v11, %v665_v50  ;;  %v587_v56 = vmul.f32 %v579_v12, %v3033_v43  ;;  %v642_v26 = vrot.slane %v579_v12, %v3051_v29 }
 0x172   :  { %v3077_v21 = vadd.f32 %v674_v14, %v657_v13  ;;  %v678_v23 = vrot.slane %v618_v15, %v665_v50  ;;  %v589_v61 = vmul.f32 %v581_v16, %v3035_v48  ;;  %v580_v28 = vmul.f32 %v2668_v10, %v2979_v60 }
 0x173   :  { %v696_v24 = vadd.f32 %v670_v20, %v656_v19  ;;  %v603_v25 = vrot.slane %v587_v56, 7  ;;  %v650_v62 = vrot.slane %v581_v16, %v3051_v29  ;;  %v582_v43 = vmul.f32 %v2670_v17, %v2985_v0 }
 0x174   :  { %v3083_v30 = vadd.f32 %v678_v23, %v658_v22  ;;  %v605_v31 = vrot.slane %v589_v61, 7  ;;  %v588_v2 = vmul.f32 %v580_v28, %v3037_v49  ;;  %v659_v37 = vmul.f32 %v642_v26, %v3001_v27 }
 0x175   :  { %v619_v32 = vsub.f32 %v2973_v54, %v603_v25  ;;  %v590_v48 = vmul.f32 %v582_v43, %v3041_v53  ;;  %v646_v46 = vrot.slane %v580_v28, %v3051_v29  ;;  %v661_v47 = vmul.f32 %v650_v62, %v3003_v33 }
 0x176   :  { %v621_v35 = vsub.f32 %v2975_v55, %v605_v31  ;;  %v604_v45 = vrot.slane %v588_v2, 7  ;;  %v654_v57 = vrot.slane %v582_v43, %v3051_v29 }
 0x177   :  { %v682_v42 = vrot.slane %v619_v32, %v665_v50  ;;  %v606_v52 = vrot.slane %v590_v48, 7  ;;  %v660_v27 = vmul.f32 %v646_v46, %v3005_v34 }
 0x178   :  { %v690_v51 = vrot.slane %v621_v35, %v665_v50  ;;  %v620_v49 = vsub.f32 %v2979_v60, %v604_v45  ;;  %v662_v1 = vmul.f32 %v654_v57, %v3008_v44 }
 0x179   :  { %v3095_v58 = vadd.f32 %v682_v42, %v659_v37  ;;  %v622_v53 = vsub.f32 %v2985_v0, %v606_v52 }
 0x17a   :  { %v3098_v63 = vadd.f32 %v690_v51, %v661_v47  ;;  %v686_v59 = vrot.slane %v620_v49, %v665_v50 }
 0x17b   :  { %v694_v5 = vrot.slane %v622_v53, %v665_v50 }
 0x17c   :  { %v3103_v3 = vadd.f32 %v686_v59, %v660_v27 }
 0x17d   :  { %v3105_v33 = vadd.f32 %v694_v5, %v662_v1 }
 0x17e   :  { %2825 = dma.done.wait [#allocation4], 65536 }
 0x17f   :  { %2826 = vsyncadd [#allocation4], 4294901760  ;;  %v3107_v29 = vpack.c.bf16 %v696_v24, %v696_v24  ;;  %v716_v4 = vld [vmem:[#allocation2 + $0x8] sm:$0xff]  ;;  %v718_v7 = vld [vmem:[#allocation2 + $0x18] sm:$0xff] }
 0x180   :  { %v715_v8 = vld [vmem:[#allocation2] sm:$0xff]  ;;  %1259 = vmatprep.subr.bf16.mxu0 %v716_v4  ;;  %1423 = vmatprep.subr.bf16.mxu1 %v718_v7  ;;  %v717_v34 = vld [vmem:[#allocation2 + $0x10] sm:$0xff]  ;;  %v724_v44 = vld [vmem:[#allocation2 + $0x48] sm:$0xff] }
 0x181   :  { %1291 = vmatprep.mubr.bf16.mxu0 %v3107_v29  ;;  %1455 = vmatprep.mubr.bf16.mxu1 %v3107_v29  ;;  %v726_v50 = vld [vmem:[#allocation2 + $0x58] sm:$0xff]  ;;  %v723_v9 = vld [vmem:[#allocation2 + $0x40] sm:$0xff]  ;;  %v725_v6 = vld [vmem:[#allocation2 + $0x50] sm:$0xff] }
 0x182   :  { %1260 = vmatpush1.bf16.msra.mxu0 %v715_v8  ;;  %1424 = vmatpush1.bf16.msra.mxu1 %v717_v34  ;;  %v732_v11 = vld [vmem:[#allocation2 + $0x88] sm:$0xff]  ;;  %v734_v12 = vld [vmem:[#allocation2 + $0x98] sm:$0xff]  ;;  %v731_v10 = vld [vmem:[#allocation2 + $0x80] sm:$0xff] }
 0x183   :  { %1261 = vmatprep.subr.bf16.mxu0 %v724_v44  ;;  %1425 = vmatprep.subr.bf16.mxu1 %v726_v50  ;;  %v733_v13 = vld [vmem:[#allocation2 + $0x90] sm:$0xff]  ;;  %v740_v14 = vld [vmem:[#allocation2 + $0xc8] sm:$0xff]  ;;  %v742_v15 = vld [vmem:[#allocation2 + $0xd8] sm:$0xff] }
 0x184   :  { %v739_v16 = vld [vmem:[#allocation2 + $0xc0] sm:$0xff]  ;;  %v741_v17 = vld [vmem:[#allocation2 + $0xd0] sm:$0xff]  ;;  %v748_v19 = vld [vmem:[#allocation2 + $0x108] sm:$0xff] }
 0x185   :  { %v750_v20 = vld [vmem:[#allocation2 + $0x118] sm:$0xff]  ;;  %v747_v56 = vld [vmem:[#allocation2 + $0x100] sm:$0xff]  ;;  %v749_v22 = vld [vmem:[#allocation2 + $0x110] sm:$0xff] }
 0x186   :  { %1262 = vmatpush1.bf16.msra.mxu0 %v723_v9  ;;  %1426 = vmatpush1.bf16.msra.mxu1 %v725_v6  ;;  %v756_v23 = vld [vmem:[#allocation2 + $0x148] sm:$0xff]  ;;  %v758_v61 = vld [vmem:[#allocation2 + $0x158] sm:$0xff]  ;;  %v755_v24 = vld [vmem:[#allocation2 + $0x140] sm:$0xff] }
 0x187   :  { %1263 = vmatprep.subr.bf16.mxu0 %v732_v11  ;;  %1427 = vmatprep.subr.bf16.mxu1 %v734_v12  ;;  %v757_v25 = vld [vmem:[#allocation2 + $0x150] sm:$0xff]  ;;  %v764_v26 = vld [vmem:[#allocation2 + $0x188] sm:$0xff]  ;;  %v766_v28 = vld [vmem:[#allocation2 + $0x198] sm:$0xff] }
 0x188   :  { %v763_v31 = vld [vmem:[#allocation2 + $0x180] sm:$0xff]  ;;  %v765_v62 = vld [vmem:[#allocation2 + $0x190] sm:$0xff]  ;;  %v772_v43 = vld [vmem:[#allocation2 + $0x1c8] sm:$0xff] }
 0x189   :  { %v774_v32 = vld [vmem:[#allocation2 + $0x1d8] sm:$0xff]  ;;  %v771_v2 = vld [vmem:[#allocation2 + $0x1c0] sm:$0xff]  ;;  %v773_v35 = vld [vmem:[#allocation2 + $0x1d0] sm:$0xff] }
 0x18a   :  { %1264 = vmatpush1.bf16.msra.mxu0 %v731_v10  ;;  %1428 = vmatpush1.bf16.msra.mxu1 %v733_v13  ;;  %v780_v48 = vld [vmem:[#allocation2 + $0x208] sm:$0xff]  ;;  %v782_v37 = vld [vmem:[#allocation2 + $0x218] sm:$0xff]  ;;  %v779_v42 = vld [vmem:[#allocation2 + $0x200] sm:$0xff] }
 0x18b   :  { %1265 = vmatprep.subr.bf16.mxu0 %v740_v14  ;;  %1429 = vmatprep.subr.bf16.mxu1 %v742_v15  ;;  %v781_v45 = vld [vmem:[#allocation2 + $0x210] sm:$0xff]  ;;  %v788_v46 = vld [vmem:[#allocation2 + $0x248] sm:$0xff]  ;;  %v790_v47 = vld [vmem:[#allocation2 + $0x258] sm:$0xff] }
 0x18c   :  { %v787_v51 = vld [vmem:[#allocation2 + $0x240] sm:$0xff]  ;;  %v789_v52 = vld [vmem:[#allocation2 + $0x250] sm:$0xff]  ;;  %v796_v57 = vld [vmem:[#allocation2 + $0x288] sm:$0xff] }
 0x18d   :  { %v798_v49 = vld [vmem:[#allocation2 + $0x298] sm:$0xff]  ;;  %v795_v53 = vld [vmem:[#allocation2 + $0x280] sm:$0xff]  ;;  %v797_v27 = vld [vmem:[#allocation2 + $0x290] sm:$0xff] }
 0x18e   :  { %1266 = vmatpush1.bf16.msra.mxu0 %v739_v16  ;;  %1430 = vmatpush1.bf16.msra.mxu1 %v741_v17  ;;  %v804_v59 = vld [vmem:[#allocation2 + $0x2c8] sm:$0xff]  ;;  %v806_v1 = vld [vmem:[#allocation2 + $0x2d8] sm:$0xff]  ;;  %v803_v5 = vld [vmem:[#allocation2 + $0x2c0] sm:$0xff] }
 0x18f   :  { %1267 = vmatprep.subr.bf16.mxu0 %v748_v19  ;;  %1431 = vmatprep.subr.bf16.mxu1 %v750_v20  ;;  %v805_v4 = vld [vmem:[#allocation2 + $0x2d0] sm:$0xff]  ;;  %v812_v7 = vld [vmem:[#allocation2 + $0x308] sm:$0xff]  ;;  %v814_v8 = vld [vmem:[#allocation2 + $0x318] sm:$0xff] }
 0x190   :  { %v811_v34 = vld [vmem:[#allocation2 + $0x300] sm:$0xff]  ;;  %v813_v44 = vld [vmem:[#allocation2 + $0x310] sm:$0xff]  ;;  %v820_v50 = vld [vmem:[#allocation2 + $0x348] sm:$0xff] }
 0x191   :  { %v822_v9 = vld [vmem:[#allocation2 + $0x358] sm:$0xff]  ;;  %v819_v6 = vld [vmem:[#allocation2 + $0x340] sm:$0xff]  ;;  %v821_v11 = vld [vmem:[#allocation2 + $0x350] sm:$0xff] }
 0x192   :  { %1268 = vmatpush1.bf16.msra.mxu0 %v747_v56  ;;  %1432 = vmatpush1.bf16.msra.mxu1 %v749_v22  ;;  %v828_v12 = vld [vmem:[#allocation2 + $0x388] sm:$0xff]  ;;  %v830_v10 = vld [vmem:[#allocation2 + $0x398] sm:$0xff]  ;;  %v827_v13 = vld [vmem:[#allocation2 + $0x380] sm:$0xff]  ;;  %v3113_v22 = vpack.c.bf16 %v3073_v18, %v3073_v18 }
 0x193   :  { %1269 = vmatprep.subr.bf16.mxu0 %v756_v23  ;;  %1433 = vmatprep.subr.bf16.mxu1 %v758_v61  ;;  %v829_v14 = vld [vmem:[#allocation2 + $0x390] sm:$0xff]  ;;  %v836_v15 = vld [vmem:[#allocation2 + $0x3c8] sm:$0xff]  ;;  %v838_v16 = vld [vmem:[#allocation2 + $0x3d8] sm:$0xff] }
 0x194   :  { %v835_v17 = vld [vmem:[#allocation2 + $0x3c0] sm:$0xff]  ;;  %v837_v19 = vld [vmem:[#allocation2 + $0x3d0] sm:$0xff]  ;;  %v844_v20 = vld [vmem:[#allocation2 + $0x408] sm:$0xff] }
 0x195   :  { %v846_v56 = vld [vmem:[#allocation2 + $0x418] sm:$0xff]  ;;  %v843_v23 = vld [vmem:[#allocation2 + $0x400] sm:$0xff]  ;;  %v845_v61 = vld [vmem:[#allocation2 + $0x410] sm:$0xff] }
 0x196   :  { %1270 = vmatpush1.bf16.msra.mxu0 %v755_v24  ;;  %1434 = vmatpush1.bf16.msra.mxu1 %v757_v25  ;;  %v852_v24 = vld [vmem:[#allocation2 + $0x448] sm:$0xff]  ;;  %v854_v25 = vld [vmem:[#allocation2 + $0x458] sm:$0xff]  ;;  %v851_v18 = vld [vmem:[#allocation2 + $0x440] sm:$0xff] }
 0x197   :  { %1271 = vmatprep.subr.bf16.mxu0 %v764_v26  ;;  %1435 = vmatprep.subr.bf16.mxu1 %v766_v28  ;;  %v3117_v26 = vpack.c.bf16 %v3083_v30, %v3083_v30  ;;  %v853_v28 = vld [vmem:[#allocation2 + $0x450] sm:$0xff]  ;;  %v859_v30 = vld [vmem:[#allocation2 + $0x480] sm:$0xff] }
 0x19a   :  { %1272 = vmatpush1.bf16.msra.mxu0 %v763_v31  ;;  %1436 = vmatpush1.bf16.msra.mxu1 %v765_v62  ;;  %v860_v31 = vld [vmem:[#allocation2 + $0x488] sm:$0xff]  ;;  %v862_v62 = vld [vmem:[#allocation2 + $0x498] sm:$0xff] }
 0x19b   :  { %1273 = vmatprep.subr.bf16.mxu0 %v772_v43  ;;  %1437 = vmatprep.subr.bf16.mxu1 %v774_v32  ;;  %v861_v43 = vld [vmem:[#allocation2 + $0x490] sm:$0xff]  ;;  %v868_v32 = vld [vmem:[#allocation2 + $0x4c8] sm:$0xff] }
 0x19e   :  { %1274 = vmatpush1.bf16.msra.mxu0 %v771_v2  ;;  %1438 = vmatpush1.bf16.msra.mxu1 %v773_v35  ;;  %v870_v2 = vld [vmem:[#allocation2 + $0x4d8] sm:$0xff]  ;;  %v867_v35 = vld [vmem:[#allocation2 + $0x4c0] sm:$0xff] }
 0x19f   :  { %1275 = vmatprep.subr.bf16.mxu0 %v780_v48  ;;  %1439 = vmatprep.subr.bf16.mxu1 %v782_v37  ;;  %v869_v48 = vld [vmem:[#allocation2 + $0x4d0] sm:$0xff]  ;;  %v876_v37 = vld [vmem:[#allocation2 + $0x508] sm:$0xff] }
 0x1a2   :  { %1276 = vmatpush1.bf16.msra.mxu0 %v779_v42  ;;  %1440 = vmatpush1.bf16.msra.mxu1 %v781_v45  ;;  %v878_v42 = vld [vmem:[#allocation2 + $0x518] sm:$0xff]  ;;  %v875_v45 = vld [vmem:[#allocation2 + $0x500] sm:$0xff] }
 0x1a3   :  { %1277 = vmatprep.subr.bf16.mxu0 %v788_v46  ;;  %1441 = vmatprep.subr.bf16.mxu1 %v790_v47  ;;  %v877_v46 = vld [vmem:[#allocation2 + $0x510] sm:$0xff]  ;;  %v884_v47 = vld [vmem:[#allocation2 + $0x548] sm:$0xff] }
 0x1a6   :  { %1278 = vmatpush1.bf16.msra.mxu0 %v787_v51  ;;  %1442 = vmatpush1.bf16.msra.mxu1 %v789_v52  ;;  %v886_v51 = vld [vmem:[#allocation2 + $0x558] sm:$0xff]  ;;  %v883_v52 = vld [vmem:[#allocation2 + $0x540] sm:$0xff] }
 0x1a7   :  { %1279 = vmatprep.subr.bf16.mxu0 %v796_v57  ;;  %1443 = vmatprep.subr.bf16.mxu1 %v798_v49  ;;  %v885_v57 = vld [vmem:[#allocation2 + $0x550] sm:$0xff]  ;;  %v892_v49 = vld [vmem:[#allocation2 + $0x588] sm:$0xff] }
 0x1aa   :  { %1280 = vmatpush1.bf16.msra.mxu0 %v795_v53  ;;  %1444 = vmatpush1.bf16.msra.mxu1 %v797_v27  ;;  %v894_v53 = vld [vmem:[#allocation2 + $0x598] sm:$0xff]  ;;  %v891_v27 = vld [vmem:[#allocation2 + $0x580] sm:$0xff] }
 0x1ab   :  { %1281 = vmatprep.subr.bf16.mxu0 %v804_v59  ;;  %1445 = vmatprep.subr.bf16.mxu1 %v806_v1  ;;  %v893_v59 = vld [vmem:[#allocation2 + $0x590] sm:$0xff]  ;;  %v900_v1 = vld [vmem:[#allocation2 + $0x5c8] sm:$0xff] }
 0x1ae   :  { %1282 = vmatpush1.bf16.msra.mxu0 %v803_v5  ;;  %1446 = vmatpush1.bf16.msra.mxu1 %v805_v4  ;;  %v902_v5 = vld [vmem:[#allocation2 + $0x5d8] sm:$0xff]  ;;  %v899_v4 = vld [vmem:[#allocation2 + $0x5c0] sm:$0xff] }
 0x1af   :  { %1283 = vmatprep.subr.bf16.mxu0 %v812_v7  ;;  %1447 = vmatprep.subr.bf16.mxu1 %v814_v8  ;;  %v901_v7 = vld [vmem:[#allocation2 + $0x5d0] sm:$0xff]  ;;  %v908_v8 = vld [vmem:[#allocation2 + $0x608] sm:$0xff] }
 0x1b2   :  { %1284 = vmatpush1.bf16.msra.mxu0 %v811_v34  ;;  %1448 = vmatpush1.bf16.msra.mxu1 %v813_v44  ;;  %v910_v34 = vld [vmem:[#allocation2 + $0x618] sm:$0xff]  ;;  %v907_v44 = vld [vmem:[#allocation2 + $0x600] sm:$0xff] }
 0x1b3   :  { %1285 = vmatprep.subr.bf16.mxu0 %v820_v50  ;;  %1449 = vmatprep.subr.bf16.mxu1 %v822_v9  ;;  %v909_v50 = vld [vmem:[#allocation2 + $0x610] sm:$0xff]  ;;  %v916_v9 = vld [vmem:[#allocation2 + $0x648] sm:$0xff] }
 0x1b6   :  { %1286 = vmatpush1.bf16.msra.mxu0 %v819_v6  ;;  %1450 = vmatpush1.bf16.msra.mxu1 %v821_v11  ;;  %v918_v6 = vld [vmem:[#allocation2 + $0x658] sm:$0xff]  ;;  %v915_v11 = vld [vmem:[#allocation2 + $0x640] sm:$0xff] }
 0x1b7   :  { %1287 = vmatprep.subr.bf16.mxu0 %v828_v12  ;;  %1451 = vmatprep.subr.bf16.mxu1 %v830_v10  ;;  %v917_v12 = vld [vmem:[#allocation2 + $0x650] sm:$0xff]  ;;  %v924_v10 = vld [vmem:[#allocation2 + $0x688] sm:$0xff] }
 0x1ba   :  { %1288 = vmatpush1.bf16.msra.mxu0 %v827_v13  ;;  %1452 = vmatpush1.bf16.msra.mxu1 %v829_v14  ;;  %v926_v13 = vld [vmem:[#allocation2 + $0x698] sm:$0xff]  ;;  %v923_v14 = vld [vmem:[#allocation2 + $0x680] sm:$0xff] }
 0x1bb   :  { %1289 = vmatprep.subr.bf16.mxu0 %v836_v15  ;;  %1453 = vmatprep.subr.bf16.mxu1 %v838_v16  ;;  %v925_v15 = vld [vmem:[#allocation2 + $0x690] sm:$0xff]  ;;  %v932_v16 = vld [vmem:[#allocation2 + $0x6c8] sm:$0xff] }
 0x1be   :  { %1290 = vmatpush1.bf16.msra.mxu0 %v835_v17  ;;  %1454 = vmatpush1.bf16.msra.mxu1 %v837_v19  ;;  %v934_v17 = vld [vmem:[#allocation2 + $0x6d8] sm:$0xff]  ;;  %v931_v19 = vld [vmem:[#allocation2 + $0x6c0] sm:$0xff] }
 0x1bf   :  { %1300 = vmatprep.subr.bf16.mxu0 %v844_v20  ;;  %1464 = vmatprep.subr.bf16.mxu1 %v846_v56  ;;  %v933_v20 = vld [vmem:[#allocation2 + $0x6d0] sm:$0xff]  ;;  %v940_v56 = vld [vmem:[#allocation2 + $0x708] sm:$0xff] }
 0x1c1   :  { %1292 = vmatmul.mubr.bf16.vlgmr.msra.gmra.mrb[8].mxu0 %v3113_v22  ;;  %1456 = vmatmul.mubr.bf16.vlgmr.msra.gmra.mrb[8].mxu1 %v3113_v22 }
 0x1c2   :  { %1301 = vmatpush1.bf16.msra.mxu0 %v843_v23  ;;  %1465 = vmatpush1.bf16.msra.mxu1 %v845_v61  ;;  %v942_v23 = vld [vmem:[#allocation2 + $0x718] sm:$0xff]  ;;  %v939_v61 = vld [vmem:[#allocation2 + $0x700] sm:$0xff] }
 0x1c3   :  { %1302 = vmatprep.subr.bf16.mxu0 %v852_v24  ;;  %1466 = vmatprep.subr.bf16.mxu1 %v854_v25  ;;  %v941_v24 = vld [vmem:[#allocation2 + $0x710] sm:$0xff]  ;;  %v948_v25 = vld [vmem:[#allocation2 + $0x748] sm:$0xff] }
 0x1c4   :  { %1332 = vmatprep.mubr.bf16.mxu0 %v3117_v26  ;;  %1496 = vmatprep.mubr.bf16.mxu1 %v3117_v26 }
 0x1c6   :  { %1303 = vmatpush1.bf16.msra.mxu0 %v851_v18  ;;  %1467 = vmatpush1.bf16.msra.mxu1 %v853_v28  ;;  %v950_v18 = vld [vmem:[#allocation2 + $0x758] sm:$0xff]  ;;  %v947_v28 = vld [vmem:[#allocation2 + $0x740] sm:$0xff] }
 0x1c7   :  { %1304 = vmatprep.subr.bf16.mxu0 %v860_v31  ;;  %1468 = vmatprep.subr.bf16.mxu1 %v862_v62  ;;  %v949_v31 = vld [vmem:[#allocation2 + $0x750] sm:$0xff]  ;;  %v956_v62 = vld [vmem:[#allocation2 + $0x788] sm:$0xff] }
 0x1ca   :  { %1305 = vmatpush1.bf16.msra.mxu0 %v859_v30  ;;  %1469 = vmatpush1.bf16.msra.mxu1 %v861_v43  ;;  %v958_v30 = vld [vmem:[#allocation2 + $0x798] sm:$0xff]  ;;  %v955_v43 = vld [vmem:[#allocation2 + $0x780] sm:$0xff] }
 0x1cb   :  { %1306 = vmatprep.subr.bf16.mxu0 %v868_v32  ;;  %1470 = vmatprep.subr.bf16.mxu1 %v870_v2  ;;  %v957_v32 = vld [vmem:[#allocation2 + $0x790] sm:$0xff]  ;;  %v964_v2 = vld [vmem:[#allocation2 + $0x7c8] sm:$0xff] }
 0x1ce   :  { %1307 = vmatpush1.bf16.msra.mxu0 %v867_v35  ;;  %1471 = vmatpush1.bf16.msra.mxu1 %v869_v48  ;;  %v966_v35 = vld [vmem:[#allocation2 + $0x7d8] sm:$0xff]  ;;  %v963_v48 = vld [vmem:[#allocation2 + $0x7c0] sm:$0xff] }
 0x1cf   :  { %1308 = vmatprep.subr.bf16.mxu0 %v876_v37  ;;  %1472 = vmatprep.subr.bf16.mxu1 %v878_v42  ;;  %v965_v37 = vld [vmem:[#allocation2 + $0x7d0] sm:$0xff]  ;;  %v972_v42 = vld [vmem:[#allocation2 + $0x808] sm:$0xff] }
 0x1d2   :  { %1309 = vmatpush1.bf16.msra.mxu0 %v875_v45  ;;  %1473 = vmatpush1.bf16.msra.mxu1 %v877_v46  ;;  %v974_v45 = vld [vmem:[#allocation2 + $0x818] sm:$0xff]  ;;  %v3125_v46 = vpack.c.bf16 %v3077_v21, %v3077_v21  ;;  %v979_v21 = vld [vmem:[#allocation2 + $0x840] sm:$0xff] }
 0x1d3   :  { %1310 = vmatprep.subr.bf16.mxu0 %v884_v47  ;;  %1474 = vmatprep.subr.bf16.mxu1 %v886_v51  ;;  %v971_v47 = vld [vmem:[#allocation2 + $0x800] sm:$0xff]  ;;  %v973_v51 = vld [vmem:[#allocation2 + $0x810] sm:$0xff] }
 0x1d6   :  { %1311 = vmatpush1.bf16.msra.mxu0 %v883_v52  ;;  %1475 = vmatpush1.bf16.msra.mxu1 %v885_v57  ;;  %v980_v52 = vld [vmem:[#allocation2 + $0x848] sm:$0xff]  ;;  %v982_v57 = vld [vmem:[#allocation2 + $0x858] sm:$0xff] }
 0x1d7   :  { %1312 = vmatprep.subr.bf16.mxu0 %v892_v49  ;;  %1476 = vmatprep.subr.bf16.mxu1 %v894_v53  ;;  %v3129_v49 = vpack.c.bf16 %v3103_v3, %v3103_v3  ;;  %v981_v53 = vld [vmem:[#allocation2 + $0x850] sm:$0xff]  ;;  %v987_v3 = vld [vmem:[#allocation2 + $0x880] sm:$0xff] }
 0x1da   :  { %1313 = vmatpush1.bf16.msra.mxu0 %v891_v27  ;;  %1477 = vmatpush1.bf16.msra.mxu1 %v893_v59  ;;  %v988_v27 = vld [vmem:[#allocation2 + $0x888] sm:$0xff]  ;;  %v990_v59 = vld [vmem:[#allocation2 + $0x898] sm:$0xff] }
 0x1db   :  { %1314 = vmatprep.subr.bf16.mxu0 %v900_v1  ;;  %1478 = vmatprep.subr.bf16.mxu1 %v902_v5  ;;  %v989_v1 = vld [vmem:[#allocation2 + $0x890] sm:$0xff]  ;;  %v996_v5 = vld [vmem:[#allocation2 + $0x8c8] sm:$0xff] }
 0x1de   :  { %1315 = vmatpush1.bf16.msra.mxu0 %v899_v4  ;;  %1479 = vmatpush1.bf16.msra.mxu1 %v901_v7  ;;  %v998_v4 = vld [vmem:[#allocation2 + $0x8d8] sm:$0xff]  ;;  %v995_v7 = vld [vmem:[#allocation2 + $0x8c0] sm:$0xff] }
 0x1df   :  { %1316 = vmatprep.subr.bf16.mxu0 %v908_v8  ;;  %1480 = vmatprep.subr.bf16.mxu1 %v910_v34  ;;  %v997_v8 = vld [vmem:[#allocation2 + $0x8d0] sm:$0xff]  ;;  %v1004_v34 = vld [vmem:[#allocation2 + $0x908] sm:$0xff] }
 0x1e2   :  { %1317 = vmatpush1.bf16.msra.mxu0 %v907_v44  ;;  %1481 = vmatpush1.bf16.msra.mxu1 %v909_v50  ;;  %v1006_v44 = vld [vmem:[#allocation2 + $0x918] sm:$0xff]  ;;  %v1003_v50 = vld [vmem:[#allocation2 + $0x900] sm:$0xff] }
 0x1e3   :  { %1318 = vmatprep.subr.bf16.mxu0 %v916_v9  ;;  %1482 = vmatprep.subr.bf16.mxu1 %v918_v6  ;;  %v1005_v9 = vld [vmem:[#allocation2 + $0x910] sm:$0xff]  ;;  %v1012_v6 = vld [vmem:[#allocation2 + $0x948] sm:$0xff] }
 0x1e6   :  { %1319 = vmatpush1.bf16.msra.mxu0 %v915_v11  ;;  %1483 = vmatpush1.bf16.msra.mxu1 %v917_v12  ;;  %v1014_v11 = vld [vmem:[#allocation2 + $0x958] sm:$0xff]  ;;  %v1011_v12 = vld [vmem:[#allocation2 + $0x940] sm:$0xff] }
 0x1e7   :  { %1320 = vmatprep.subr.bf16.mxu0 %v924_v10  ;;  %1484 = vmatprep.subr.bf16.mxu1 %v926_v13  ;;  %v1013_v10 = vld [vmem:[#allocation2 + $0x950] sm:$0xff]  ;;  %v1020_v13 = vld [vmem:[#allocation2 + $0x988] sm:$0xff] }
 0x1ea   :  { %1321 = vmatpush1.bf16.msra.mxu0 %v923_v14  ;;  %1485 = vmatpush1.bf16.msra.mxu1 %v925_v15  ;;  %v1022_v14 = vld [vmem:[#allocation2 + $0x998] sm:$0xff]  ;;  %v1019_v15 = vld [vmem:[#allocation2 + $0x980] sm:$0xff] }
 0x1eb   :  { %1322 = vmatprep.subr.bf16.mxu0 %v932_v16  ;;  %1486 = vmatprep.subr.bf16.mxu1 %v934_v17  ;;  %v1021_v16 = vld [vmem:[#allocation2 + $0x990] sm:$0xff]  ;;  %v1028_v17 = vld [vmem:[#allocation2 + $0x9c8] sm:$0xff] }
 0x1ee   :  { %1323 = vmatpush1.bf16.msra.mxu0 %v931_v19  ;;  %1487 = vmatpush1.bf16.msra.mxu1 %v933_v20  ;;  %v1030_v19 = vld [vmem:[#allocation2 + $0x9d8] sm:$0xff]  ;;  %v1027_v20 = vld [vmem:[#allocation2 + $0x9c0] sm:$0xff] }
 0x1ef   :  { %1324 = vmatprep.subr.bf16.mxu0 %v940_v56  ;;  %1488 = vmatprep.subr.bf16.mxu1 %v942_v23  ;;  %v1029_v56 = vld [vmem:[#allocation2 + $0x9d0] sm:$0xff]  ;;  %v1036_v23 = vld [vmem:[#allocation2 + $0xa08] sm:$0xff] }
 0x1f2   :  { %1325 = vmatpush1.bf16.msra.mxu0 %v939_v61  ;;  %1489 = vmatpush1.bf16.msra.mxu1 %v941_v24  ;;  %v1038_v61 = vld [vmem:[#allocation2 + $0xa18] sm:$0xff]  ;;  %v1035_v24 = vld [vmem:[#allocation2 + $0xa00] sm:$0xff] }
 0x1f3   :  { %1326 = vmatprep.subr.bf16.mxu0 %v948_v25  ;;  %1490 = vmatprep.subr.bf16.mxu1 %v950_v18  ;;  %v1037_v25 = vld [vmem:[#allocation2 + $0xa10] sm:$0xff]  ;;  %v1044_v18 = vld [vmem:[#allocation2 + $0xa48] sm:$0xff] }
 0x1f6   :  { %1327 = vmatpush1.bf16.msra.mxu0 %v947_v28  ;;  %1491 = vmatpush1.bf16.msra.mxu1 %v949_v31  ;;  %v1046_v28 = vld [vmem:[#allocation2 + $0xa58] sm:$0xff]  ;;  %v1043_v31 = vld [vmem:[#allocation2 + $0xa40] sm:$0xff] }
 0x1f7   :  { %1328 = vmatprep.subr.bf16.mxu0 %v956_v62  ;;  %1492 = vmatprep.subr.bf16.mxu1 %v958_v30  ;;  %v1045_v62 = vld [vmem:[#allocation2 + $0xa50] sm:$0xff]  ;;  %v1052_v30 = vld [vmem:[#allocation2 + $0xa88] sm:$0xff] }
 0x1fa   :  { %1329 = vmatpush1.bf16.msra.mxu0 %v955_v43  ;;  %1493 = vmatpush1.bf16.msra.mxu1 %v957_v32  ;;  %v1054_v43 = vld [vmem:[#allocation2 + $0xa98] sm:$0xff]  ;;  %v1051_v32 = vld [vmem:[#allocation2 + $0xa80] sm:$0xff] }
 0x1fb   :  { %1330 = vmatprep.subr.bf16.mxu0 %v964_v2  ;;  %1494 = vmatprep.subr.bf16.mxu1 %v966_v35  ;;  %v1053_v2 = vld [vmem:[#allocation2 + $0xa90] sm:$0xff]  ;;  %v1060_v35 = vld [vmem:[#allocation2 + $0xac8] sm:$0xff] }
 0x1fe   :  { %1331 = vmatpush1.bf16.msra.mxu0 %v963_v48  ;;  %1495 = vmatpush1.bf16.msra.mxu1 %v965_v37  ;;  %v1062_v48 = vld [vmem:[#allocation2 + $0xad8] sm:$0xff]  ;;  %v1059_v37 = vld [vmem:[#allocation2 + $0xac0] sm:$0xff] }
 0x1ff   :  { %1341 = vmatprep.subr.bf16.mxu0 %v972_v42  ;;  %1505 = vmatprep.subr.bf16.mxu1 %v974_v45  ;;  %v1061_v42 = vld [vmem:[#allocation2 + $0xad0] sm:$0xff]  ;;  %v1068_v45 = vld [vmem:[#allocation2 + $0xb08] sm:$0xff] }
 0x201   :  { %1333 = vmatmul.mubr.bf16.vlgmr.msra.gmra.mrb[8].mxu0 %v3125_v46  ;;  %1497 = vmatmul.mubr.bf16.vlgmr.msra.gmra.mrb[8].mxu1 %v3125_v46 }
 0x202   :  { %1342 = vmatpush1.bf16.msra.mxu0 %v971_v47  ;;  %1506 = vmatpush1.bf16.msra.mxu1 %v973_v51  ;;  %v1070_v47 = vld [vmem:[#allocation2 + $0xb18] sm:$0xff]  ;;  %v1067_v51 = vld [vmem:[#allocation2 + $0xb00] sm:$0xff] }
 0x203   :  { %1343 = vmatprep.subr.bf16.mxu0 %v980_v52  ;;  %1507 = vmatprep.subr.bf16.mxu1 %v982_v57  ;;  %v1069_v52 = vld [vmem:[#allocation2 + $0xb10] sm:$0xff]  ;;  %v1076_v57 = vld [vmem:[#allocation2 + $0xb48] sm:$0xff] }
 0x204   :  { %1373 = vmatprep.mubr.bf16.mxu0 %v3129_v49  ;;  %1537 = vmatprep.mubr.bf16.mxu1 %v3129_v49 }
 0x206   :  { %1344 = vmatpush1.bf16.msra.mxu0 %v979_v21  ;;  %1508 = vmatpush1.bf16.msra.mxu1 %v981_v53  ;;  %v1078_v21 = vld [vmem:[#allocation2 + $0xb58] sm:$0xff]  ;;  %v1075_v53 = vld [vmem:[#allocation2 + $0xb40] sm:$0xff] }
 0x207   :  { %1345 = vmatprep.subr.bf16.mxu0 %v988_v27  ;;  %1509 = vmatprep.subr.bf16.mxu1 %v990_v59  ;;  %v1077_v27 = vld [vmem:[#allocation2 + $0xb50] sm:$0xff]  ;;  %v1084_v59 = vld [vmem:[#allocation2 + $0xb88] sm:$0xff] }
 0x20a   :  { %1346 = vmatpush1.bf16.msra.mxu0 %v987_v3  ;;  %1510 = vmatpush1.bf16.msra.mxu1 %v989_v1  ;;  %v1086_v3 = vld [vmem:[#allocation2 + $0xb98] sm:$0xff]  ;;  %v1083_v1 = vld [vmem:[#allocation2 + $0xb80] sm:$0xff] }
 0x20b   :  { %1347 = vmatprep.subr.bf16.mxu0 %v996_v5  ;;  %1511 = vmatprep.subr.bf16.mxu1 %v998_v4  ;;  %v1085_v5 = vld [vmem:[#allocation2 + $0xb90] sm:$0xff]  ;;  %v1092_v4 = vld [vmem:[#allocation2 + $0xbc8] sm:$0xff] }
 0x20e   :  { %1348 = vmatpush1.bf16.msra.mxu0 %v995_v7  ;;  %1512 = vmatpush1.bf16.msra.mxu1 %v997_v8  ;;  %v1094_v7 = vld [vmem:[#allocation2 + $0xbd8] sm:$0xff]  ;;  %v1091_v8 = vld [vmem:[#allocation2 + $0xbc0] sm:$0xff] }
 0x20f   :  { %1349 = vmatprep.subr.bf16.mxu0 %v1004_v34  ;;  %1513 = vmatprep.subr.bf16.mxu1 %v1006_v44  ;;  %v1093_v34 = vld [vmem:[#allocation2 + $0xbd0] sm:$0xff]  ;;  %v1100_v44 = vld [vmem:[#allocation2 + $0xc08] sm:$0xff] }
 0x212   :  { %1350 = vmatpush1.bf16.msra.mxu0 %v1003_v50  ;;  %1514 = vmatpush1.bf16.msra.mxu1 %v1005_v9  ;;  %v1102_v50 = vld [vmem:[#allocation2 + $0xc18] sm:$0xff]  ;;  %v3137_v9 = vpack.c.bf16 %v3095_v58, %v3095_v58  ;;  %v1107_v58 = vld [vmem:[#allocation2 + $0xc40] sm:$0xff] }
 0x213   :  { %1351 = vmatprep.subr.bf16.mxu0 %v1012_v6  ;;  %1515 = vmatprep.subr.bf16.mxu1 %v1014_v11  ;;  %v1099_v6 = vld [vmem:[#allocation2 + $0xc00] sm:$0xff]  ;;  %v1101_v11 = vld [vmem:[#allocation2 + $0xc10] sm:$0xff] }
 0x216   :  { %1352 = vmatpush1.bf16.msra.mxu0 %v1011_v12  ;;  %1516 = vmatpush1.bf16.msra.mxu1 %v1013_v10  ;;  %v1108_v12 = vld [vmem:[#allocation2 + $0xc48] sm:$0xff]  ;;  %v1110_v10 = vld [vmem:[#allocation2 + $0xc58] sm:$0xff] }
 0x217   :  { %1353 = vmatprep.subr.bf16.mxu0 %v1020_v13  ;;  %1517 = vmatprep.subr.bf16.mxu1 %v1022_v14  ;;  %v3141_v13 = vpack.c.bf16 %v3105_v33, %v3105_v33  ;;  %v1109_v14 = vld [vmem:[#allocation2 + $0xc50] sm:$0xff]  ;;  %v1115_v33 = vld [vmem:[#allocation2 + $0xc80] sm:$0xff] }
 0x21a   :  { %1354 = vmatpush1.bf16.msra.mxu0 %v1019_v15  ;;  %1518 = vmatpush1.bf16.msra.mxu1 %v1021_v16  ;;  %v1116_v15 = vld [vmem:[#allocation2 + $0xc88] sm:$0xff]  ;;  %v1118_v16 = vld [vmem:[#allocation2 + $0xc98] sm:$0xff] }
 0x21b   :  { %1355 = vmatprep.subr.bf16.mxu0 %v1028_v17  ;;  %1519 = vmatprep.subr.bf16.mxu1 %v1030_v19  ;;  %v1117_v17 = vld [vmem:[#allocation2 + $0xc90] sm:$0xff]  ;;  %v1124_v19 = vld [vmem:[#allocation2 + $0xcc8] sm:$0xff] }
 0x21e   :  { %1356 = vmatpush1.bf16.msra.mxu0 %v1027_v20  ;;  %1520 = vmatpush1.bf16.msra.mxu1 %v1029_v56  ;;  %v1126_v20 = vld [vmem:[#allocation2 + $0xcd8] sm:$0xff]  ;;  %v1123_v56 = vld [vmem:[#allocation2 + $0xcc0] sm:$0xff] }
 0x21f   :  { %1357 = vmatprep.subr.bf16.mxu0 %v1036_v23  ;;  %1521 = vmatprep.subr.bf16.mxu1 %v1038_v61  ;;  %v1125_v23 = vld [vmem:[#allocation2 + $0xcd0] sm:$0xff]  ;;  %v1132_v61 = vld [vmem:[#allocation2 + $0xd08] sm:$0xff] }
 0x222   :  { %1358 = vmatpush1.bf16.msra.mxu0 %v1035_v24  ;;  %1522 = vmatpush1.bf16.msra.mxu1 %v1037_v25  ;;  %v1134_v24 = vld [vmem:[#allocation2 + $0xd18] sm:$0xff]  ;;  %v1131_v25 = vld [vmem:[#allocation2 + $0xd00] sm:$0xff] }
 0x223   :  { %1359 = vmatprep.subr.bf16.mxu0 %v1044_v18  ;;  %1523 = vmatprep.subr.bf16.mxu1 %v1046_v28  ;;  %v1133_v18 = vld [vmem:[#allocation2 + $0xd10] sm:$0xff]  ;;  %v1140_v28 = vld [vmem:[#allocation2 + $0xd48] sm:$0xff] }
 0x226   :  { %1360 = vmatpush1.bf16.msra.mxu0 %v1043_v31  ;;  %1524 = vmatpush1.bf16.msra.mxu1 %v1045_v62  ;;  %v1142_v31 = vld [vmem:[#allocation2 + $0xd58] sm:$0xff]  ;;  %v1139_v62 = vld [vmem:[#allocation2 + $0xd40] sm:$0xff] }
 0x227   :  { %1361 = vmatprep.subr.bf16.mxu0 %v1052_v30  ;;  %1525 = vmatprep.subr.bf16.mxu1 %v1054_v43  ;;  %v1141_v30 = vld [vmem:[#allocation2 + $0xd50] sm:$0xff]  ;;  %v1148_v43 = vld [vmem:[#allocation2 + $0xd88] sm:$0xff] }
 0x22a   :  { %1362 = vmatpush1.bf16.msra.mxu0 %v1051_v32  ;;  %1526 = vmatpush1.bf16.msra.mxu1 %v1053_v2  ;;  %v1150_v32 = vld [vmem:[#allocation2 + $0xd98] sm:$0xff]  ;;  %v1147_v2 = vld [vmem:[#allocation2 + $0xd80] sm:$0xff] }
 0x22b   :  { %1363 = vmatprep.subr.bf16.mxu0 %v1060_v35  ;;  %1527 = vmatprep.subr.bf16.mxu1 %v1062_v48  ;;  %v1149_v35 = vld [vmem:[#allocation2 + $0xd90] sm:$0xff]  ;;  %v1156_v48 = vld [vmem:[#allocation2 + $0xdc8] sm:$0xff] }
 0x22e   :  { %1364 = vmatpush1.bf16.msra.mxu0 %v1059_v37  ;;  %1528 = vmatpush1.bf16.msra.mxu1 %v1061_v42  ;;  %v1158_v37 = vld [vmem:[#allocation2 + $0xdd8] sm:$0xff]  ;;  %v1155_v42 = vld [vmem:[#allocation2 + $0xdc0] sm:$0xff] }
 0x22f   :  { %1365 = vmatprep.subr.bf16.mxu0 %v1068_v45  ;;  %1529 = vmatprep.subr.bf16.mxu1 %v1070_v47  ;;  %v1157_v45 = vld [vmem:[#allocation2 + $0xdd0] sm:$0xff]  ;;  %v1164_v47 = vld [vmem:[#allocation2 + $0xe08] sm:$0xff] }
 0x232   :  { %1366 = vmatpush1.bf16.msra.mxu0 %v1067_v51  ;;  %1530 = vmatpush1.bf16.msra.mxu1 %v1069_v52  ;;  %v1166_v51 = vld [vmem:[#allocation2 + $0xe18] sm:$0xff]  ;;  %v1163_v52 = vld [vmem:[#allocation2 + $0xe00] sm:$0xff] }
 0x233   :  { %1367 = vmatprep.subr.bf16.mxu0 %v1076_v57  ;;  %1531 = vmatprep.subr.bf16.mxu1 %v1078_v21  ;;  %v1165_v57 = vld [vmem:[#allocation2 + $0xe10] sm:$0xff]  ;;  %v1172_v21 = vld [vmem:[#allocation2 + $0xe48] sm:$0xff] }
 0x236   :  { %1368 = vmatpush1.bf16.msra.mxu0 %v1075_v53  ;;  %1532 = vmatpush1.bf16.msra.mxu1 %v1077_v27  ;;  %v1174_v53 = vld [vmem:[#allocation2 + $0xe58] sm:$0xff]  ;;  %v1171_v27 = vld [vmem:[#allocation2 + $0xe40] sm:$0xff] }
 0x237   :  { %1369 = vmatprep.subr.bf16.mxu0 %v1084_v59  ;;  %1533 = vmatprep.subr.bf16.mxu1 %v1086_v3  ;;  %v1173_v59 = vld [vmem:[#allocation2 + $0xe50] sm:$0xff]  ;;  %v1180_v3 = vld [vmem:[#allocation2 + $0xe88] sm:$0xff] }
 0x23a   :  { %1370 = vmatpush1.bf16.msra.mxu0 %v1083_v1  ;;  %1534 = vmatpush1.bf16.msra.mxu1 %v1085_v5  ;;  %v1182_v1 = vld [vmem:[#allocation2 + $0xe98] sm:$0xff]  ;;  %v1179_v5 = vld [vmem:[#allocation2 + $0xe80] sm:$0xff] }
 0x23b   :  { %1371 = vmatprep.subr.bf16.mxu0 %v1092_v4  ;;  %1535 = vmatprep.subr.bf16.mxu1 %v1094_v7  ;;  %v1181_v4 = vld [vmem:[#allocation2 + $0xe90] sm:$0xff]  ;;  %v1188_v7 = vld [vmem:[#allocation2 + $0xec8] sm:$0xff] }
 0x23e   :  { %1372 = vmatpush1.bf16.msra.mxu0 %v1091_v8  ;;  %1536 = vmatpush1.bf16.msra.mxu1 %v1093_v34  ;;  %v1190_v8 = vld [vmem:[#allocation2 + $0xed8] sm:$0xff]  ;;  %v1187_v34 = vld [vmem:[#allocation2 + $0xec0] sm:$0xff] }
 0x23f   :  { %1382 = vmatprep.subr.bf16.mxu0 %v1100_v44  ;;  %1546 = vmatprep.subr.bf16.mxu1 %v1102_v50  ;;  %v1189_v44 = vld [vmem:[#allocation2 + $0xed0] sm:$0xff]  ;;  %v1196_v50 = vld [vmem:[#allocation2 + $0xf08] sm:$0xff] }
 0x241   :  { %1374 = vmatmul.mubr.bf16.vlgmr.msra.gmra.mrb[8].mxu0 %v3137_v9  ;;  %1538 = vmatmul.mubr.bf16.vlgmr.msra.gmra.mrb[8].mxu1 %v3137_v9 }
 0x242   :  { %1383 = vmatpush1.bf16.msra.mxu0 %v1099_v6  ;;  %1547 = vmatpush1.bf16.msra.mxu1 %v1101_v11  ;;  %v1198_v6 = vld [vmem:[#allocation2 + $0xf18] sm:$0xff]  ;;  %v1195_v11 = vld [vmem:[#allocation2 + $0xf00] sm:$0xff] }
 0x243   :  { %1384 = vmatprep.subr.bf16.mxu0 %v1108_v12  ;;  %1548 = vmatprep.subr.bf16.mxu1 %v1110_v10  ;;  %v1197_v12 = vld [vmem:[#allocation2 + $0xf10] sm:$0xff]  ;;  %v1204_v10 = vld [vmem:[#allocation2 + $0xf48] sm:$0xff] }
 0x244   :  { %1414 = vmatprep.mubr.bf16.mxu0 %v3141_v13  ;;  %1578 = vmatprep.mubr.bf16.mxu1 %v3141_v13 }
 0x246   :  { %1385 = vmatpush1.bf16.msra.mxu0 %v1107_v58  ;;  %1549 = vmatpush1.bf16.msra.mxu1 %v1109_v14  ;;  %v1206_v58 = vld [vmem:[#allocation2 + $0xf58] sm:$0xff]  ;;  %v1203_v14 = vld [vmem:[#allocation2 + $0xf40] sm:$0xff] }
 0x247   :  { %1386 = vmatprep.subr.bf16.mxu0 %v1116_v15  ;;  %1550 = vmatprep.subr.bf16.mxu1 %v1118_v16  ;;  %v1205_v15 = vld [vmem:[#allocation2 + $0xf50] sm:$0xff]  ;;  %v1212_v16 = vld [vmem:[#allocation2 + $0xf88] sm:$0xff] }
 0x24a   :  { %1387 = vmatpush1.bf16.msra.mxu0 %v1115_v33  ;;  %1551 = vmatpush1.bf16.msra.mxu1 %v1117_v17  ;;  %v1214_v33 = vld [vmem:[#allocation2 + $0xf98] sm:$0xff]  ;;  %v1211_v17 = vld [vmem:[#allocation2 + $0xf80] sm:$0xff] }
 0x24b   :  { %1388 = vmatprep.subr.bf16.mxu0 %v1124_v19  ;;  %1552 = vmatprep.subr.bf16.mxu1 %v1126_v20  ;;  %v1213_v19 = vld [vmem:[#allocation2 + $0xf90] sm:$0xff]  ;;  %v1220_v20 = vld [vmem:[#allocation2 + $0xfc8] sm:$0xff] }
 0x24e   :  { %1389 = vmatpush1.bf16.msra.mxu0 %v1123_v56  ;;  %1553 = vmatpush1.bf16.msra.mxu1 %v1125_v23  ;;  %v1222_v56 = vld [vmem:[#allocation2 + $0xfd8] sm:$0xff]  ;;  %v1219_v23 = vld [vmem:[#allocation2 + $0xfc0] sm:$0xff] }
 0x24f   :  { %1390 = vmatprep.subr.bf16.mxu0 %v1132_v61  ;;  %1554 = vmatprep.subr.bf16.mxu1 %v1134_v24  ;;  %v1221_v61 = vld [vmem:[#allocation2 + $0xfd0] sm:$0xff]  ;;  %v720_v24 = vld [vmem:[#allocation2 + $0x28] sm:$0xff] }
 0x252   :  { %1391 = vmatpush1.bf16.msra.mxu0 %v1131_v25  ;;  %1555 = vmatpush1.bf16.msra.mxu1 %v1133_v18  ;;  %v722_v25 = vld [vmem:[#allocation2 + $0x38] sm:$0xff]  ;;  %v3149_v18 = vpack.c.bf16 %v3098_v63, %v3098_v63  ;;  %v736_v63 = vld [vmem:[#allocation2 + $0xa8] sm:$0xff] }
 0x253   :  { %1392 = vmatprep.subr.bf16.mxu0 %v1140_v28  ;;  %1556 = vmatprep.subr.bf16.mxu1 %v1142_v31  ;;  %v719_v28 = vld [vmem:[#allocation2 + $0x20] sm:$0xff]  ;;  %v721_v31 = vld [vmem:[#allocation2 + $0x30] sm:$0xff] }
 0x256   :  { %1393 = vmatpush1.bf16.msra.mxu0 %v1139_v62  ;;  %1557 = vmatpush1.bf16.msra.mxu1 %v1141_v30  ;;  %v728_v62 = vld [vmem:[#allocation2 + $0x68] sm:$0xff]  ;;  %v730_v30 = vld [vmem:[#allocation2 + $0x78] sm:$0xff] }
 0x257   :  { %1394 = vmatprep.subr.bf16.mxu0 %v1148_v43  ;;  %1558 = vmatprep.subr.bf16.mxu1 %v1150_v32  ;;  %v727_v43 = vld [vmem:[#allocation2 + $0x60] sm:$0xff]  ;;  %v729_v32 = vld [vmem:[#allocation2 + $0x70] sm:$0xff] }
 0x25a   :  { %1395 = vmatpush1.bf16.msra.mxu0 %v1147_v2  ;;  %1559 = vmatpush1.bf16.msra.mxu1 %v1149_v35  ;;  %v738_v2 = vld [vmem:[#allocation2 + $0xb8] sm:$0xff]  ;;  %v735_v35 = vld [vmem:[#allocation2 + $0xa0] sm:$0xff] }
 0x25b   :  { %1396 = vmatprep.subr.bf16.mxu0 %v1156_v48  ;;  %1560 = vmatprep.subr.bf16.mxu1 %v1158_v37  ;;  %v737_v48 = vld [vmem:[#allocation2 + $0xb0] sm:$0xff]  ;;  %v744_v37 = vld [vmem:[#allocation2 + $0xe8] sm:$0xff] }
 0x25e   :  { %1397 = vmatpush1.bf16.msra.mxu0 %v1155_v42  ;;  %1561 = vmatpush1.bf16.msra.mxu1 %v1157_v45  ;;  %v746_v42 = vld [vmem:[#allocation2 + $0xf8] sm:$0xff]  ;;  %v743_v45 = vld [vmem:[#allocation2 + $0xe0] sm:$0xff] }
 0x25f   :  { %1398 = vmatprep.subr.bf16.mxu0 %v1164_v47  ;;  %1562 = vmatprep.subr.bf16.mxu1 %v1166_v51  ;;  %v745_v47 = vld [vmem:[#allocation2 + $0xf0] sm:$0xff]  ;;  %v752_v51 = vld [vmem:[#allocation2 + $0x128] sm:$0xff] }
 0x262   :  { %1399 = vmatpush1.bf16.msra.mxu0 %v1163_v52  ;;  %1563 = vmatpush1.bf16.msra.mxu1 %v1165_v57  ;;  %v754_v52 = vld [vmem:[#allocation2 + $0x138] sm:$0xff]  ;;  %v753_v57 = vld [vmem:[#allocation2 + $0x130] sm:$0xff] }
 0x263   :  { %1400 = vmatprep.subr.bf16.mxu0 %v1172_v21  ;;  %1564 = vmatprep.subr.bf16.mxu1 %v1174_v53  ;;  %v760_v21 = vld [vmem:[#allocation2 + $0x168] sm:$0xff]  ;;  %v762_v53 = vld [vmem:[#allocation2 + $0x178] sm:$0xff] }
 0x266   :  { %1401 = vmatpush1.bf16.msra.mxu0 %v1171_v27  ;;  %1565 = vmatpush1.bf16.msra.mxu1 %v1173_v59  ;;  %v759_v27 = vld [vmem:[#allocation2 + $0x160] sm:$0xff]  ;;  %v761_v59 = vld [vmem:[#allocation2 + $0x170] sm:$0xff] }
 0x267   :  { %1402 = vmatprep.subr.bf16.mxu0 %v1180_v3  ;;  %1566 = vmatprep.subr.bf16.mxu1 %v1182_v1  ;;  %v768_v3 = vld [vmem:[#allocation2 + $0x1a8] sm:$0xff]  ;;  %v770_v1 = vld [vmem:[#allocation2 + $0x1b8] sm:$0xff] }
 0x26a   :  { %1403 = vmatpush1.bf16.msra.mxu0 %v1179_v5  ;;  %1567 = vmatpush1.bf16.msra.mxu1 %v1181_v4  ;;  %v767_v5 = vld [vmem:[#allocation2 + $0x1a0] sm:$0xff]  ;;  %v769_v4 = vld [vmem:[#allocation2 + $0x1b0] sm:$0xff] }
 0x26b   :  { %1404 = vmatprep.subr.bf16.mxu0 %v1188_v7  ;;  %1568 = vmatprep.subr.bf16.mxu1 %v1190_v8  ;;  %v776_v7 = vld [vmem:[#allocation2 + $0x1e8] sm:$0xff]  ;;  %v778_v8 = vld [vmem:[#allocation2 + $0x1f8] sm:$0xff] }
 0x26e   :  { %1405 = vmatpush1.bf16.msra.mxu0 %v1187_v34  ;;  %1569 = vmatpush1.bf16.msra.mxu1 %v1189_v44  ;;  %v775_v34 = vld [vmem:[#allocation2 + $0x1e0] sm:$0xff]  ;;  %v777_v44 = vld [vmem:[#allocation2 + $0x1f0] sm:$0xff] }
 0x26f   :  { %1406 = vmatprep.subr.bf16.mxu0 %v1196_v50  ;;  %1570 = vmatprep.subr.bf16.mxu1 %v1198_v6  ;;  %v784_v50 = vld [vmem:[#allocation2 + $0x228] sm:$0xff]  ;;  %v786_v6 = vld [vmem:[#allocation2 + $0x238] sm:$0xff] }
 0x272   :  { %1407 = vmatpush1.bf16.msra.mxu0 %v1195_v11  ;;  %1571 = vmatpush1.bf16.msra.mxu1 %v1197_v12  ;;  %v783_v11 = vld [vmem:[#allocation2 + $0x220] sm:$0xff]  ;;  %v785_v12 = vld [vmem:[#allocation2 + $0x230] sm:$0xff] }
 0x273   :  { %1408 = vmatprep.subr.bf16.mxu0 %v1204_v10  ;;  %1572 = vmatprep.subr.bf16.mxu1 %v1206_v58  ;;  %v792_v10 = vld [vmem:[#allocation2 + $0x268] sm:$0xff]  ;;  %v794_v58 = vld [vmem:[#allocation2 + $0x278] sm:$0xff] }
 0x276   :  { %1409 = vmatpush1.bf16.msra.mxu0 %v1203_v14  ;;  %1573 = vmatpush1.bf16.msra.mxu1 %v1205_v15  ;;  %v791_v14 = vld [vmem:[#allocation2 + $0x260] sm:$0xff]  ;;  %v793_v15 = vld [vmem:[#allocation2 + $0x270] sm:$0xff] }
 0x277   :  { %1410 = vmatprep.subr.bf16.mxu0 %v1212_v16  ;;  %1574 = vmatprep.subr.bf16.mxu1 %v1214_v33  ;;  %v800_v16 = vld [vmem:[#allocation2 + $0x2a8] sm:$0xff]  ;;  %v802_v33 = vld [vmem:[#allocation2 + $0x2b8] sm:$0xff] }
 0x27a   :  { %1411 = vmatpush1.bf16.msra.mxu0 %v1211_v17  ;;  %1575 = vmatpush1.bf16.msra.mxu1 %v1213_v19  ;;  %v799_v17 = vld [vmem:[#allocation2 + $0x2a0] sm:$0xff]  ;;  %v801_v19 = vld [vmem:[#allocation2 + $0x2b0] sm:$0xff] }
 0x27b   :  { %1412 = vmatprep.subr.bf16.mxu0 %v1220_v20  ;;  %1576 = vmatprep.subr.bf16.mxu1 %v1222_v56  ;;  %v808_v20 = vld [vmem:[#allocation2 + $0x2e8] sm:$0xff]  ;;  %v810_v56 = vld [vmem:[#allocation2 + $0x2f8] sm:$0xff] }
 0x27e   :  { %1413 = vmatpush1.bf16.msra.mxu0 %v1219_v23  ;;  %1577 = vmatpush1.bf16.msra.mxu1 %v1221_v61  ;;  %v807_v23 = vld [vmem:[#allocation2 + $0x2e0] sm:$0xff]  ;;  %v809_v61 = vld [vmem:[#allocation2 + $0x2f0] sm:$0xff] }
 0x27f   :  { %1587 = vmatprep.subr.bf16.mxu0 %v720_v24  ;;  %1751 = vmatprep.subr.bf16.mxu1 %v722_v25  ;;  %v816_v24 = vld [vmem:[#allocation2 + $0x328] sm:$0xff]  ;;  %v818_v25 = vld [vmem:[#allocation2 + $0x338] sm:$0xff] }
 0x281   :  { %1415 = vmatmul.mubr.bf16.vlgmr.msra.gmra.mrb[8].mxu0 %v3149_v18  ;;  %1579 = vmatmul.mubr.bf16.vlgmr.msra.gmra.mrb[8].mxu1 %v3149_v18 }
 0x282   :  { %1588 = vmatpush1.bf16.msra.mxu0 %v719_v28  ;;  %1752 = vmatpush1.bf16.msra.mxu1 %v721_v31  ;;  %v815_v28 = vld [vmem:[#allocation2 + $0x320] sm:$0xff]  ;;  %v817_v31 = vld [vmem:[#allocation2 + $0x330] sm:$0xff] }
 0x283   :  { %1589 = vmatprep.subr.bf16.mxu0 %v728_v62  ;;  %1753 = vmatprep.subr.bf16.mxu1 %v730_v30  ;;  %v824_v62 = vld [vmem:[#allocation2 + $0x368] sm:$0xff]  ;;  %v826_v30 = vld [vmem:[#allocation2 + $0x378] sm:$0xff] }
 0x284   :  { %1619 = vmatprep.mubr.bf16.mxu0 %v3107_v29  ;;  %1783 = vmatprep.mubr.bf16.mxu1 %v3107_v29  ;;  %v751_v29 = vld [vmem:[#allocation2 + $0x120] sm:$0xff] }
 0x286   :  { %1590 = vmatpush1.bf16.msra.mxu0 %v727_v43  ;;  %1754 = vmatpush1.bf16.msra.mxu1 %v729_v32  ;;  %v823_v43 = vld [vmem:[#allocation2 + $0x360] sm:$0xff]  ;;  %v825_v32 = vld [vmem:[#allocation2 + $0x370] sm:$0xff] }
 0x287   :  { %1591 = vmatprep.subr.bf16.mxu0 %v736_v63  ;;  %1755 = vmatprep.subr.bf16.mxu1 %v738_v2  ;;  %v832_v63 = vld [vmem:[#allocation2 + $0x3a8] sm:$0xff]  ;;  %v834_v2 = vld [vmem:[#allocation2 + $0x3b8] sm:$0xff] }
 0x28a   :  { %1592 = vmatpush1.bf16.msra.mxu0 %v735_v35  ;;  %1756 = vmatpush1.bf16.msra.mxu1 %v737_v48  ;;  %v831_v35 = vld [vmem:[#allocation2 + $0x3a0] sm:$0xff]  ;;  %v833_v48 = vld [vmem:[#allocation2 + $0x3b0] sm:$0xff] }
 0x28b   :  { %1593 = vmatprep.subr.bf16.mxu0 %v744_v37  ;;  %1757 = vmatprep.subr.bf16.mxu1 %v746_v42  ;;  %v840_v37 = vld [vmem:[#allocation2 + $0x3e8] sm:$0xff]  ;;  %v842_v42 = vld [vmem:[#allocation2 + $0x3f8] sm:$0xff] }
 0x28e   :  { %1594 = vmatpush1.bf16.msra.mxu0 %v743_v45  ;;  %1758 = vmatpush1.bf16.msra.mxu1 %v745_v47  ;;  %v839_v45 = vld [vmem:[#allocation2 + $0x3e0] sm:$0xff]  ;;  %v841_v47 = vld [vmem:[#allocation2 + $0x3f0] sm:$0xff] }
 0x28f   :  { %1595 = vmatprep.subr.bf16.mxu0 %v752_v51  ;;  %1759 = vmatprep.subr.bf16.mxu1 %v754_v52  ;;  %v848_v51 = vld [vmem:[#allocation2 + $0x428] sm:$0xff]  ;;  %v850_v52 = vld [vmem:[#allocation2 + $0x438] sm:$0xff] }
 0x292   :  { %1596 = vmatpush1.bf16.msra.mxu0 %v751_v29  ;;  %1760 = vmatpush1.bf16.msra.mxu1 %v753_v57  ;;  %v847_v29 = vld [vmem:[#allocation2 + $0x420] sm:$0xff]  ;;  %v849_v57 = vld [vmem:[#allocation2 + $0x430] sm:$0xff] }
 0x293   :  { %1597 = vmatprep.subr.bf16.mxu0 %v760_v21  ;;  %1761 = vmatprep.subr.bf16.mxu1 %v762_v53  ;;  %v856_v21 = vld [vmem:[#allocation2 + $0x468] sm:$0xff]  ;;  %v858_v53 = vld [vmem:[#allocation2 + $0x478] sm:$0xff] }
 0x296   :  { %1598 = vmatpush1.bf16.msra.mxu0 %v759_v27  ;;  %1762 = vmatpush1.bf16.msra.mxu1 %v761_v59  ;;  %v855_v27 = vld [vmem:[#allocation2 + $0x460] sm:$0xff]  ;;  %v857_v59 = vld [vmem:[#allocation2 + $0x470] sm:$0xff] }
 0x297   :  { %1599 = vmatprep.subr.bf16.mxu0 %v768_v3  ;;  %1763 = vmatprep.subr.bf16.mxu1 %v770_v1  ;;  %v864_v3 = vld [vmem:[#allocation2 + $0x4a8] sm:$0xff]  ;;  %v866_v1 = vld [vmem:[#allocation2 + $0x4b8] sm:$0xff] }
 0x29a   :  { %1600 = vmatpush1.bf16.msra.mxu0 %v767_v5  ;;  %1764 = vmatpush1.bf16.msra.mxu1 %v769_v4  ;;  %v863_v5 = vld [vmem:[#allocation2 + $0x4a0] sm:$0xff]  ;;  %v865_v4 = vld [vmem:[#allocation2 + $0x4b0] sm:$0xff] }
 0x29b   :  { %1601 = vmatprep.subr.bf16.mxu0 %v776_v7  ;;  %1765 = vmatprep.subr.bf16.mxu1 %v778_v8  ;;  %v872_v7 = vld [vmem:[#allocation2 + $0x4e8] sm:$0xff]  ;;  %v871_v8 = vld [vmem:[#allocation2 + $0x4e0] sm:$0xff] }
 0x29e   :  { %1602 = vmatpush1.bf16.msra.mxu0 %v775_v34  ;;  %1766 = vmatpush1.bf16.msra.mxu1 %v777_v44  ;;  %v873_v34 = vld [vmem:[#allocation2 + $0x4f0] sm:$0xff]  ;;  %v880_v44 = vld [vmem:[#allocation2 + $0x528] sm:$0xff] }
 0x29f   :  { %1603 = vmatprep.subr.bf16.mxu0 %v784_v50  ;;  %1767 = vmatprep.subr.bf16.mxu1 %v786_v6  ;;  %v882_v50 = vld [vmem:[#allocation2 + $0x538] sm:$0xff]  ;;  %v881_v6 = vld [vmem:[#allocation2 + $0x530] sm:$0xff] }
 0x2a2   :  { %1604 = vmatpush1.bf16.msra.mxu0 %v783_v11  ;;  %1768 = vmatpush1.bf16.msra.mxu1 %v785_v12  ;;  %v888_v11 = vld [vmem:[#allocation2 + $0x568] sm:$0xff]  ;;  %v890_v12 = vld [vmem:[#allocation2 + $0x578] sm:$0xff] }
 0x2a3   :  { %1605 = vmatprep.subr.bf16.mxu0 %v792_v10  ;;  %1769 = vmatprep.subr.bf16.mxu1 %v794_v58  ;;  %v887_v10 = vld [vmem:[#allocation2 + $0x560] sm:$0xff]  ;;  %v889_v58 = vld [vmem:[#allocation2 + $0x570] sm:$0xff] }
 0x2a6   :  { %1606 = vmatpush1.bf16.msra.mxu0 %v791_v14  ;;  %1770 = vmatpush1.bf16.msra.mxu1 %v793_v15  ;;  %v896_v14 = vld [vmem:[#allocation2 + $0x5a8] sm:$0xff]  ;;  %v898_v15 = vld [vmem:[#allocation2 + $0x5b8] sm:$0xff] }
 0x2a7   :  { %1607 = vmatprep.subr.bf16.mxu0 %v800_v16  ;;  %1771 = vmatprep.subr.bf16.mxu1 %v802_v33  ;;  %v895_v16 = vld [vmem:[#allocation2 + $0x5a0] sm:$0xff]  ;;  %v897_v33 = vld [vmem:[#allocation2 + $0x5b0] sm:$0xff] }
 0x2aa   :  { %1608 = vmatpush1.bf16.msra.mxu0 %v799_v17  ;;  %1772 = vmatpush1.bf16.msra.mxu1 %v801_v19  ;;  %v904_v17 = vld [vmem:[#allocation2 + $0x5e8] sm:$0xff]  ;;  %v906_v19 = vld [vmem:[#allocation2 + $0x5f8] sm:$0xff] }
 0x2ab   :  { %1609 = vmatprep.subr.bf16.mxu0 %v808_v20  ;;  %1773 = vmatprep.subr.bf16.mxu1 %v810_v56  ;;  %v903_v20 = vld [vmem:[#allocation2 + $0x5e0] sm:$0xff]  ;;  %v905_v56 = vld [vmem:[#allocation2 + $0x5f0] sm:$0xff] }
 0x2ae   :  { %1610 = vmatpush1.bf16.msra.mxu0 %v807_v23  ;;  %1774 = vmatpush1.bf16.msra.mxu1 %v809_v61  ;;  %v912_v23 = vld [vmem:[#allocation2 + $0x628] sm:$0xff]  ;;  %v914_v61 = vld [vmem:[#allocation2 + $0x638] sm:$0xff] }
 0x2af   :  { %1611 = vmatprep.subr.bf16.mxu0 %v816_v24  ;;  %1775 = vmatprep.subr.bf16.mxu1 %v818_v25  ;;  %v911_v24 = vld [vmem:[#allocation2 + $0x620] sm:$0xff]  ;;  %v913_v25 = vld [vmem:[#allocation2 + $0x630] sm:$0xff] }
 0x2b2   :  { %1612 = vmatpush1.bf16.msra.mxu0 %v815_v28  ;;  %1776 = vmatpush1.bf16.msra.mxu1 %v817_v31  ;;  %v920_v28 = vld [vmem:[#allocation2 + $0x668] sm:$0xff]  ;;  %v922_v31 = vld [vmem:[#allocation2 + $0x678] sm:$0xff] }
 0x2b3   :  { %1613 = vmatprep.subr.bf16.mxu0 %v824_v62  ;;  %1777 = vmatprep.subr.bf16.mxu1 %v826_v30  ;;  %v919_v62 = vld [vmem:[#allocation2 + $0x660] sm:$0xff]  ;;  %v921_v30 = vld [vmem:[#allocation2 + $0x670] sm:$0xff] }
 0x2b6   :  { %1614 = vmatpush1.bf16.msra.mxu0 %v823_v43  ;;  %1778 = vmatpush1.bf16.msra.mxu1 %v825_v32  ;;  %v928_v43 = vld [vmem:[#allocation2 + $0x6a8] sm:$0xff]  ;;  %v930_v32 = vld [vmem:[#allocation2 + $0x6b8] sm:$0xff] }
 0x2b7   :  { %1615 = vmatprep.subr.bf16.mxu0 %v832_v63  ;;  %1779 = vmatprep.subr.bf16.mxu1 %v834_v2  ;;  %v927_v63 = vld [vmem:[#allocation2 + $0x6a0] sm:$0xff]  ;;  %v929_v2 = vld [vmem:[#allocation2 + $0x6b0] sm:$0xff] }
 0x2ba   :  { %1616 = vmatpush1.bf16.msra.mxu0 %v831_v35  ;;  %1780 = vmatpush1.bf16.msra.mxu1 %v833_v48  ;;  %v936_v35 = vld [vmem:[#allocation2 + $0x6e8] sm:$0xff]  ;;  %v938_v48 = vld [vmem:[#allocation2 + $0x6f8] sm:$0xff] }
 0x2bb   :  { %1617 = vmatprep.subr.bf16.mxu0 %v840_v37  ;;  %1781 = vmatprep.subr.bf16.mxu1 %v842_v42  ;;  %v935_v37 = vld [vmem:[#allocation2 + $0x6e0] sm:$0xff]  ;;  %v937_v42 = vld [vmem:[#allocation2 + $0x6f0] sm:$0xff] }
 0x2be   :  { %1618 = vmatpush1.bf16.msra.mxu0 %v839_v45  ;;  %1782 = vmatpush1.bf16.msra.mxu1 %v841_v47  ;;  %v944_v45 = vld [vmem:[#allocation2 + $0x728] sm:$0xff]  ;;  %v946_v47 = vld [vmem:[#allocation2 + $0x738] sm:$0xff] }
 0x2bf   :  { %1628 = vmatprep.subr.bf16.mxu0 %v848_v51  ;;  %1792 = vmatprep.subr.bf16.mxu1 %v850_v52  ;;  %v943_v51 = vld [vmem:[#allocation2 + $0x720] sm:$0xff]  ;;  %v945_v52 = vld [vmem:[#allocation2 + $0x730] sm:$0xff] }
 0x2c1   :  { %1620 = vmatmul.mubr.bf16.vlgmr.msra.gmra.mrb[12].mxu0 %v3113_v22  ;;  %1784 = vmatmul.mubr.bf16.vlgmr.msra.gmra.mrb[12].mxu1 %v3113_v22  ;;  %v874_v22 = vld [vmem:[#allocation2 + $0x4f8] sm:$0xff] }
 0x2c2   :  { %1629 = vmatpush1.bf16.msra.mxu0 %v847_v29  ;;  %1793 = vmatpush1.bf16.msra.mxu1 %v849_v57  ;;  %v952_v29 = vld [vmem:[#allocation2 + $0x768] sm:$0xff]  ;;  %v954_v57 = vld [vmem:[#allocation2 + $0x778] sm:$0xff] }
 0x2c3   :  { %1630 = vmatprep.subr.bf16.mxu0 %v856_v21  ;;  %1794 = vmatprep.subr.bf16.mxu1 %v858_v53  ;;  %v951_v21 = vld [vmem:[#allocation2 + $0x760] sm:$0xff]  ;;  %v953_v53 = vld [vmem:[#allocation2 + $0x770] sm:$0xff] }
 0x2c4   :  { %1660 = vmatprep.mubr.bf16.mxu0 %v3117_v26  ;;  %1824 = vmatprep.mubr.bf16.mxu1 %v3117_v26  ;;  %v879_v26 = vld [vmem:[#allocation2 + $0x520] sm:$0xff] }
 0x2c6   :  { %1631 = vmatpush1.bf16.msra.mxu0 %v855_v27  ;;  %1795 = vmatpush1.bf16.msra.mxu1 %v857_v59  ;;  %v960_v27 = vld [vmem:[#allocation2 + $0x7a8] sm:$0xff]  ;;  %v962_v59 = vld [vmem:[#allocation2 + $0x7b8] sm:$0xff] }
 0x2c7   :  { %1632 = vmatprep.subr.bf16.mxu0 %v864_v3  ;;  %1796 = vmatprep.subr.bf16.mxu1 %v866_v1  ;;  %v959_v3 = vld [vmem:[#allocation2 + $0x7a0] sm:$0xff]  ;;  %v961_v1 = vld [vmem:[#allocation2 + $0x7b0] sm:$0xff] }
 0x2ca   :  { %1633 = vmatpush1.bf16.msra.mxu0 %v863_v5  ;;  %1797 = vmatpush1.bf16.msra.mxu1 %v865_v4  ;;  %v968_v5 = vld [vmem:[#allocation2 + $0x7e8] sm:$0xff]  ;;  %v970_v4 = vld [vmem:[#allocation2 + $0x7f8] sm:$0xff] }
 0x2cb   :  { %1634 = vmatprep.subr.bf16.mxu0 %v872_v7  ;;  %1798 = vmatprep.subr.bf16.mxu1 %v874_v22  ;;  %v967_v7 = vld [vmem:[#allocation2 + $0x7e0] sm:$0xff]  ;;  %v969_v22 = vld [vmem:[#allocation2 + $0x7f0] sm:$0xff] }
 0x2ce   :  { %1635 = vmatpush1.bf16.msra.mxu0 %v871_v8  ;;  %1799 = vmatpush1.bf16.msra.mxu1 %v873_v34  ;;  %v976_v8 = vld [vmem:[#allocation2 + $0x828] sm:$0xff]  ;;  %v978_v34 = vld [vmem:[#allocation2 + $0x838] sm:$0xff] }
 0x2cf   :  { %1636 = vmatprep.subr.bf16.mxu0 %v880_v44  ;;  %1800 = vmatprep.subr.bf16.mxu1 %v882_v50  ;;  %v975_v44 = vld [vmem:[#allocation2 + $0x820] sm:$0xff]  ;;  %v977_v50 = vld [vmem:[#allocation2 + $0x830] sm:$0xff] }
 0x2d2   :  { %1637 = vmatpush1.bf16.msra.mxu0 %v879_v26  ;;  %1801 = vmatpush1.bf16.msra.mxu1 %v881_v6  ;;  %v984_v26 = vld [vmem:[#allocation2 + $0x868] sm:$0xff]  ;;  %v986_v6 = vld [vmem:[#allocation2 + $0x878] sm:$0xff] }
 0x2d3   :  { %1638 = vmatprep.subr.bf16.mxu0 %v888_v11  ;;  %1802 = vmatprep.subr.bf16.mxu1 %v890_v12  ;;  %v983_v11 = vld [vmem:[#allocation2 + $0x860] sm:$0xff]  ;;  %v985_v12 = vld [vmem:[#allocation2 + $0x870] sm:$0xff] }
 0x2d6   :  { %1639 = vmatpush1.bf16.msra.mxu0 %v887_v10  ;;  %1803 = vmatpush1.bf16.msra.mxu1 %v889_v58  ;;  %v992_v10 = vld [vmem:[#allocation2 + $0x8a8] sm:$0xff]  ;;  %v994_v58 = vld [vmem:[#allocation2 + $0x8b8] sm:$0xff] }
 0x2d7   :  { %1640 = vmatprep.subr.bf16.mxu0 %v896_v14  ;;  %1804 = vmatprep.subr.bf16.mxu1 %v898_v15  ;;  %v991_v14 = vld [vmem:[#allocation2 + $0x8a0] sm:$0xff]  ;;  %v993_v15 = vld [vmem:[#allocation2 + $0x8b0] sm:$0xff] }
 0x2da   :  { %1641 = vmatpush1.bf16.msra.mxu0 %v895_v16  ;;  %1805 = vmatpush1.bf16.msra.mxu1 %v897_v33  ;;  %v1000_v16 = vld [vmem:[#allocation2 + $0x8e8] sm:$0xff]  ;;  %v999_v33 = vld [vmem:[#allocation2 + $0x8e0] sm:$0xff] }
 0x2db   :  { %1642 = vmatprep.subr.bf16.mxu0 %v904_v17  ;;  %1806 = vmatprep.subr.bf16.mxu1 %v906_v19  ;;  %v1001_v17 = vld [vmem:[#allocation2 + $0x8f0] sm:$0xff]  ;;  %v1008_v19 = vld [vmem:[#allocation2 + $0x928] sm:$0xff] }
 0x2de   :  { %1643 = vmatpush1.bf16.msra.mxu0 %v903_v20  ;;  %1807 = vmatpush1.bf16.msra.mxu1 %v905_v56  ;;  %v1010_v20 = vld [vmem:[#allocation2 + $0x938] sm:$0xff]  ;;  %v1009_v56 = vld [vmem:[#allocation2 + $0x930] sm:$0xff] }
 0x2df   :  { %1644 = vmatprep.subr.bf16.mxu0 %v912_v23  ;;  %1808 = vmatprep.subr.bf16.mxu1 %v914_v61  ;;  %v1016_v23 = vld [vmem:[#allocation2 + $0x968] sm:$0xff]  ;;  %v1018_v61 = vld [vmem:[#allocation2 + $0x978] sm:$0xff] }
 0x2e2   :  { %1645 = vmatpush1.bf16.msra.mxu0 %v911_v24  ;;  %1809 = vmatpush1.bf16.msra.mxu1 %v913_v25  ;;  %v1015_v24 = vld [vmem:[#allocation2 + $0x960] sm:$0xff]  ;;  %v1017_v25 = vld [vmem:[#allocation2 + $0x970] sm:$0xff] }
 0x2e3   :  { %1646 = vmatprep.subr.bf16.mxu0 %v920_v28  ;;  %1810 = vmatprep.subr.bf16.mxu1 %v922_v31  ;;  %v1024_v28 = vld [vmem:[#allocation2 + $0x9a8] sm:$0xff]  ;;  %v1026_v31 = vld [vmem:[#allocation2 + $0x9b8] sm:$0xff] }
 0x2e6   :  { %1647 = vmatpush1.bf16.msra.mxu0 %v919_v62  ;;  %1811 = vmatpush1.bf16.msra.mxu1 %v921_v30  ;;  %v1023_v62 = vld [vmem:[#allocation2 + $0x9a0] sm:$0xff]  ;;  %v1025_v30 = vld [vmem:[#allocation2 + $0x9b0] sm:$0xff] }
 0x2e7   :  { %1648 = vmatprep.subr.bf16.mxu0 %v928_v43  ;;  %1812 = vmatprep.subr.bf16.mxu1 %v930_v32  ;;  %v1032_v43 = vld [vmem:[#allocation2 + $0x9e8] sm:$0xff]  ;;  %v1034_v32 = vld [vmem:[#allocation2 + $0x9f8] sm:$0xff] }
 0x2ea   :  { %1649 = vmatpush1.bf16.msra.mxu0 %v927_v63  ;;  %1813 = vmatpush1.bf16.msra.mxu1 %v929_v2  ;;  %v1031_v63 = vld [vmem:[#allocation2 + $0x9e0] sm:$0xff]  ;;  %v1033_v2 = vld [vmem:[#allocation2 + $0x9f0] sm:$0xff] }
 0x2eb   :  { %1650 = vmatprep.subr.bf16.mxu0 %v936_v35  ;;  %1814 = vmatprep.subr.bf16.mxu1 %v938_v48  ;;  %v1040_v35 = vld [vmem:[#allocation2 + $0xa28] sm:$0xff]  ;;  %v1042_v48 = vld [vmem:[#allocation2 + $0xa38] sm:$0xff] }
 0x2ee   :  { %1651 = vmatpush1.bf16.msra.mxu0 %v935_v37  ;;  %1815 = vmatpush1.bf16.msra.mxu1 %v937_v42  ;;  %v1039_v37 = vld [vmem:[#allocation2 + $0xa20] sm:$0xff]  ;;  %v1041_v42 = vld [vmem:[#allocation2 + $0xa30] sm:$0xff] }
 0x2ef   :  { %1652 = vmatprep.subr.bf16.mxu0 %v944_v45  ;;  %1816 = vmatprep.subr.bf16.mxu1 %v946_v47  ;;  %v1048_v45 = vld [vmem:[#allocation2 + $0xa68] sm:$0xff]  ;;  %v1050_v47 = vld [vmem:[#allocation2 + $0xa78] sm:$0xff] }
 0x2f2   :  { %1653 = vmatpush1.bf16.msra.mxu0 %v943_v51  ;;  %1817 = vmatpush1.bf16.msra.mxu1 %v945_v52  ;;  %v1047_v51 = vld [vmem:[#allocation2 + $0xa60] sm:$0xff]  ;;  %v1049_v52 = vld [vmem:[#allocation2 + $0xa70] sm:$0xff] }
 0x2f3   :  { %1654 = vmatprep.subr.bf16.mxu0 %v952_v29  ;;  %1818 = vmatprep.subr.bf16.mxu1 %v954_v57  ;;  %v1056_v29 = vld [vmem:[#allocation2 + $0xaa8] sm:$0xff]  ;;  %v1058_v57 = vld [vmem:[#allocation2 + $0xab8] sm:$0xff] }
 0x2f6   :  { %1655 = vmatpush1.bf16.msra.mxu0 %v951_v21  ;;  %1819 = vmatpush1.bf16.msra.mxu1 %v953_v53  ;;  %v1055_v21 = vld [vmem:[#allocation2 + $0xaa0] sm:$0xff]  ;;  %v1057_v53 = vld [vmem:[#allocation2 + $0xab0] sm:$0xff] }
 0x2f7   :  { %1656 = vmatprep.subr.bf16.mxu0 %v960_v27  ;;  %1820 = vmatprep.subr.bf16.mxu1 %v962_v59  ;;  %v1064_v27 = vld [vmem:[#allocation2 + $0xae8] sm:$0xff]  ;;  %v1066_v59 = vld [vmem:[#allocation2 + $0xaf8] sm:$0xff] }
 0x2fa   :  { %1657 = vmatpush1.bf16.msra.mxu0 %v959_v3  ;;  %1821 = vmatpush1.bf16.msra.mxu1 %v961_v1  ;;  %v1063_v3 = vld [vmem:[#allocation2 + $0xae0] sm:$0xff]  ;;  %v1065_v1 = vld [vmem:[#allocation2 + $0xaf0] sm:$0xff] }
 0x2fb   :  { %1658 = vmatprep.subr.bf16.mxu0 %v968_v5  ;;  %1822 = vmatprep.subr.bf16.mxu1 %v970_v4  ;;  %v1072_v5 = vld [vmem:[#allocation2 + $0xb28] sm:$0xff]  ;;  %v1074_v4 = vld [vmem:[#allocation2 + $0xb38] sm:$0xff] }
 0x2fe   :  { %1659 = vmatpush1.bf16.msra.mxu0 %v967_v7  ;;  %1823 = vmatpush1.bf16.msra.mxu1 %v969_v22  ;;  %v1071_v7 = vld [vmem:[#allocation2 + $0xb20] sm:$0xff]  ;;  %v1073_v22 = vld [vmem:[#allocation2 + $0xb30] sm:$0xff] }
 0x2ff   :  { %1669 = vmatprep.subr.bf16.mxu0 %v976_v8  ;;  %1833 = vmatprep.subr.bf16.mxu1 %v978_v34  ;;  %v1080_v8 = vld [vmem:[#allocation2 + $0xb68] sm:$0xff]  ;;  %v1082_v34 = vld [vmem:[#allocation2 + $0xb78] sm:$0xff] }
 0x301   :  { %1661 = vmatmul.mubr.bf16.vlgmr.msra.gmra.mrb[12].mxu0 %v3125_v46  ;;  %1825 = vmatmul.mubr.bf16.vlgmr.msra.gmra.mrb[12].mxu1 %v3125_v46  ;;  %v1002_v46 = vld [vmem:[#allocation2 + $0x8f8] sm:$0xff] }
 0x302   :  { %1670 = vmatpush1.bf16.msra.mxu0 %v975_v44  ;;  %1834 = vmatpush1.bf16.msra.mxu1 %v977_v50  ;;  %v1079_v44 = vld [vmem:[#allocation2 + $0xb60] sm:$0xff]  ;;  %v1081_v50 = vld [vmem:[#allocation2 + $0xb70] sm:$0xff] }
 0x303   :  { %1671 = vmatprep.subr.bf16.mxu0 %v984_v26  ;;  %1835 = vmatprep.subr.bf16.mxu1 %v986_v6  ;;  %v1088_v26 = vld [vmem:[#allocation2 + $0xba8] sm:$0xff]  ;;  %v1090_v6 = vld [vmem:[#allocation2 + $0xbb8] sm:$0xff] }
 0x304   :  { %1701 = vmatprep.mubr.bf16.mxu0 %v3129_v49  ;;  %1865 = vmatprep.mubr.bf16.mxu1 %v3129_v49  ;;  %v1007_v49 = vld [vmem:[#allocation2 + $0x920] sm:$0xff] }
 0x306   :  { %1672 = vmatpush1.bf16.msra.mxu0 %v983_v11  ;;  %1836 = vmatpush1.bf16.msra.mxu1 %v985_v12  ;;  %v1087_v11 = vld [vmem:[#allocation2 + $0xba0] sm:$0xff]  ;;  %v1089_v12 = vld [vmem:[#allocation2 + $0xbb0] sm:$0xff] }
 0x307   :  { %1673 = vmatprep.subr.bf16.mxu0 %v992_v10  ;;  %1837 = vmatprep.subr.bf16.mxu1 %v994_v58  ;;  %v1096_v10 = vld [vmem:[#allocation2 + $0xbe8] sm:$0xff]  ;;  %v1098_v58 = vld [vmem:[#allocation2 + $0xbf8] sm:$0xff] }
 0x30a   :  { %1674 = vmatpush1.bf16.msra.mxu0 %v991_v14  ;;  %1838 = vmatpush1.bf16.msra.mxu1 %v993_v15  ;;  %v1095_v14 = vld [vmem:[#allocation2 + $0xbe0] sm:$0xff]  ;;  %v1097_v15 = vld [vmem:[#allocation2 + $0xbf0] sm:$0xff] }
 0x30b   :  { %1675 = vmatprep.subr.bf16.mxu0 %v1000_v16  ;;  %1839 = vmatprep.subr.bf16.mxu1 %v1002_v46  ;;  %v1104_v16 = vld [vmem:[#allocation2 + $0xc28] sm:$0xff]  ;;  %v1106_v46 = vld [vmem:[#allocation2 + $0xc38] sm:$0xff] }
 0x30e   :  { %1676 = vmatpush1.bf16.msra.mxu0 %v999_v33  ;;  %1840 = vmatpush1.bf16.msra.mxu1 %v1001_v17  ;;  %v1103_v33 = vld [vmem:[#allocation2 + $0xc20] sm:$0xff]  ;;  %v1105_v17 = vld [vmem:[#allocation2 + $0xc30] sm:$0xff] }
 0x30f   :  { %1677 = vmatprep.subr.bf16.mxu0 %v1008_v19  ;;  %1841 = vmatprep.subr.bf16.mxu1 %v1010_v20  ;;  %v1112_v19 = vld [vmem:[#allocation2 + $0xc68] sm:$0xff]  ;;  %v1114_v20 = vld [vmem:[#allocation2 + $0xc78] sm:$0xff] }
 0x312   :  { %1678 = vmatpush1.bf16.msra.mxu0 %v1007_v49  ;;  %1842 = vmatpush1.bf16.msra.mxu1 %v1009_v56  ;;  %v1111_v49 = vld [vmem:[#allocation2 + $0xc60] sm:$0xff]  ;;  %v1113_v56 = vld [vmem:[#allocation2 + $0xc70] sm:$0xff] }
 0x313   :  { %1679 = vmatprep.subr.bf16.mxu0 %v1016_v23  ;;  %1843 = vmatprep.subr.bf16.mxu1 %v1018_v61  ;;  %v1120_v23 = vld [vmem:[#allocation2 + $0xca8] sm:$0xff]  ;;  %v1122_v61 = vld [vmem:[#allocation2 + $0xcb8] sm:$0xff] }
 0x316   :  { %1680 = vmatpush1.bf16.msra.mxu0 %v1015_v24  ;;  %1844 = vmatpush1.bf16.msra.mxu1 %v1017_v25  ;;  %v1119_v24 = vld [vmem:[#allocation2 + $0xca0] sm:$0xff]  ;;  %v1121_v25 = vld [vmem:[#allocation2 + $0xcb0] sm:$0xff] }
 0x317   :  { %1681 = vmatprep.subr.bf16.mxu0 %v1024_v28  ;;  %1845 = vmatprep.subr.bf16.mxu1 %v1026_v31  ;;  %v1128_v28 = vld [vmem:[#allocation2 + $0xce8] sm:$0xff]  ;;  %v1127_v31 = vld [vmem:[#allocation2 + $0xce0] sm:$0xff] }
 0x31a   :  { %1682 = vmatpush1.bf16.msra.mxu0 %v1023_v62  ;;  %1846 = vmatpush1.bf16.msra.mxu1 %v1025_v30  ;;  %v1129_v62 = vld [vmem:[#allocation2 + $0xcf0] sm:$0xff]  ;;  %v1136_v30 = vld [vmem:[#allocation2 + $0xd28] sm:$0xff] }
 0x31b   :  { %1683 = vmatprep.subr.bf16.mxu0 %v1032_v43  ;;  %1847 = vmatprep.subr.bf16.mxu1 %v1034_v32  ;;  %v1138_v43 = vld [vmem:[#allocation2 + $0xd38] sm:$0xff]  ;;  %v3168_v32 = vsub.s32 3, %v2958_v36 }
 0x31e   :  { %1684 = vmatpush1.bf16.msra.mxu0 %v1031_v63  ;;  %1848 = vmatpush1.bf16.msra.mxu1 %v1033_v2  ;;  %v1137_v63 = vld [vmem:[#allocation2 + $0xd30] sm:$0xff]  ;;  %v1144_v2 = vld [vmem:[#allocation2 + $0xd68] sm:$0xff] }
 0x31f   :  { %1685 = vmatprep.subr.bf16.mxu0 %v1040_v35  ;;  %1849 = vmatprep.subr.bf16.mxu1 %v1042_v48  ;;  %v1146_v35 = vld [vmem:[#allocation2 + $0xd78] sm:$0xff]  ;;  %v1230_v48 = vrot.slane %v2961_v38, %v3168_v32 }
 0x322   :  { %1686 = vmatpush1.bf16.msra.mxu0 %v1039_v37  ;;  %1850 = vmatpush1.bf16.msra.mxu1 %v1041_v42  ;;  %v1238_v37 = vrot.slane %v2963_v39, %v3168_v32  ;;  %v1234_v42 = vrot.slane %v2965_v40, %v3168_v32 }
 0x323   :  { %1687 = vmatprep.subr.bf16.mxu0 %v1048_v45  ;;  %1851 = vmatprep.subr.bf16.mxu1 %v1050_v47  ;;  %v1242_v45 = vrot.slane %v2967_v41, %v3168_v32  ;;  %v1143_v47 = vld [vmem:[#allocation2 + $0xd60] sm:$0xff] }
 0x326   :  { %1688 = vmatpush1.bf16.msra.mxu0 %v1047_v51  ;;  %1852 = vmatpush1.bf16.msra.mxu1 %v1049_v52  ;;  %v1145_v51 = vld [vmem:[#allocation2 + $0xd70] sm:$0xff] }
 0x327   :  { %1689 = vmatprep.subr.bf16.mxu0 %v1056_v29  ;;  %1853 = vmatprep.subr.bf16.mxu1 %v1058_v57  ;;  %v1152_v57 = vld [vmem:[#allocation2 + $0xda8] sm:$0xff] }
 0x32a   :  { %1690 = vmatpush1.bf16.msra.mxu0 %v1055_v21  ;;  %1854 = vmatpush1.bf16.msra.mxu1 %v1057_v53  ;;  %v1154_v21 = vld [vmem:[#allocation2 + $0xdb8] sm:$0xff] }
 0x32b   :  { %1691 = vmatprep.subr.bf16.mxu0 %v1064_v27  ;;  %1855 = vmatprep.subr.bf16.mxu1 %v1066_v59 }
 0x32e   :  { %1692 = vmatpush1.bf16.msra.mxu0 %v1063_v3  ;;  %1856 = vmatpush1.bf16.msra.mxu1 %v1065_v1 }
 0x32f   :  { %1693 = vmatprep.subr.bf16.mxu0 %v1072_v5  ;;  %1857 = vmatprep.subr.bf16.mxu1 %v1074_v4 }
 0x332   :  { %1694 = vmatpush1.bf16.msra.mxu0 %v1071_v7  ;;  %1858 = vmatpush1.bf16.msra.mxu1 %v1073_v22 }
 0x333   :  { %1695 = vmatprep.subr.bf16.mxu0 %v1080_v8  ;;  %1859 = vmatprep.subr.bf16.mxu1 %v1082_v34 }
 0x336   :  { %1696 = vmatpush1.bf16.msra.mxu0 %v1079_v44  ;;  %1860 = vmatpush1.bf16.msra.mxu1 %v1081_v50  ;;  %v1151_v50 = vld [vmem:[#allocation2 + $0xda0] sm:$0xff] }
 0x337   :  { %1697 = vmatprep.subr.bf16.mxu0 %v1088_v26  ;;  %1861 = vmatprep.subr.bf16.mxu1 %v1090_v6  ;;  %v1153_v26 = vld [vmem:[#allocation2 + $0xdb0] sm:$0xff] }
 0x33a   :  { %1698 = vmatpush1.bf16.msra.mxu0 %v1087_v11  ;;  %1862 = vmatpush1.bf16.msra.mxu1 %v1089_v12  ;;  %v1160_v12 = vld [vmem:[#allocation2 + $0xde8] sm:$0xff] }
 0x33b   :  { %1699 = vmatprep.subr.bf16.mxu0 %v1096_v10  ;;  %1863 = vmatprep.subr.bf16.mxu1 %v1098_v58  ;;  %v1162_v10 = vld [vmem:[#allocation2 + $0xdf8] sm:$0xff] }
 0x33e   :  { %1700 = vmatpush1.bf16.msra.mxu0 %v1095_v14  ;;  %1864 = vmatpush1.bf16.msra.mxu1 %v1097_v15 }
 0x33f   :  { %1710 = vmatprep.subr.bf16.mxu0 %v1104_v16  ;;  %1874 = vmatprep.subr.bf16.mxu1 %v1106_v46 }
 0x341   :  { %1702 = vmatmul.mubr.bf16.vlgmr.msra.gmra.mrb[12].mxu0 %v3137_v9  ;;  %1866 = vmatmul.mubr.bf16.vlgmr.msra.gmra.mrb[12].mxu1 %v3137_v9  ;;  %v1130_v9 = vld [vmem:[#allocation2 + $0xcf8] sm:$0xff] }
 0x342   :  { %1711 = vmatpush1.bf16.msra.mxu0 %v1103_v33  ;;  %1875 = vmatpush1.bf16.msra.mxu1 %v1105_v17  ;;  %v1159_v17 = vld [vmem:[#allocation2 + $0xde0] sm:$0xff] }
 0x343   :  { %1712 = vmatprep.subr.bf16.mxu0 %v1112_v19  ;;  %1876 = vmatprep.subr.bf16.mxu1 %v1114_v20  ;;  %v1161_v19 = vld [vmem:[#allocation2 + $0xdf0] sm:$0xff] }
 0x344   :  { %1742 = vmatprep.mubr.bf16.mxu0 %v3141_v13  ;;  %1906 = vmatprep.mubr.bf16.mxu1 %v3141_v13  ;;  %v1135_v13 = vld [vmem:[#allocation2 + $0xd20] sm:$0xff] }
 0x346   :  { %1713 = vmatpush1.bf16.msra.mxu0 %v1111_v49  ;;  %1877 = vmatpush1.bf16.msra.mxu1 %v1113_v56  ;;  %v1168_v56 = vld [vmem:[#allocation2 + $0xe28] sm:$0xff] }
 0x347   :  { %1714 = vmatprep.subr.bf16.mxu0 %v1120_v23  ;;  %1878 = vmatprep.subr.bf16.mxu1 %v1122_v61  ;;  %v1170_v23 = vld [vmem:[#allocation2 + $0xe38] sm:$0xff] }
 0x34a   :  { %1715 = vmatpush1.bf16.msra.mxu0 %v1119_v24  ;;  %1879 = vmatpush1.bf16.msra.mxu1 %v1121_v25 }
 0x34b   :  { %1716 = vmatprep.subr.bf16.mxu0 %v1128_v28  ;;  %1880 = vmatprep.subr.bf16.mxu1 %v1130_v9 }
 0x34e   :  { %1717 = vmatpush1.bf16.msra.mxu0 %v1127_v31  ;;  %1881 = vmatpush1.bf16.msra.mxu1 %v1129_v62  ;;  %v1167_v62 = vld [vmem:[#allocation2 + $0xe20] sm:$0xff] }
 0x34f   :  { %1718 = vmatprep.subr.bf16.mxu0 %v1136_v30  ;;  %1882 = vmatprep.subr.bf16.mxu1 %v1138_v43  ;;  %v1169_v30 = vld [vmem:[#allocation2 + $0xe30] sm:$0xff] }
 0x352   :  { %1719 = vmatpush1.bf16.msra.mxu0 %v1135_v13  ;;  %1883 = vmatpush1.bf16.msra.mxu1 %v1137_v63  ;;  %v1176_v63 = vld [vmem:[#allocation2 + $0xe68] sm:$0xff] }
 0x353   :  { %1720 = vmatprep.subr.bf16.mxu0 %v1144_v2  ;;  %1884 = vmatprep.subr.bf16.mxu1 %v1146_v35  ;;  %v1178_v2 = vld [vmem:[#allocation2 + $0xe78] sm:$0xff] }
 0x354   :  { %v1416_v52 = vpop.f32.mrb[8].mxu0  ;;  %v1580_v29 = vpop.f32.mrb[8].mxu1 }
 0x355   :  { %v2581_v53 = vadd.f32 %v1416_v52, %v1230_v48  ;;  %v2583_v27 = vadd.f32 %v1580_v29, %v1238_v37  ;;  %v1418_v59 = vpop.f32.mrb[9].mxu0  ;;  %v1582_v3 = vpop.f32.mrb[9].mxu1  ;;  %v1177_v52 = vld [vmem:[#allocation2 + $0xe70] sm:$0xff] }
 0x356   :  { %v2582_v1 = vadd.f32 %v1418_v59, %v1234_v42  ;;  %v2584_v5 = vadd.f32 %v1582_v3, %v1242_v45  ;;  %v1420_v4 = vpop.f32.mrb[10].mxu0  ;;  %v1584_v7 = vpop.f32.mrb[10].mxu1  ;;  %1721 = vmatpush1.bf16.msra.mxu0 %v1143_v47  ;;  %1885 = vmatpush1.bf16.msra.mxu1 %v1145_v51  ;;  %v1175_v51 = vld [vmem:[#allocation2 + $0xe60] sm:$0xff] }
 0x357   :  { %v3178_v22 = vmax.f32 %v2581_v53, 0.0  ;;  %v3180_v8 = vmax.f32 %v2583_v27, 0.0  ;;  %v1421_v34 = vpop.f32.mrb[11].mxu0  ;;  %v1585_v44 = vpop.f32.mrb[11].mxu1  ;;  %1722 = vmatprep.subr.bf16.mxu0 %v1152_v57  ;;  %1886 = vmatprep.subr.bf16.mxu1 %v1154_v21  ;;  %v1184_v21 = vld [vmem:[#allocation2 + $0xea8] sm:$0xff]  ;;  %v1186_v53 = vld [vmem:[#allocation2 + $0xeb8] sm:$0xff] }
 0x358   :  { %v3182_v6 = vmax.f32 %v2582_v1, 0.0  ;;  %v3184_v11 = vmax.f32 %v2584_v5, 0.0  ;;  %v1183_v7 = vld [vmem:[#allocation2 + $0xea0] sm:$0xff]  ;;  %v1185_v34 = vld [vmem:[#allocation2 + $0xeb0] sm:$0xff] }
 0x359   :  { %v1923_v58 = vrot.slane %v3178_v22, 4  ;;  %v1935_v14 = vrot.slane %v3180_v8, 4 }
 0x35a   :  { %v1929_v15 = vrot.slane %v3182_v6, 4  ;;  %v1941_v16 = vrot.slane %v3184_v11, 4  ;;  %1723 = vmatpush1.bf16.msra.mxu0 %v1151_v50  ;;  %1887 = vmatpush1.bf16.msra.mxu1 %v1153_v26  ;;  %v1192_v26 = vld [vmem:[#allocation2 + $0xee8] sm:$0xff] }
 0x35b   :  { %v1924_v46 = vadd.f32 %v1923_v58, %v3178_v22  ;;  %v1936_v33 = vadd.f32 %v1935_v14, %v3180_v8  ;;  %1724 = vmatprep.subr.bf16.mxu0 %v1160_v12  ;;  %1888 = vmatprep.subr.bf16.mxu1 %v1162_v10  ;;  %v1194_v12 = vld [vmem:[#allocation2 + $0xef8] sm:$0xff] }
 0x35c   :  { %v1930_v20 = vadd.f32 %v1929_v15, %v3182_v6  ;;  %v1942_v49 = vadd.f32 %v1941_v16, %v3184_v11 }
 0x35d   :  { %v1925_v61 = vrot.slane %v1924_v46, 2  ;;  %v1937_v24 = vrot.slane %v1936_v33, 2 }
 0x35e   :  { %v1931_v25 = vrot.slane %v1930_v20, 2  ;;  %v1943_v28 = vrot.slane %v1942_v49, 2  ;;  %1725 = vmatpush1.bf16.msra.mxu0 %v1159_v17  ;;  %1889 = vmatpush1.bf16.msra.mxu1 %v1161_v19  ;;  %v1193_v17 = vld [vmem:[#allocation2 + $0xef0] sm:$0xff] }
 0x35f   :  { %v1926_v9 = vadd.f32 %v1925_v61, %v1924_v46  ;;  %v1938_v31 = vadd.f32 %v1937_v24, %v1936_v33  ;;  %1726 = vmatprep.subr.bf16.mxu0 %v1168_v56  ;;  %1890 = vmatprep.subr.bf16.mxu1 %v1170_v23  ;;  %v1191_v33 = vld [vmem:[#allocation2 + $0xee0] sm:$0xff]  ;;  %v1202_v56 = vld [vmem:[#allocation2 + $0xf38] sm:$0xff] }
 0x360   :  { %v1932_v43 = vadd.f32 %v1931_v25, %v1930_v20  ;;  %v1944_v13 = vadd.f32 %v1943_v28, %v1942_v49  ;;  %v1200_v49 = vld [vmem:[#allocation2 + $0xf28] sm:$0xff] }
 0x361   :  { %v1927_v35 = vrot.slane %v1926_v9, 1  ;;  %v1939_v48 = vrot.slane %v1938_v31, 1 }
 0x362   :  { %v1933_v37 = vrot.slane %v1932_v43, 1  ;;  %v1945_v42 = vrot.slane %v1944_v13, 1  ;;  %1727 = vmatpush1.bf16.msra.mxu0 %v1167_v62  ;;  %1891 = vmatpush1.bf16.msra.mxu1 %v1169_v30  ;;  %v1201_v62 = vld [vmem:[#allocation2 + $0xf30] sm:$0xff] }
 0x363   :  { %v1928_v45 = vadd.f32 %v1927_v35, %v1926_v9  ;;  %v1940_v47 = vadd.f32 %v1939_v48, %v1938_v31  ;;  %1728 = vmatprep.subr.bf16.mxu0 %v1176_v63  ;;  %1892 = vmatprep.subr.bf16.mxu1 %v1178_v2  ;;  %v1199_v31 = vld [vmem:[#allocation2 + $0xf20] sm:$0xff]  ;;  %v1210_v63 = vld [vmem:[#allocation2 + $0xf78] sm:$0xff] }
 0x364   :  { %v1934_v29 = vadd.f32 %v1933_v37, %v1932_v43  ;;  %v1946_v57 = vadd.f32 %v1945_v42, %v1944_v13  ;;  %v1208_v13 = vld [vmem:[#allocation2 + $0xf68] sm:$0xff] }
 0x365   :  { %v3194_v27 = vmul.f32 0.125, %v1928_v45  ;;  %v3196_v59 = vmul.f32 0.125, %v1940_v47  ;;  %v1207_v47 = vld [vmem:[#allocation2 + $0xf60] sm:$0xff] }
 0x366   :  { %v3198_v3 = vmul.f32 0.125, %v1934_v29  ;;  %v3200_v1 = vmul.f32 0.125, %v1946_v57  ;;  %1729 = vmatpush1.bf16.msra.mxu0 %v1175_v51  ;;  %1893 = vmatpush1.bf16.msra.mxu1 %v1177_v52  ;;  %v1209_v51 = vld [vmem:[#allocation2 + $0xf70] sm:$0xff]  ;;  %v1216_v57 = vld [vmem:[#allocation2 + $0xfa8] sm:$0xff] }
 0x367   :  { %v1979_v5 = vsub.f32 %v3178_v22, %v3194_v27  ;;  %v1981_v4 = vsub.f32 %v3180_v8, %v3196_v59  ;;  %1730 = vmatprep.subr.bf16.mxu0 %v1184_v21  ;;  %1894 = vmatprep.subr.bf16.mxu1 %v1186_v53  ;;  %v1218_v21 = vld [vmem:[#allocation2 + $0xfb8] sm:$0xff] }
 0x368   :  { %v1980_v44 = vsub.f32 %v3182_v6, %v3198_v3  ;;  %v1982_v50 = vsub.f32 %v3184_v11, %v3200_v1 }
 0x369   :  { %v1987_v10 = vmul.f32 %v1979_v5, %v1979_v5  ;;  %v1989_v58 = vmul.f32 %v1981_v4, %v1981_v4 }
 0x36a   :  { %v1988_v14 = vmul.f32 %v1980_v44, %v1980_v44  ;;  %v1990_v15 = vmul.f32 %v1982_v50, %v1982_v50  ;;  %1731 = vmatpush1.bf16.msra.mxu0 %v1183_v7  ;;  %1895 = vmatpush1.bf16.msra.mxu1 %v1185_v34  ;;  %v1215_v50 = vld [vmem:[#allocation2 + $0xfa0] sm:$0xff] }
 0x36b   :  { %v1995_v16 = vrot.slane %v1987_v10, 4  ;;  %v2007_v46 = vrot.slane %v1989_v58, 4  ;;  %1732 = vmatprep.subr.bf16.mxu0 %v1192_v26  ;;  %1896 = vmatprep.subr.bf16.mxu1 %v1194_v12  ;;  %v1217_v26 = vld [vmem:[#allocation2 + $0xfb0] sm:$0xff] }
 0x36c   :  { %v2001_v19 = vrot.slane %v1988_v14, 4  ;;  %v2013_v20 = vrot.slane %v1990_v15, 4 }
 0x36d   :  { %v1996_v23 = vadd.f32 %v1995_v16, %v1987_v10  ;;  %v2008_v61 = vadd.f32 %v2007_v46, %v1989_v58  ;;  %v1224_v58 = vld [vmem:[#allocation2 + $0xfe8] sm:$0xff] }
 0x36e   :  { %v2002_v24 = vadd.f32 %v2001_v19, %v1988_v14  ;;  %v2014_v25 = vadd.f32 %v2013_v20, %v1990_v15  ;;  %1733 = vmatpush1.bf16.msra.mxu0 %v1191_v33  ;;  %1897 = vmatpush1.bf16.msra.mxu1 %v1193_v17  ;;  %v1226_v14 = vld [vmem:[#allocation2 + $0xff8] sm:$0xff]  ;;  %v1223_v17 = vld [vmem:[#allocation2 + $0xfe0] sm:$0xff]  ;;  %v1225_v19 = vld [vmem:[#allocation2 + $0xff0] sm:$0xff] }
 0x36f   :  { %v1997_v28 = vrot.slane %v1996_v23, 2  ;;  %v2009_v9 = vrot.slane %v2008_v61, 2  ;;  %1734 = vmatprep.subr.bf16.mxu0 %v1200_v49  ;;  %1898 = vmatprep.subr.bf16.mxu1 %v1202_v56 }
 0x370   :  { %v2003_v30 = vrot.slane %v2002_v24, 2  ;;  %v2015_v43 = vrot.slane %v2014_v25, 2 }
 0x371   :  { %v1998_v2 = vadd.f32 %v1997_v28, %v1996_v23  ;;  %v2010_v35 = vadd.f32 %v2009_v9, %v2008_v61  ;;  %v3214_v23 = vsub.s32 4, %v2958_v36 }
 0x372   :  { %v2004_v48 = vadd.f32 %v2003_v30, %v2002_v24  ;;  %v2016_v37 = vadd.f32 %v2015_v43, %v2014_v25  ;;  %1735 = vmatpush1.bf16.msra.mxu0 %v1199_v31  ;;  %1899 = vmatpush1.bf16.msra.mxu1 %v1201_v62  ;;  %v3223_v43 = vsub.s32 5, %v2958_v36 }
 0x373   :  { %v1999_v42 = vrot.slane %v1998_v2, 1  ;;  %v2011_v45 = vrot.slane %v2010_v35, 1  ;;  %1736 = vmatprep.subr.bf16.mxu0 %v1208_v13  ;;  %1900 = vmatprep.subr.bf16.mxu1 %v1210_v63 }
 0x374   :  { %v2005_v52 = vrot.slane %v2004_v48, 1  ;;  %v2017_v29 = vrot.slane %v2016_v37, 1 }
 0x375   :  { %v2000_v53 = vadd.f32 %v1999_v42, %v1998_v2  ;;  %v2012_v5 = vadd.f32 %v2011_v45, %v2010_v35 }
 0x376   :  { %v2006_v4 = vadd.f32 %v2005_v52, %v2004_v48  ;;  %v2018_v7 = vadd.f32 %v2017_v29, %v2016_v37  ;;  %1737 = vmatpush1.bf16.msra.mxu0 %v1207_v47  ;;  %1901 = vmatpush1.bf16.msra.mxu1 %v1209_v51 }
 0x377   :  { %v2043_v34 = vmul.f32 0.125, %v2000_v53  ;;  %v2045_v44 = vmul.f32 0.125, %v2012_v5  ;;  %1738 = vmatprep.subr.bf16.mxu0 %v1216_v57  ;;  %1902 = vmatprep.subr.bf16.mxu1 %v1218_v21  ;;  %v1258_v5 = vrot.slane %v2985_v0, %v3168_v32 }
 0x378   :  { %v2044_v12 = vmul.f32 0.125, %v2006_v4  ;;  %v2046_v10 = vmul.f32 0.125, %v2018_v7 }
 0x379   :  { %v2051_v15 = vadd.f32 1e-05, %v2043_v34  ;;  %v2053_v16 = vadd.f32 1e-05, %v2045_v44 }
 0x37a   :  { %v2052_v46 = vadd.f32 1e-05, %v2044_v12  ;;  %v2054_v33 = vadd.f32 1e-05, %v2046_v10  ;;  %1739 = vmatpush1.bf16.msra.mxu0 %v1215_v50  ;;  %1903 = vmatpush1.bf16.msra.mxu1 %v1217_v26 }
 0x37b   :  { %2671 = vrsqrt.f32 %v2051_v15  ;;  %1740 = vmatprep.subr.bf16.mxu0 %v1224_v58  ;;  %1904 = vmatprep.subr.bf16.mxu1 %v1226_v14 }
 0x37c   :  { %2673 = vrsqrt.f32 %v2053_v16 }
 0x37d   :  { %2675 = vrsqrt.f32 %v2052_v46 }
 0x37e   :  { %2677 = vrsqrt.f32 %v2054_v33  ;;  %1741 = vmatpush1.bf16.msra.mxu0 %v1223_v17  ;;  %1905 = vmatpush1.bf16.msra.mxu1 %v1225_v19 }
 0x381   :  { %1743 = vmatmul.mubr.bf16.vlgmr.msra.gmra.mrb[12].mxu0 %v3149_v18  ;;  %1907 = vmatmul.mubr.bf16.vlgmr.msra.gmra.mrb[12].mxu1 %v3149_v18 }
 0x385   :  { %v2672_v20 = vpop.eup %2671 }
 0x386   :  { %v2674_v49 = vpop.eup %2673  ;;  %v2067_v56 = vmul.f32 %v2672_v20, %v2961_v38 }
 0x387   :  { %v2676_v61 = vpop.eup %2675  ;;  %v2069_v24 = vmul.f32 %v2674_v49, %v2963_v39 }
 0x388   :  { %v2678_v25 = vpop.eup %2677  ;;  %v2075_v28 = vmul.f32 %v2067_v56, %v3194_v27  ;;  %v2068_v9 = vmul.f32 %v2676_v61, %v2965_v40  ;;  %v2118_v30 = vrot.slane %v2067_v56, %v3214_v23 }
 0x389   :  { %v2077_v31 = vmul.f32 %v2069_v24, %v3196_v59  ;;  %v2070_v62 = vmul.f32 %v2678_v25, %v2967_v41  ;;  %v2126_v2 = vrot.slane %v2069_v24, %v3214_v23 }
 0x38a   :  { %v2091_v18 = vrot.slane %v2075_v28, 7  ;;  %v2076_v13 = vmul.f32 %v2068_v9, %v3198_v3  ;;  %v2122_v59 = vrot.slane %v2068_v9, %v3214_v23  ;;  %v2147_v36 = vmul.f32 %v2118_v30, %v3178_v22 }
 0x38b   :  { %v2093_v63 = vrot.slane %v2077_v31, 7  ;;  %v2078_v35 = vmul.f32 %v2070_v62, %v3200_v1  ;;  %v2130_v45 = vrot.slane %v2070_v62, %v3214_v23  ;;  %v2149_v51 = vmul.f32 %v2126_v2, %v3180_v8 }
 0x38c   :  { %v2107_v27 = vsub.f32 %v2961_v38, %v2091_v18  ;;  %v2092_v48 = vrot.slane %v2076_v13, 7  ;;  %v2148_v29 = vmul.f32 %v2122_v59, %v3182_v6  ;;  %v1246_v8 = vrot.slane %v2973_v54, %v3168_v32 }
 0x38d   :  { %v2109_v37 = vsub.f32 %v2963_v39, %v2093_v63  ;;  %v2094_v42 = vrot.slane %v2078_v35, 7  ;;  %v2150_v22 = vmul.f32 %v2130_v45, %v3184_v11  ;;  %v1250_v6 = vrot.slane %v2979_v60, %v3168_v32 }
 0x38e   :  { %v2158_v47 = vrot.slane %v2107_v27, %v3223_v43  ;;  %v2108_v3 = vsub.f32 %v2965_v40, %v2092_v48 }
 0x38f   :  { %v2166_v1 = vrot.slane %v2109_v37, %v3223_v43  ;;  %v2110_v38 = vsub.f32 %v2967_v41, %v2094_v42  ;;  %v1254_v41 = vrot.slane %v2975_v55, %v3168_v32 }
 0x390   :  { %v3238_v52 = vadd.f32 %v2158_v47, %v2147_v36  ;;  %v2162_v39 = vrot.slane %v2108_v3, %v3223_v43 }
 0x391   :  { %v3242_v57 = vadd.f32 %v2166_v1, %v2149_v51  ;;  %v2170_v21 = vrot.slane %v2110_v38, %v3223_v43 }
 0x392   :  { %v3246_v53 = vadd.f32 %v2162_v39, %v2148_v29 }
 0x393   :  { %v3248_v40 = vadd.f32 %v2170_v21, %v2150_v22 }
 0x454   :  { %v1744_v4 = vpop.f32.mrb[12].mxu0  ;;  %v1908_v11 = vpop.f32.mrb[12].mxu1 }
 0x455   :  { %v2585_v7 = vadd.f32 %v1744_v4, %v1246_v8  ;;  %v2587_v34 = vadd.f32 %v1908_v11, %v1254_v41  ;;  %v1746_v44 = vpop.f32.mrb[13].mxu0  ;;  %v1910_v50 = vpop.f32.mrb[13].mxu1 }
 0x456   :  { %v2586_v26 = vadd.f32 %v1746_v44, %v1250_v6  ;;  %v2588_v12 = vadd.f32 %v1910_v50, %v1258_v5  ;;  %v1748_v10 = vpop.f32.mrb[14].mxu0  ;;  %v1912_v58 = vpop.f32.mrb[14].mxu1 }
 0x457   :  { %v3258_v14 = vmax.f32 %v2585_v7, 0.0  ;;  %v3260_v15 = vmax.f32 %v2587_v34, 0.0  ;;  %v1749_v16 = vpop.f32.mrb[15].mxu0  ;;  %v1913_v46 = vpop.f32.mrb[15].mxu1 }
 0x458   :  { %v3262_v33 = vmax.f32 %v2586_v26, 0.0  ;;  %v3264_v17 = vmax.f32 %v2588_v12, 0.0 }
 0x459   :  { %v1947_v32 = vrot.slane %v3258_v14, 4  ;;  %v1959_v19 = vrot.slane %v3260_v15, 4 }
 0x45a   :  { %v1953_v20 = vrot.slane %v3262_v33, 4  ;;  %v1965_v49 = vrot.slane %v3264_v17, 4 }
 0x45b   :  { %v1948_v56 = vadd.f32 %v1947_v32, %v3258_v14  ;;  %v1960_v61 = vadd.f32 %v1959_v19, %v3260_v15 }
 0x45c   :  { %v1954_v24 = vadd.f32 %v1953_v20, %v3262_v33  ;;  %v1966_v25 = vadd.f32 %v1965_v49, %v3264_v17 }
 0x45d   :  { %v1949_v28 = vrot.slane %v1948_v56, 2  ;;  %v1961_v9 = vrot.slane %v1960_v61, 2 }
 0x45e   :  { %v1955_v31 = vrot.slane %v1954_v24, 2  ;;  %v1967_v62 = vrot.slane %v1966_v25, 2 }
 0x45f   :  { %v1950_v18 = vadd.f32 %v1949_v28, %v1948_v56  ;;  %v1962_v30 = vadd.f32 %v1961_v9, %v1960_v61 }
 0x460   :  { %v1956_v13 = vadd.f32 %v1955_v31, %v1954_v24  ;;  %v1968_v63 = vadd.f32 %v1967_v62, %v1966_v25 }
 0x461   :  { %v1951_v2 = vrot.slane %v1950_v18, 1  ;;  %v1963_v35 = vrot.slane %v1962_v30, 1 }
 0x462   :  { %v1957_v27 = vrot.slane %v1956_v13, 1  ;;  %v1969_v48 = vrot.slane %v1968_v63, 1 }
 0x463   :  { %v1952_v59 = vadd.f32 %v1951_v2, %v1950_v18  ;;  %v1964_v37 = vadd.f32 %v1963_v35, %v1962_v30 }
 0x464   :  { %v1958_v42 = vadd.f32 %v1957_v27, %v1956_v13  ;;  %v1970_v45 = vadd.f32 %v1969_v48, %v1968_v63 }
 0x465   :  { %v1975_v36 = vmul.f32 0.125, %v1952_v59  ;;  %v1977_v47 = vmul.f32 0.125, %v1964_v37 }
 0x466   :  { %v1976_v3 = vmul.f32 0.125, %v1958_v42  ;;  %v1978_v51 = vmul.f32 0.125, %v1970_v45 }
 0x467   :  { %v1983_v1 = vsub.f32 %v3258_v14, %v1975_v36  ;;  %v1985_v38 = vsub.f32 %v3260_v15, %v1977_v47 }
 0x468   :  { %v1984_v29 = vsub.f32 %v3262_v33, %v1976_v3  ;;  %v1986_v39 = vsub.f32 %v3264_v17, %v1978_v51 }
 0x469   :  { %v1991_v22 = vmul.f32 %v1983_v1, %v1983_v1  ;;  %v1993_v21 = vmul.f32 %v1985_v38, %v1985_v38 }
 0x46a   :  { %v1992_v8 = vmul.f32 %v1984_v29, %v1984_v29  ;;  %v1994_v41 = vmul.f32 %v1986_v39, %v1986_v39 }
 0x46b   :  { %v2019_v6 = vrot.slane %v1991_v22, 4  ;;  %v2031_v5 = vrot.slane %v1993_v21, 4 }
 0x46c   :  { %v2025_v4 = vrot.slane %v1992_v8, 4  ;;  %v2037_v11 = vrot.slane %v1994_v41, 4 }
 0x46d   :  { %v2020_v7 = vadd.f32 %v2019_v6, %v1991_v22  ;;  %v2032_v34 = vadd.f32 %v2031_v5, %v1993_v21 }
 0x46e   :  { %v2026_v44 = vadd.f32 %v2025_v4, %v1992_v8  ;;  %v2038_v50 = vadd.f32 %v2037_v11, %v1994_v41 }
 0x46f   :  { %v2021_v26 = vrot.slane %v2020_v7, 2  ;;  %v2033_v12 = vrot.slane %v2032_v34, 2 }
 0x470   :  { %v2027_v10 = vrot.slane %v2026_v44, 2  ;;  %v2039_v58 = vrot.slane %v2038_v50, 2 }
 0x471   :  { %v2022_v16 = vadd.f32 %v2021_v26, %v2020_v7  ;;  %v2034_v46 = vadd.f32 %v2033_v12, %v2032_v34 }
 0x472   :  { %v2028_v32 = vadd.f32 %v2027_v10, %v2026_v44  ;;  %v2040_v19 = vadd.f32 %v2039_v58, %v2038_v50 }
 0x473   :  { %v2023_v20 = vrot.slane %v2022_v16, 1  ;;  %v2035_v49 = vrot.slane %v2034_v46, 1 }
 0x474   :  { %v2029_v56 = vrot.slane %v2028_v32, 1  ;;  %v2041_v61 = vrot.slane %v2040_v19, 1 }
 0x475   :  { %v2024_v24 = vadd.f32 %v2023_v20, %v2022_v16  ;;  %v2036_v25 = vadd.f32 %v2035_v49, %v2034_v46 }
 0x476   :  { %v2030_v28 = vadd.f32 %v2029_v56, %v2028_v32  ;;  %v2042_v9 = vadd.f32 %v2041_v61, %v2040_v19 }
 0x477   :  { %v2047_v31 = vmul.f32 0.125, %v2024_v24  ;;  %v2049_v62 = vmul.f32 0.125, %v2036_v25 }
 0x478   :  { %v2048_v18 = vmul.f32 0.125, %v2030_v28  ;;  %v2050_v30 = vmul.f32 0.125, %v2042_v9 }
 0x479   :  { %v2055_v13 = vadd.f32 1e-05, %v2047_v31  ;;  %v2057_v63 = vadd.f32 1e-05, %v2049_v62 }
 0x47a   :  { %v2056_v2 = vadd.f32 1e-05, %v2048_v18  ;;  %v2058_v35 = vadd.f32 1e-05, %v2050_v30 }
 0x47b   :  { %2679 = vrsqrt.f32 %v2055_v13 }
 0x47c   :  { %2681 = vrsqrt.f32 %v2057_v63 }
 0x47d   :  { %2683 = vrsqrt.f32 %v2056_v2 }
 0x47e   :  { %2685 = vrsqrt.f32 %v2058_v35 }
 0x485   :  { %v2680_v27 = vpop.eup %2679 }
 0x486   :  { %v2682_v48 = vpop.eup %2681  ;;  %v2071_v59 = vmul.f32 %v2680_v27, %v2973_v54 }
 0x487   :  { %v2684_v37 = vpop.eup %2683  ;;  %v2073_v42 = vmul.f32 %v2682_v48, %v2975_v55 }
 0x488   :  { %v2686_v45 = vpop.eup %2685  ;;  %v2079_v1 = vmul.f32 %v2071_v59, %v1975_v36  ;;  %v2072_v38 = vmul.f32 %v2684_v37, %v2979_v60  ;;  %v2134_v21 = vrot.slane %v2071_v59, %v3214_v23 }
 0x489   :  { %v2081_v29 = vmul.f32 %v2073_v42, %v1977_v47  ;;  %v2074_v39 = vmul.f32 %v2686_v45, %v2985_v0  ;;  %v2142_v6 = vrot.slane %v2073_v42, %v3214_v23 }
 0x48a   :  { %v2095_v22 = vrot.slane %v2079_v1, 7  ;;  %v2080_v8 = vmul.f32 %v2072_v38, %v1976_v3  ;;  %v2138_v7 = vrot.slane %v2072_v38, %v3214_v23  ;;  %v2151_v44 = vmul.f32 %v2134_v21, %v3258_v14 }
 0x48b   :  { %v2097_v41 = vrot.slane %v2081_v29, 7  ;;  %v2082_v5 = vmul.f32 %v2074_v39, %v1978_v51  ;;  %v2146_v47 = vrot.slane %v2074_v39, %v3214_v23  ;;  %v2153_v26 = vmul.f32 %v2142_v6, %v3260_v15 }
 0x48c   :  { %v2111_v4 = vsub.f32 %v2973_v54, %v2095_v22  ;;  %v2096_v11 = vrot.slane %v2080_v8, 7  ;;  %v2152_v10 = vmul.f32 %v2138_v7, %v3262_v33 }
 0x48d   :  { %v2113_v36 = vsub.f32 %v2975_v55, %v2097_v41  ;;  %v2098_v34 = vrot.slane %v2082_v5, 7  ;;  %v2154_v23 = vmul.f32 %v2146_v47, %v3264_v17 }
 0x48e   :  { %v2174_v50 = vrot.slane %v2111_v4, %v3223_v43  ;;  %v2112_v3 = vsub.f32 %v2979_v60, %v2096_v11 }
 0x48f   :  { %v2182_v51 = vrot.slane %v2113_v36, %v3223_v43  ;;  %v2114_v54 = vsub.f32 %v2985_v0, %v2098_v34 }
 0x490   :  { %v3294_v12 = vadd.f32 %v2174_v50, %v2151_v44  ;;  %v2178_v55 = vrot.slane %v2112_v3, %v3223_v43 }
 0x491   :  { %v3298_v58 = vadd.f32 %v2182_v51, %v2153_v26  ;;  %v2186_v14 = vrot.slane %v2114_v54, %v3223_v43 }
 0x492   :  { %v3302_v16 = vadd.f32 %v2178_v55, %v2152_v10 }
 0x493   :  { %v3304_v60 = vadd.f32 %v2186_v14, %v2154_v23 }
 0x494   :  { %2827 = dma.done.wait [#allocation4 + $0x1], 8192 }
 0x495   :  { %2828 = vsyncadd [#allocation4 + $0x1], 4294959104  ;;  %v2199_v0 = vpack.c.bf16 %v3246_v53, %v3246_v53  ;;  %v2201_v15 = vpack.c.bf16 %v3248_v40, %v3248_v40  ;;  %v2214_v33 = vld [vmem:[#allocation3 + $0x40] sm:$0xff]  ;;  %v2215_v17 = vld [vmem:[#allocation3 + $0x48] sm:$0xff]  ;;  %v2198_v22 = vpack.c.bf16 %v3238_v52, %v3238_v52  ;;  %v2200_v21 = vpack.c.bf16 %v3242_v57, %v3242_v57  ;;  %s2848_s5 = smov [#allocation13]  }
 0x496   :  { %v2230_v46 = vld [vmem:[#allocation3 + $0xc0] sm:$0xff]  ;;  %2493 = vmatprep.subr.bf16.mxu0 %v2214_v33  ;;  %v2231_v19 = vld [vmem:[#allocation3 + $0xc8] sm:$0xff]  ;;  %v2216_v53 = vld [vmem:[#allocation3 + $0x50] sm:$0xff]  ;;  %v2203_v4 = vpack.c.bf16 %v3302_v16, %v3302_v16  ;;  %v2205_v11 = vpack.c.bf16 %v3304_v60, %v3304_v60  ;;  %s2444_s14 = sshll.u32 %s2848_s5, 4  ;;  %s2445_s14 = int_to_ptr.vmem [resolvable:$true] %s2444_s14 }
 0x497   :  { %2309 = vmatprep.mubr.bf16.mxu0 %v2199_v0  ;;  %2349 = vmatprep.mubr.bf16.mxu1 %v2201_v15  ;;  %v2206_v32 = vld [vmem:[#allocation3] sm:$0xff]  ;;  %v2207_v20 = vld [vmem:[#allocation3 + $0x8] sm:$0xff]  ;;  %v2232_v56 = vld [vmem:[#allocation3 + $0xd0] sm:$0xff]  ;;  %s2797_s21 = scalar_lea.vmem %s2445_s14, 128  ;;  %p2802_p13 = scmp.lt.s32.totalorder %s2445_s14, %s2445_s14 }
 0x498   :  { %2515 = vmatprep.subr.bf16.mxu1 %v2230_v46  ;;  %v2222_v43 = vld [vmem:[#allocation3 + $0x80] sm:$0xff]  ;;  %2494 = vmatpush3.bf16.msra.mxu0 %v2206_v32  ;;  %v2223_v49 = vld [vmem:[#allocation3 + $0x88] sm:$0xff]  ;;  %v2208_v40 = vld [vmem:[#allocation3 + $0x10] sm:$0xff]  ;;  %p2798_p12 = scmp.ne.s32.totalorder %s2445_s14, %s2797_s21  ;;  %p2803_p0 = scmp.lt.s32.totalorder %s2797_s21, %s2797_s21 }
 0x499   :  { %2516 = vmatpush3.bf16.msra.mxu1 %v2222_v43  ;;  %2495 = vmatprep.subr.bf16.mxu0 %v2215_v17  ;;  %v2224_v61 = vld [vmem:[#allocation3 + $0x90] sm:$0xff]  ;;  %v2217_v24 = vld [vmem:[#allocation3 + $0x58] sm:$0xff]  ;;  %v2218_v31 = vld [vmem:[#allocation3 + $0x60] sm:$0xff] }
 0x49a   :  { %2517 = vmatprep.subr.bf16.mxu1 %v2231_v19  ;;  %v2233_v25 = vld [vmem:[#allocation3 + $0xd8] sm:$0xff]  ;;  %v2234_v62 = vld [vmem:[#allocation3 + $0xe0] sm:$0xff]  ;;  %v2219_v13 = vld [vmem:[#allocation3 + $0x68] sm:$0xff]  ;;  %p2804_p1 = por %p2803_p0, %p2802_p13 }
 0x49b   :  { %v2209_v28 = vld [vmem:[#allocation3 + $0x18] sm:$0xff]  ;;  %v2210_v18 = vld [vmem:[#allocation3 + $0x20] sm:$0xff]  ;;  %v2235_v63 = vld [vmem:[#allocation3 + $0xe8] sm:$0xff] }
 0x49c   :  { %2496 = vmatpush3.bf16.msra.mxu0 %v2207_v20  ;;  %v2225_v9 = vld [vmem:[#allocation3 + $0x98] sm:$0xff]  ;;  %v2226_v30 = vld [vmem:[#allocation3 + $0xa0] sm:$0xff]  ;;  %v2211_v2 = vld [vmem:[#allocation3 + $0x28] sm:$0xff]  ;;  %v2202_v20 = vpack.c.bf16 %v3294_v12, %v3294_v12  ;;  %p2805_p2 = pnand %p2804_p1, %p2798_p12 }
 0x49d   :  { %2518 = vmatpush3.bf16.msra.mxu1 %v2223_v49  ;;  %2497 = vmatprep.subr.bf16.mxu0 %v2216_v53  ;;  %v2227_v35 = vld [vmem:[#allocation3 + $0xa8] sm:$0xff]  ;;  %v2220_v27 = vld [vmem:[#allocation3 + $0x70] sm:$0xff]  ;;  %v2221_v42 = vld [vmem:[#allocation3 + $0x78] sm:$0xff]  ;;  %v2204_v49 = vpack.c.bf16 %v3298_v58, %v3298_v58 }
 0x49e   :  { %2519 = vmatprep.subr.bf16.mxu1 %v2232_v56  ;;  %v2236_v48 = vld [vmem:[#allocation3 + $0xf0] sm:$0xff]  ;;  %v2237_v45 = vld [vmem:[#allocation3 + $0xf8] sm:$0xff]  ;;  %v2246_v29 = vld [vmem:[#allocation3 + $0x140] sm:$0xff] }
 0x49f   :  { %v2212_v59 = vld [vmem:[#allocation3 + $0x30] sm:$0xff]  ;;  %v2213_v1 = vld [vmem:[#allocation3 + $0x38] sm:$0xff]  ;;  %v2262_v39 = vld [vmem:[#allocation3 + $0x1c0] sm:$0xff] }
 0x4a0   :  { %2498 = vmatpush3.bf16.msra.mxu0 %v2208_v40  ;;  %v2228_v37 = vld [vmem:[#allocation3 + $0xb0] sm:$0xff]  ;;  %v2229_v38 = vld [vmem:[#allocation3 + $0xb8] sm:$0xff]  ;;  %v2238_v8 = vld [vmem:[#allocation3 + $0x100] sm:$0xff] }
 0x4a1   :  { %2520 = vmatpush3.bf16.msra.mxu1 %v2224_v61  ;;  %2499 = vmatprep.subr.bf16.mxu0 %v2217_v24  ;;  %v2254_v41 = vld [vmem:[#allocation3 + $0x180] sm:$0xff]  ;;  %v2247_v6 = vld [vmem:[#allocation3 + $0x148] sm:$0xff]  ;;  %v2248_v7 = vld [vmem:[#allocation3 + $0x150] sm:$0xff] }
 0x4a2   :  { %2521 = vmatprep.subr.bf16.mxu1 %v2233_v25  ;;  %v2263_v5 = vld [vmem:[#allocation3 + $0x1c8] sm:$0xff]  ;;  %v2264_v36 = vld [vmem:[#allocation3 + $0x1d0] sm:$0xff]  ;;  %v2249_v44 = vld [vmem:[#allocation3 + $0x158] sm:$0xff] }
 0x4a3   :  { %v2239_v52 = vld [vmem:[#allocation3 + $0x108] sm:$0xff]  ;;  %v2240_v34 = vld [vmem:[#allocation3 + $0x110] sm:$0xff]  ;;  %v2265_v50 = vld [vmem:[#allocation3 + $0x1d8] sm:$0xff] }
 0x4a4   :  { %2500 = vmatpush3.bf16.msra.mxu0 %v2209_v28  ;;  %v2255_v57 = vld [vmem:[#allocation3 + $0x188] sm:$0xff]  ;;  %v2256_v47 = vld [vmem:[#allocation3 + $0x190] sm:$0xff]  ;;  %v2241_v3 = vld [vmem:[#allocation3 + $0x118] sm:$0xff] }
 0x4a5   :  { %2522 = vmatpush3.bf16.msra.mxu1 %v2225_v9  ;;  %2501 = vmatprep.subr.bf16.mxu0 %v2218_v31  ;;  %v2257_v26 = vld [vmem:[#allocation3 + $0x198] sm:$0xff]  ;;  %v2250_v51 = vld [vmem:[#allocation3 + $0x160] sm:$0xff]  ;;  %v2251_v23 = vld [vmem:[#allocation3 + $0x168] sm:$0xff] }
 0x4a6   :  { %2523 = vmatprep.subr.bf16.mxu1 %v2234_v62  ;;  %v2266_v54 = vld [vmem:[#allocation3 + $0x1e0] sm:$0xff]  ;;  %v2267_v14 = vld [vmem:[#allocation3 + $0x1e8] sm:$0xff]  ;;  %v2252_v0 = vld [vmem:[#allocation3 + $0x170] sm:$0xff] }
 0x4a7   :  { %v2242_v10 = vld [vmem:[#allocation3 + $0x120] sm:$0xff]  ;;  %v2243_v16 = vld [vmem:[#allocation3 + $0x128] sm:$0xff]  ;;  %v2268_v15 = vld [vmem:[#allocation3 + $0x1f0] sm:$0xff] }
 0x4a8   :  { %2502 = vmatpush3.bf16.msra.mxu0 %v2210_v18  ;;  %v2258_v55 = vld [vmem:[#allocation3 + $0x1a0] sm:$0xff]  ;;  %v2259_v60 = vld [vmem:[#allocation3 + $0x1a8] sm:$0xff]  ;;  %v2244_v33 = vld [vmem:[#allocation3 + $0x130] sm:$0xff] }
 0x4a9   :  { %2524 = vmatpush3.bf16.msra.mxu1 %v2226_v30  ;;  %2503 = vmatprep.subr.bf16.mxu0 %v2219_v13  ;;  %v2260_v46 = vld [vmem:[#allocation3 + $0x1b0] sm:$0xff]  ;;  %v2253_v32 = vld [vmem:[#allocation3 + $0x178] sm:$0xff]  ;;  %v2490_v40 = vld [vmem:[#allocation11] ss:$0 sm:$0xff] }
 0x4aa   :  { %2525 = vmatprep.subr.bf16.mxu1 %v2235_v63  ;;  %v2269_v43 = vld [vmem:[#allocation3 + $0x1f8] sm:$0xff] }
 0x4ab   :  { %v2245_v17 = vld [vmem:[#allocation3 + $0x138] sm:$0xff] }
 0x4ac   :  { %2504 = vmatpush3.bf16.msra.mxu0 %v2211_v2  ;;  %v2261_v19 = vld [vmem:[#allocation3 + $0x1b8] sm:$0xff] }
 0x4ad   :  { %2526 = vmatpush3.bf16.msra.mxu1 %v2227_v35  ;;  %2505 = vmatprep.subr.bf16.mxu0 %v2220_v27 }
 0x4ae   :  { %2527 = vmatprep.subr.bf16.mxu1 %v2236_v48 }
 0x4b0   :  { %2506 = vmatpush3.bf16.msra.mxu0 %v2212_v59 }
 0x4b1   :  { %2528 = vmatpush3.bf16.msra.mxu1 %v2228_v37  ;;  %2507 = vmatprep.subr.bf16.mxu0 %v2221_v42 }
 0x4b2   :  { %2529 = vmatprep.subr.bf16.mxu1 %v2237_v45 }
 0x4b4   :  { %2508 = vmatpush3.bf16.msra.mxu0 %v2213_v1 }
 0x4b5   :  { %2530 = vmatpush3.bf16.msra.mxu1 %v2229_v38  ;;  %2537 = vmatprep.subr.bf16.mxu0 %v2246_v29 }
 0x4b6   :  { %2559 = vmatprep.subr.bf16.mxu1 %v2262_v39 }
 0x4b7   :  { %2310 = vmatmul.mubr.bf16.vlgmr.msra.gmra.mrb[16].mxu0 %v2198_v22 }
 0x4b8   :  { %2350 = vmatmul.mubr.bf16.vlgmr.msra.gmra.mrb[16].mxu1 %v2200_v21  ;;  %2538 = vmatpush3.bf16.msra.mxu0 %v2238_v8 }
 0x4b9   :  { %2560 = vmatpush3.bf16.msra.mxu1 %v2254_v41  ;;  %2539 = vmatprep.subr.bf16.mxu0 %v2247_v6 }
 0x4ba   :  { %2561 = vmatprep.subr.bf16.mxu1 %v2263_v5  ;;  %2389 = vmatprep.mubr.bf16.mxu0 %v2203_v4 }
 0x4bb   :  { %2429 = vmatprep.mubr.bf16.mxu1 %v2205_v11 }
 0x4bc   :  { %2540 = vmatpush3.bf16.msra.mxu0 %v2239_v52 }
 0x4bd   :  { %2562 = vmatpush3.bf16.msra.mxu1 %v2255_v57  ;;  %2541 = vmatprep.subr.bf16.mxu0 %v2248_v7 }
 0x4be   :  { %2563 = vmatprep.subr.bf16.mxu1 %v2264_v36 }
 0x4c0   :  { %2542 = vmatpush3.bf16.msra.mxu0 %v2240_v34 }
 0x4c1   :  { %2564 = vmatpush3.bf16.msra.mxu1 %v2256_v47  ;;  %2543 = vmatprep.subr.bf16.mxu0 %v2249_v44 }
 0x4c2   :  { %2565 = vmatprep.subr.bf16.mxu1 %v2265_v50 }
 0x4c4   :  { %2544 = vmatpush3.bf16.msra.mxu0 %v2241_v3 }
 0x4c5   :  { %2566 = vmatpush3.bf16.msra.mxu1 %v2257_v26  ;;  %2545 = vmatprep.subr.bf16.mxu0 %v2250_v51 }
 0x4c6   :  { %2567 = vmatprep.subr.bf16.mxu1 %v2266_v54 }
 0x4c8   :  { %2546 = vmatpush3.bf16.msra.mxu0 %v2242_v10 }
 0x4c9   :  { %2568 = vmatpush3.bf16.msra.mxu1 %v2258_v55  ;;  %2547 = vmatprep.subr.bf16.mxu0 %v2251_v23 }
 0x4ca   :  { %2569 = vmatprep.subr.bf16.mxu1 %v2267_v14 }
 0x4cc   :  { %2548 = vmatpush3.bf16.msra.mxu0 %v2243_v16 }
 0x4cd   :  { %2570 = vmatpush3.bf16.msra.mxu1 %v2259_v60  ;;  %2549 = vmatprep.subr.bf16.mxu0 %v2252_v0 }
 0x4ce   :  { %2571 = vmatprep.subr.bf16.mxu1 %v2268_v15 }
 0x4d0   :  { %2550 = vmatpush3.bf16.msra.mxu0 %v2244_v33 }
 0x4d1   :  { %2572 = vmatpush3.bf16.msra.mxu1 %v2260_v46  ;;  %2551 = vmatprep.subr.bf16.mxu0 %v2253_v32 }
 0x4d2   :  { %2573 = vmatprep.subr.bf16.mxu1 %v2269_v43 }
 0x4d4   :  { %2552 = vmatpush3.bf16.msra.mxu0 %v2245_v17 }
 0x4d5   :  { %2574 = vmatpush3.bf16.msra.mxu1 %v2261_v19 }
 0x4d7   :  { %2390 = vmatmul.mubr.bf16.vlgmr.msra.gmra.mrb[20].mxu0 %v2202_v20 }
 0x4d8   :  { %2430 = vmatmul.mubr.bf16.vlgmr.msra.gmra.mrb[20].mxu1 %v2204_v49 }
 0x58a   :  { %v2509_v53 = vpop.f32.mrb[16].mxu0 }
 0x58b   :  { %v2531_v56 = vpop.f32.mrb[16].mxu1  ;;  %v2510_v61 = vpop.f32.mrb[17].mxu0 }
 0x58c   :  { %v2532_v24 = vpop.f32.mrb[17].mxu1  ;;  %v2511_v25 = vadd.f32 %v2510_v61, %v2509_v53  ;;  %v2512_v9 = vpop.f32.mrb[18].mxu0 }
 0x58d   :  { %v2533_v28 = vadd.f32 %v2532_v24, %v2531_v56  ;;  %v2534_v31 = vpop.f32.mrb[18].mxu1  ;;  %v2513_v62 = vpop.f32.mrb[19].mxu0 }
 0x58e   :  { %v2535_v18 = vpop.f32.mrb[19].mxu1  ;;  %v2312_v30 = vadd.f32 %v2511_v25, %v2490_v40 }
 0x590   :  { %v2352_v12 = vadd.f32 %v2533_v28, %v2312_v30 }
 0x5aa   :  { %v2553_v13 = vpop.f32.mrb[20].mxu0 }
 0x5ab   :  { %v2575_v63 = vpop.f32.mrb[20].mxu1  ;;  %v2554_v58 = vpop.f32.mrb[21].mxu0 }
 0x5ac   :  { %v2576_v2 = vpop.f32.mrb[21].mxu1  ;;  %v2555_v35 = vadd.f32 %v2554_v58, %v2553_v13  ;;  %v2556_v48 = vpop.f32.mrb[22].mxu0 }
 0x5ad   :  { %v2577_v27 = vadd.f32 %v2576_v2, %v2575_v63  ;;  %v2578_v59 = vpop.f32.mrb[22].mxu1  ;;  %v2557_v37 = vpop.f32.mrb[23].mxu0 }
 0x5ae   :  { %v2579_v42 = vpop.f32.mrb[23].mxu1  ;;  %v2392_v45 = vadd.f32 %v2555_v35, %v2352_v12 }
 0x5b0   :  { %v2432_v1 = vadd.f32 %v2577_v27, %v2392_v45 }
 0x5b2   :  { %2437 = vst [vmem:[#allocation13] sm:$0xff] %v2432_v1 }
 0x5b3   :  { %2808 = shalt.err (!%p2805_p2)
}
 0x5b4   :  { %s2809_s23 = scalar_lea.hbm %s3340_s6, 128 }
 0x5b5   :  { %p2810_p3 = scmp.ne.s32.totalorder %s3340_s6, %s2809_s23  ;;  %p2813_p4 = scmp.lt.u32.totalorder %s2809_s23, %s3340_s6 }
 0x5b7   :  { %p2815_p5 = pnand %p2813_p4, %p2810_p3 }
 0x5b9   :  { %2818 = shalt.err (!%p2815_p5)
}
 0x5ba   :  { %2447 = dma.vmem_to_hbm [thread:$0]  %s2445_s14, 128, %s3340_s6, [#allocation7]  }
 0x5bb   :  { %2829 = dma.done.wait [#allocation7], 128  }
 0x5bc   :  { %2830 = vsyncadd [#allocation7], 4294967168 }
 0x5bd   :  { %2451 = vsyncpa [#allocation6], 1 }
 0x5be   :  { %2452 = vsyncpa [#allocation9], 1 }
 0x5bf   :  { %2453 = vsyncpa [#allocation12], 1 }
 0x5c0   :  { %2454 = vsyncpa [#allocation7], 1 }
 0x5c1   :  { %2455 = vsyncmov [#allocation4] }
 0x5c4   :  { %s2456_s29 = vpop.sfrf %2455 }
 0x5c5   :  { %p2491_p6 = scmp.ne.s32.totalorder %s2456_s29, 0 }
 0x5c7   :  { %2460 = shalt.err (%p2491_p6)  }
 0x5c8   :  { %2462 = vsyncmov [#allocation4 + $0x1] }
 0x5cb   :  { %s2463_s30 = vpop.sfrf %2462 }
 0x5cc   :  { %p2492_p7 = scmp.ne.s32.totalorder %s2463_s30, 0 }
 0x5ce   :  { %2467 = shalt.err (%p2492_p7)  }

</bundles_post_ra>
